<compile_context>
chip_gen: v7x
topology: tpu7x:2x2x1
jax: 0.10.0
libtpu: 0.0.40
codegen_flags: <defaults>
</compile_context>

<pallas_src>
import functools

import jax
import jax.numpy as jnp
from jax.experimental import pallas as pl
from jax.experimental.pallas import tpu as pltpu


# --------------------------------------------------------------------------
# helpers
# --------------------------------------------------------------------------
def _round_up(x, m):
    return ((x + m - 1) // m) * m


# --------------------------------------------------------------------------
# Pallas kernels
# --------------------------------------------------------------------------
def _mm_bias_act_kernel(x_ref, w_ref, b_ref, o_ref, acc_ref, *, act):
    """Tiled (tm,tk)x(tk,tn) matmul, f32 accumulation, fused bias+act epilogue."""
    @pl.when(pl.program_id(2) == 0)
    def _():
        acc_ref[...] = jnp.zeros_like(acc_ref)

    acc_ref[...] += jnp.dot(x_ref[...], w_ref[...],
                            preferred_element_type=jnp.float32)

    @pl.when(pl.program_id(2) == pl.num_programs(2) - 1)
    def _():
        acc = acc_ref[...] + b_ref[...]          # (1, tn) broadcast over rows
        if act == "relu":
            acc = jnp.maximum(acc, 0.0)
        elif act == "sigmoid":
            acc = jax.nn.sigmoid(acc)            # f32 epilogue (EUP slot)
        elif act == "tanh":
            acc = jnp.tanh(acc)
        o_ref[...] = acc.astype(o_ref.dtype)


def _mul_kernel(a_ref, b_ref, o_ref):
    o_ref[...] = a_ref[...] * b_ref[...]


def _gru_combine_kernel(z_ref, n_ref, h_ref, o_ref):
    z = z_ref[...]
    o_ref[...] = (1.0 - z) * h_ref[...] + z * n_ref[...]


# --------------------------------------------------------------------------
# Pallas wrappers
# --------------------------------------------------------------------------
def matmul_bias_act(x, w, b, act="none"):
    """x:(M,K) w:(K,N) b:(N,) -> (M,N) f32.

    Inputs are cast to bf16 (MXU native), K/N zero-padded to multiples of 128
    (lane-dense stores), M padded to a multiple of the row tile.  Tiled grid
    with an f32 VMEM accumulator; K is the "arbitrary" reduction axis.
    """
    M, K = x.shape
    K2, N = w.shape
    assert K == K2

    K_pad = _round_up(K, 128)
    N_pad = _round_up(N, 128)
    tm = min(256, _round_up(M, 8))
    M_pad = _round_up(M, tm)
    # largest tile sizes (<=512 / <=256) that evenly divide the padded dims
    tk = K_pad if K_pad <= 512 else (
        512 if K_pad % 512 == 0 else 256 if K_pad % 256 == 0 else 128)
    tn = N_pad if N_pad <= 256 else (256 if N_pad % 256 == 0 else 128)

    xp = jnp.zeros((M_pad, K_pad), jnp.bfloat16).at[:M, :K].set(
        x.astype(jnp.bfloat16))
    wp = jnp.zeros((K_pad, N_pad), jnp.bfloat16).at[:K, :N].set(
        w.astype(jnp.bfloat16))
    bp = jnp.zeros((1, N_pad), jnp.float32).at[0, :N].set(
        b.astype(jnp.float32))

    grid = (M_pad // tm, N_pad // tn, K_pad // tk)
    kernel = functools.partial(_mm_bias_act_kernel, act=act)

    flops = 2 * M_pad * N_pad * K_pad
    transcendentals = M_pad * N_pad if act in ("sigmoid", "tanh") else 0
    bytes_accessed = (M_pad * K_pad + K_pad * N_pad) * 2 + N_pad * 4 \
        + M_pad * N_pad * 4

    out = pl.pallas_call(
        kernel,
        out_shape=jax.ShapeDtypeStruct((M_pad, N_pad), jnp.float32),
        grid_spec=pltpu.PrefetchScalarGridSpec(
            num_scalar_prefetch=0,
            grid=grid,
            in_specs=[
                pl.BlockSpec((tm, tk), lambda i, j, k: (i, k)),
                pl.BlockSpec((tk, tn), lambda i, j, k: (k, j)),
                pl.BlockSpec((1, tn), lambda i, j, k: (0, j)),
            ],
            out_specs=pl.BlockSpec((tm, tn), lambda i, j, k: (i, j)),
            scratch_shapes=[pltpu.VMEM((tm, tn), jnp.float32)],
        ),
        compiler_params=pltpu.CompilerParams(
            dimension_semantics=("parallel", "parallel", "arbitrary"),
            vmem_limit_bytes=64 * 1024 * 1024,
        ),
        cost_estimate=pl.CostEstimate(
            flops=flops,
            transcendentals=transcendentals,
            bytes_accessed=bytes_accessed,
        ),
    )(xp, wp, bp)
    return out[:M, :N]


def _ew_call(kernel, *arrays):
    """Tiled, lane-dense element-wise kernel over flattened arrays."""
    shp = arrays[0].shape
    n = arrays[0].size
    lane = 128
    rows_total = -(-n // lane)
    block_rows = min(512, _round_up(rows_total, 8))
    rows_pad = _round_up(rows_total, block_rows)
    n_pad = rows_pad * lane

    padded = [jnp.pad(a.reshape(-1).astype(jnp.float32), (0, n_pad - n))
              .reshape(rows_pad, lane) for a in arrays]
    out = pl.pallas_call(
        kernel,
        out_shape=jax.ShapeDtypeStruct((rows_pad, lane), jnp.float32),
        grid=(rows_pad // block_rows,),
        in_specs=[pl.BlockSpec((block_rows, lane), lambda i: (i, 0))
                  for _ in arrays],
        out_specs=pl.BlockSpec((block_rows, lane), lambda i: (i, 0)),
        compiler_params=pltpu.CompilerParams(
            dimension_semantics=("parallel",)),
    )(*padded)
    return out.reshape(-1)[:n].reshape(shp)


def ew_mul(a, b):
    return _ew_call(_mul_kernel, a, b)


def gru_combine(z, n, h):
    return _ew_call(_gru_combine_kernel, z, n, h)


def conv3x3(x, w, b, act="none"):
    """'same' 3x3 conv, stride 1.  x:(N,H,W,Cin), w:(3,3,Cin,Cout), b:(Cout,).

    im2col is built in bf16 (halves HBM traffic of the 9x patches) and fed to
    the tiled Pallas GEMM.
    """
    N, H, W, Cin = x.shape
    Cout = w.shape[-1]
    xb = x.astype(jnp.bfloat16)
    xp = jnp.pad(xb, ((0, 0), (1, 1), (1, 1), (0, 0)))
    cols = [xp[:, dy:dy + H, dx:dx + W, :] for dy in range(3) for dx in range(3)]
    patches = jnp.concatenate(cols, axis=-1).reshape(N * H * W, 9 * Cin)
    wm = w.reshape(9 * Cin, Cout)
    out = matmul_bias_act(patches, wm, b, act=act)
    return out.reshape(N, H, W, Cout)


# --------------------------------------------------------------------------
# Layout glue (pure data-movement, no math worth a kernel)
# --------------------------------------------------------------------------
def avg_pool2(x):
    N, H, W, C = x.shape
    return x.reshape(N, H // 2, 2, W // 2, 2, C).mean(axis=(2, 4))


def upsample2(x):
    return jnp.repeat(jnp.repeat(x, 2, axis=1), 2, axis=2)


def space_to_depth(x):  # factor 2, NHWC
    N, H, W, C = x.shape
    x = x.reshape(N, H // 2, 2, W // 2, 2, C)
    return x.transpose(0, 1, 3, 2, 4, 5).reshape(N, H // 2, W // 2, 4 * C)


def depth_to_space(x):  # factor 2, NHWC
    N, H, W, C = x.shape
    c = C // 4
    x = x.reshape(N, H, W, 2, 2, c)
    return x.transpose(0, 1, 3, 2, 4, 5).reshape(N, H * 2, W * 2, c)


# --------------------------------------------------------------------------
# Parameter construction (deterministic, in-script)
# --------------------------------------------------------------------------
def _conv_params(key, cin, cout):
    w = jax.random.normal(key, (3, 3, cin, cout), jnp.float32) / jnp.sqrt(9.0 * cin)
    b = jnp.zeros((cout,), jnp.float32)
    return {"w": w, "b": b}


def _gru_params(key, c):
    kz, kr, kn = jax.random.split(key, 3)
    pz = _conv_params(kz, 2 * c, c)
    pr = _conv_params(kr, 2 * c, c)
    pn = _conv_params(kn, 2 * c, c)
    # z and r gates read the same [x, h] concat -> fuse into a single GEMM
    return {
        "zr_w": jnp.concatenate([pz["w"], pr["w"]], axis=-1),
        "zr_b": jnp.concatenate([pz["b"], pr["b"]], axis=-1),
        "n": pn,
    }


def conv_gru(x, h, p):
    xh = jnp.concatenate([x, h], axis=-1)
    c = h.shape[-1]
    zr = conv3x3(xh, p["zr_w"], p["zr_b"], act="sigmoid")   # one fused GEMM
    z, r = zr[..., :c], zr[..., c:]
    rh = ew_mul(r, h)
    n = conv3x3(jnp.concatenate([x, rh], axis=-1), p["n"]["w"], p["n"]["b"],
                act="tanh")
    return gru_combine(z, n, h)


# --------------------------------------------------------------------------
# Generator
# --------------------------------------------------------------------------
class Generator:
    def __init__(self, in_channels, in_shape, base_channels, down_step,
                 prev_step, pred_step, batch_size, key):
        width, height = in_shape
        assert width % (2 * 2 ** down_step) == 0
        assert height % (2 * 2 ** down_step) == 0
        self.in_channels = in_channels
        self.down_step = down_step
        self.prev_step = prev_step
        self.pred_step = pred_step
        self.s_w = width // (2 * 2 ** down_step)
        self.s_h = height // (2 * 2 ** down_step)
        self.out_channels = base_channels * 2 ** (down_step - 2) * prev_step * in_channels
        # channel counts of the context states (coarse == out_channels)
        self.ctx_ch = [self.out_channels // 2 ** (down_step - 1 - i)
                       for i in range(down_step)]
        self.frame_ch = [c // prev_step for c in self.ctx_ch]

        keys = jax.random.split(key, 64)
        ki = iter(range(64))

        # --- ContextConditionStack ---
        self.ctx_lvl, self.ctx_mix = [], []
        cin = 4 * in_channels                     # after space-to-depth
        for i in range(down_step):
            self.ctx_lvl.append(_conv_params(keys[next(ki)], cin, self.frame_ch[i]))
            self.ctx_mix.append(_conv_params(keys[next(ki)],
                                             prev_step * self.frame_ch[i],
                                             self.ctx_ch[i]))
            cin = self.frame_ch[i]

        # --- LatentConditionStack (out_channels * 2) ---
        # TODO(synk): latent noise uses a fixed key (same draw every forward),
        # mirroring the prior revision; real GAN sampling would split a key.
        self.z_key = keys[next(ki)]
        self.lat1 = _conv_params(keys[next(ki)], 8, self.out_channels)
        self.lat2 = _conv_params(keys[next(ki)], self.out_channels, self.out_channels * 2)

        # --- Sampler ---
        self.lat_proj = _conv_params(keys[next(ki)], self.out_channels * 2, self.ctx_ch[-1])
        self.gru = [_gru_params(keys[next(ki)], c) for c in self.ctx_ch]
        self.up = {idx: _conv_params(keys[next(ki)], self.ctx_ch[idx], self.ctx_ch[idx - 1])
                   for idx in range(1, down_step)}
        self.out_conv = _conv_params(keys[next(ki)], self.ctx_ch[0], in_channels * 4)

    # ------------------------------------------------------------------
    def context_stack(self, x):
        N, D, C, H, W = x.shape
        xf = x.transpose(0, 1, 3, 4, 2).reshape(N * D, H, W, C)   # NCHW -> NHWC frames
        feat = space_to_depth(xf)
        contexts = []
        for i in range(self.down_step):
            feat = conv3x3(feat, self.ctx_lvl[i]["w"], self.ctx_lvl[i]["b"], act="relu")
            feat = avg_pool2(feat)
            _, h_i, w_i, f_i = feat.shape
            stacked = (feat.reshape(N, D, h_i, w_i, f_i)
                       .transpose(0, 2, 3, 1, 4)
                       .reshape(N, h_i, w_i, D * f_i))
            ctx = conv3x3(stacked, self.ctx_mix[i]["w"], self.ctx_mix[i]["b"], act="relu")
            contexts.append(ctx)
        return contexts

    def latent_stack(self, x, batch_size=1):
        z = jax.random.normal(self.z_key, (batch_size, self.s_h, self.s_w, 8), jnp.float32)
        z = conv3x3(z, self.lat1["w"], self.lat1["b"], act="relu")
        z = conv3x3(z, self.lat2["w"], self.lat2["b"], act="none")
        return z                                   # (batch_size, s_h, s_w, 2*out_channels)

    def sampler(self, zlatent, contexts):
        N = contexts[0].shape[0]
        z = jnp.broadcast_to(zlatent, (N,) + zlatent.shape[1:])
        inp0 = conv3x3(z, self.lat_proj["w"], self.lat_proj["b"], act="relu")
        hidden = list(contexts)
        frames = []
        for _ in range(self.pred_step):
            inp = inp0
            for idx in range(self.down_step - 1, -1, -1):
                hidden[idx] = conv_gru(inp, hidden[idx], self.gru[idx])
                if idx > 0:
                    g = conv3x3(hidden[idx], self.up[idx]["w"], self.up[idx]["b"], act="relu")
                    inp = upsample2(g)
            o = conv3x3(hidden[0], self.out_conv["w"], self.out_conv["b"], act="none")
            o = upsample2(o)
            o = depth_to_space(o)                  # (N, H, W, in_channels)
            frames.append(o)
        pred = jnp.stack(frames, axis=1)            # (N, T, H, W, C)
        return pred.transpose(0, 1, 4, 2, 3)        # (N, T, C, H, W)

    def __call__(self, x):
        context_inits = self.context_stack(x)
        zlatent = self.latent_stack(x, batch_size=1)
        pred = self.sampler(zlatent, context_inits)
        return pred


# --------------------------------------------------------------------------
if __name__ == "__main__":
    key = jax.random.PRNGKey(0)
    k_param, k_x = jax.random.split(key)

    # small config consistent with Generator.__init__ asserts
    in_channels = 1
    in_shape = (32, 32)
    base_channels = 8
    down_step = 2
    prev_step = 2
    pred_step = 2
    batch = 2

    gen = Generator(in_channels, in_shape, base_channels, down_step,
                    prev_step, pred_step, batch, key=k_param)

    # x: (N, D, C, H, W) like the PyTorch module
    x = jax.random.normal(k_x, (batch, prev_step, in_channels,
                                in_shape[1], in_shape[0]), jnp.float32)

    forward = jax.jit(lambda inp: gen(inp))
    pred = forward(x)
    pred = jax.block_until_ready(pred)

    expected = (batch, pred_step, in_channels, in_shape[1], in_shape[0])
    assert pred.shape == expected, (pred.shape, expected)
    assert jnp.all(jnp.isfinite(pred))
    print("KERNEL_OK")
</pallas_src>

<mosaic_0001>
module attributes {stable_mosaic.version = 11 : i64} {
  func.func @_mm_bias_act_kernel(%arg0: i32, %arg1: i32, %arg2: i32, %arg3: memref<256x128xbf16, #tpu.memory_space<vmem>>, %arg4: memref<128x128xbf16, #tpu.memory_space<vmem>>, %arg5: memref<1x128xf32, #tpu.memory_space<vmem>>, %arg6: memref<256x128xf32, #tpu.memory_space<vmem>>, %arg7: memref<256x128xf32, #tpu.memory_space<vmem>>) attributes {dimension_semantics = [#tpu.dimension_semantics<parallel>, #tpu.dimension_semantics<parallel>, #tpu.dimension_semantics<arbitrary>], iteration_bounds = array<i64: 4, 1, 1>, scalar_prefetch = 0 : i64, scratch_operands = 1 : i64, tpu.core_type = #tpu.core_type<tc>, window_params = [{transform_indices = @transform_0, window_bounds = array<i64: 256, 128>}, {transform_indices = @transform_1, window_bounds = array<i64: 128, 128>}, {transform_indices = @transform_2, window_bounds = array<i64: 1, 128>}, {transform_indices = @transform_3, window_bounds = array<i64: 256, 128>}]} {
    %c0_i32 = arith.constant 0 : i32
    %0 = arith.cmpi eq, %arg2, %c0_i32 : i32
    %1 = arith.extui %0 : i1 to i32
    %c0_i32_0 = arith.constant 0 : i32
    %2 = arith.cmpi ne, %1, %c0_i32_0 : i32
    scf.if %2 {
      %cst_10 = arith.constant 0.000000e+00 : f32
      %12 = vector.broadcast %cst_10 : f32 to vector<256x128xf32>
      %c0_11 = arith.constant 0 : index
      %c0_12 = arith.constant 0 : index
      %13 = vector.load %arg7[%c0_11, %c0_12] : memref<256x128xf32, #tpu.memory_space<vmem>>, vector<256x128xf32>
      tpu.vector_store %arg7[%c0_11, %c0_12], %12 {strides = array<i32>} : memref<256x128xf32, #tpu.memory_space<vmem>>, vector<256x128xf32>,
    } else {
    }
    %c0 = arith.constant 0 : index
    %c0_1 = arith.constant 0 : index
    %3 = vector.load %arg7[%c0, %c0_1] : memref<256x128xf32, #tpu.memory_space<vmem>>, vector<256x128xf32>
    %c0_2 = arith.constant 0 : index
    %c0_3 = arith.constant 0 : index
    %4 = vector.load %arg3[%c0_2, %c0_3] : memref<256x128xbf16, #tpu.memory_space<vmem>>, vector<256x128xbf16>
    %c0_4 = arith.constant 0 : index
    %c0_5 = arith.constant 0 : index
    %5 = vector.load %arg4[%c0_4, %c0_5] : memref<128x128xbf16, #tpu.memory_space<vmem>>, vector<128x128xbf16>
    %cst = arith.constant dense<0.000000e+00> : vector<256x128xf32>
    %6 = tpu.matmul %4, %5, %cst {dimension_numbers = #tpu.dot_dimension_numbers<[1], [0], [0], [1], [0, 0, 1, 1], [], []>} : vector<256x128xbf16>, vector<128x128xbf16>, vector<256x128xf32> -> vector<256x128xf32>
    %7 = arith.addf %3, %6 : vector<256x128xf32>
    %c0_6 = arith.constant 0 : index
    %c0_7 = arith.constant 0 : index
    %8 = vector.load %arg7[%c0_6, %c0_7] : memref<256x128xf32, #tpu.memory_space<vmem>>, vector<256x128xf32>
    tpu.vector_store %arg7[%c0_6, %c0_7], %7 {strides = array<i32>} : memref<256x128xf32, #tpu.memory_space<vmem>>, vector<256x128xf32>,
    %c0_i32_8 = arith.constant 0 : i32
    %9 = arith.cmpi eq, %arg2, %c0_i32_8 : i32
    %10 = arith.extui %9 : i1 to i32
    %c0_i32_9 = arith.constant 0 : i32
    %11 = arith.cmpi ne, %10, %c0_i32_9 : i32
    scf.if %11 {
      %c0_10 = arith.constant 0 : index
      %c0_11 = arith.constant 0 : index
      %12 = vector.load %arg7[%c0_10, %c0_11] : memref<256x128xf32, #tpu.memory_space<vmem>>, vector<256x128xf32>
      %c0_12 = arith.constant 0 : index
      %c0_13 = arith.constant 0 : index
      %13 = vector.load %arg5[%c0_12, %c0_13] : memref<1x128xf32, #tpu.memory_space<vmem>>, vector<1x128xf32>
      %14 = vector.broadcast %13 : vector<1x128xf32> to vector<256x128xf32>
      %15 = arith.addf %12, %14 : vector<256x128xf32>
      %cst_14 = arith.constant 0.000000e+00 : f32
      %16 = vector.broadcast %cst_14 : f32 to vector<256x128xf32>
      %17 = arith.maximumf %15, %16 : vector<256x128xf32>
      %c0_15 = arith.constant 0 : index
      %c0_16 = arith.constant 0 : index
      %18 = vector.load %arg6[%c0_15, %c0_16] : memref<256x128xf32, #tpu.memory_space<vmem>>, vector<256x128xf32>
      tpu.vector_store %arg6[%c0_15, %c0_16], %17 {strides = array<i32>} : memref<256x128xf32, #tpu.memory_space<vmem>>, vector<256x128xf32>,
    } else {
    }
    return
  }
  func.func @transform_0(%arg0: i32, %arg1: i32, %arg2: i32) -> (i32, i32) {
    %c0_i32 = arith.constant 0 : i32
    return %arg0, %arg2 : i32, i32
  }
  func.func @transform_1(%arg0: i32, %arg1: i32, %arg2: i32) -> (i32, i32) {
    %c0_i32 = arith.constant 0 : i32
    return %arg2, %arg1 : i32, i32
  }
  func.func @transform_2(%arg0: i32, %arg1: i32, %arg2: i32) -> (i32, i32) {
    %c0_i32 = arith.constant 0 : i32
    %c0_i32_0 = arith.constant 0 : i32
    return %c0_i32, %arg1 : i32, i32
  }
  func.func @transform_3(%arg0: i32, %arg1: i32, %arg2: i32) -> (i32, i32) {
    %c0_i32 = arith.constant 0 : i32
    return %arg0, %arg1 : i32, i32
  }
}

module attributes {stable_mosaic.version = 11 : i64} {
  func.func @_mm_bias_act_kernel(%arg0: i32, %arg1: i32, %arg2: i32, %arg3: memref<128x128xbf16, #tpu.memory_space<vmem>>, %arg4: memref<128x128xbf16, #tpu.memory_space<vmem>>, %arg5: memref<1x128xf32, #tpu.memory_space<vmem>>, %arg6: memref<128x128xf32, #tpu.memory_space<vmem>>, %arg7: memref<128x128xf32, #tpu.memory_space<vmem>>) attributes {dimension_semantics = [#tpu.dimension_semantics<parallel>, #tpu.dimension_semantics<parallel>, #tpu.dimension_semantics<arbitrary>], iteration_bounds = array<i64: 1, 1, 1>, scalar_prefetch = 0 : i64, scratch_operands = 1 : i64, tpu.core_type = #tpu.core_type<tc>, window_params = [{transform_indices = @transform_0, window_bounds = array<i64: 128, 128>}, {transform_indices = @transform_1, window_bounds = array<i64: 128, 128>}, {transform_indices = @transform_2, window_bounds = array<i64: 1, 128>}, {transform_indices = @transform_3, window_bounds = array<i64: 128, 128>}]} {
    %c0_i32 = arith.constant 0 : i32
    %0 = arith.cmpi eq, %arg2, %c0_i32 : i32
    %1 = arith.extui %0 : i1 to i32
    %c0_i32_0 = arith.constant 0 : i32
    %2 = arith.cmpi ne, %1, %c0_i32_0 : i32
    scf.if %2 {
      %cst_10 = arith.constant 0.000000e+00 : f32
      %12 = vector.broadcast %cst_10 : f32 to vector<128x128xf32>
      %c0_11 = arith.constant 0 : index
      %c0_12 = arith.constant 0 : index
      %13 = vector.load %arg7[%c0_11, %c0_12] : memref<128x128xf32, #tpu.memory_space<vmem>>, vector<128x128xf32>
      tpu.vector_store %arg7[%c0_11, %c0_12], %12 {strides = array<i32>} : memref<128x128xf32, #tpu.memory_space<vmem>>, vector<128x128xf32>,
    } else {
    }
    %c0 = arith.constant 0 : index
    %c0_1 = arith.constant 0 : index
    %3 = vector.load %arg7[%c0, %c0_1] : memref<128x128xf32, #tpu.memory_space<vmem>>, vector<128x128xf32>
    %c0_2 = arith.constant 0 : index
    %c0_3 = arith.constant 0 : index
    %4 = vector.load %arg3[%c0_2, %c0_3] : memref<128x128xbf16, #tpu.memory_space<vmem>>, vector<128x128xbf16>
    %c0_4 = arith.constant 0 : index
    %c0_5 = arith.constant 0 : index
    %5 = vector.load %arg4[%c0_4, %c0_5] : memref<128x128xbf16, #tpu.memory_space<vmem>>, vector<128x128xbf16>
    %cst = arith.constant dense<0.000000e+00> : vector<128x128xf32>
    %6 = tpu.matmul %4, %5, %cst {dimension_numbers = #tpu.dot_dimension_numbers<[1], [0], [0], [1], [0, 0, 1, 1], [], []>} : vector<128x128xbf16>, vector<128x128xbf16>, vector<128x128xf32> -> vector<128x128xf32>
    %7 = arith.addf %3, %6 : vector<128x128xf32>
    %c0_6 = arith.constant 0 : index
    %c0_7 = arith.constant 0 : index
    %8 = vector.load %arg7[%c0_6, %c0_7] : memref<128x128xf32, #tpu.memory_space<vmem>>, vector<128x128xf32>
    tpu.vector_store %arg7[%c0_6, %c0_7], %7 {strides = array<i32>} : memref<128x128xf32, #tpu.memory_space<vmem>>, vector<128x128xf32>,
    %c0_i32_8 = arith.constant 0 : i32
    %9 = arith.cmpi eq, %arg2, %c0_i32_8 : i32
    %10 = arith.extui %9 : i1 to i32
    %c0_i32_9 = arith.constant 0 : i32
    %11 = arith.cmpi ne, %10, %c0_i32_9 : i32
    scf.if %11 {
      %c0_10 = arith.constant 0 : index
      %c0_11 = arith.constant 0 : index
      %12 = vector.load %arg7[%c0_10, %c0_11] : memref<128x128xf32, #tpu.memory_space<vmem>>, vector<128x128xf32>
      %c0_12 = arith.constant 0 : index
      %c0_13 = arith.constant 0 : index
      %13 = vector.load %arg5[%c0_12, %c0_13] : memref<1x128xf32, #tpu.memory_space<vmem>>, vector<1x128xf32>
      %14 = vector.broadcast %13 : vector<1x128xf32> to vector<128x128xf32>
      %15 = arith.addf %12, %14 : vector<128x128xf32>
      %cst_14 = arith.constant 0.000000e+00 : f32
      %16 = vector.broadcast %cst_14 : f32 to vector<128x128xf32>
      %17 = arith.maximumf %15, %16 : vector<128x128xf32>
      %c0_15 = arith.constant 0 : index
      %c0_16 = arith.constant 0 : index
      %18 = vector.load %arg6[%c0_15, %c0_16] : memref<128x128xf32, #tpu.memory_space<vmem>>, vector<128x128xf32>
      tpu.vector_store %arg6[%c0_15, %c0_16], %17 {strides = array<i32>} : memref<128x128xf32, #tpu.memory_space<vmem>>, vector<128x128xf32>,
    } else {
    }
    return
  }
  func.func @transform_0(%arg0: i32, %arg1: i32, %arg2: i32) -> (i32, i32) {
    %c0_i32 = arith.constant 0 : i32
    return %arg0, %arg2 : i32, i32
  }
  func.func @transform_1(%arg0: i32, %arg1: i32, %arg2: i32) -> (i32, i32) {
    %c0_i32 = arith.constant 0 : i32
    return %arg2, %arg1 : i32, i32
  }
  func.func @transform_2(%arg0: i32, %arg1: i32, %arg2: i32) -> (i32, i32) {
    %c0_i32 = arith.constant 0 : i32
    %c0_i32_0 = arith.constant 0 : i32
    return %c0_i32, %arg1 : i32, i32
  }
  func.func @transform_3(%arg0: i32, %arg1: i32, %arg2: i32) -> (i32, i32) {
    %c0_i32 = arith.constant 0 : i32
    return %arg0, %arg1 : i32, i32
  }
}

module attributes {stable_mosaic.version = 11 : i64} {
  func.func @_mm_bias_act_kernel(%arg0: i32, %arg1: i32, %arg2: i32, %arg3: memref<256x128xbf16, #tpu.memory_space<vmem>>, %arg4: memref<128x128xbf16, #tpu.memory_space<vmem>>, %arg5: memref<1x128xf32, #tpu.memory_space<vmem>>, %arg6: memref<256x128xf32, #tpu.memory_space<vmem>>, %arg7: memref<256x128xf32, #tpu.memory_space<vmem>>) attributes {dimension_semantics = [#tpu.dimension_semantics<parallel>, #tpu.dimension_semantics<parallel>, #tpu.dimension_semantics<arbitrary>], iteration_bounds = array<i64: 1, 1, 1>, scalar_prefetch = 0 : i64, scratch_operands = 1 : i64, tpu.core_type = #tpu.core_type<tc>, window_params = [{transform_indices = @transform_0, window_bounds = array<i64: 256, 128>}, {transform_indices = @transform_1, window_bounds = array<i64: 128, 128>}, {transform_indices = @transform_2, window_bounds = array<i64: 1, 128>}, {transform_indices = @transform_3, window_bounds = array<i64: 256, 128>}]} {
    %c0_i32 = arith.constant 0 : i32
    %0 = arith.cmpi eq, %arg2, %c0_i32 : i32
    %1 = arith.extui %0 : i1 to i32
    %c0_i32_0 = arith.constant 0 : i32
    %2 = arith.cmpi ne, %1, %c0_i32_0 : i32
    scf.if %2 {
      %cst_10 = arith.constant 0.000000e+00 : f32
      %12 = vector.broadcast %cst_10 : f32 to vector<256x128xf32>
      %c0_11 = arith.constant 0 : index
      %c0_12 = arith.constant 0 : index
      %13 = vector.load %arg7[%c0_11, %c0_12] : memref<256x128xf32, #tpu.memory_space<vmem>>, vector<256x128xf32>
      tpu.vector_store %arg7[%c0_11, %c0_12], %12 {strides = array<i32>} : memref<256x128xf32, #tpu.memory_space<vmem>>, vector<256x128xf32>,
    } else {
    }
    %c0 = arith.constant 0 : index
    %c0_1 = arith.constant 0 : index
    %3 = vector.load %arg7[%c0, %c0_1] : memref<256x128xf32, #tpu.memory_space<vmem>>, vector<256x128xf32>
    %c0_2 = arith.constant 0 : index
    %c0_3 = arith.constant 0 : index
    %4 = vector.load %arg3[%c0_2, %c0_3] : memref<256x128xbf16, #tpu.memory_space<vmem>>, vector<256x128xbf16>
    %c0_4 = arith.constant 0 : index
    %c0_5 = arith.constant 0 : index
    %5 = vector.load %arg4[%c0_4, %c0_5] : memref<128x128xbf16, #tpu.memory_space<vmem>>, vector<128x128xbf16>
    %cst = arith.constant dense<0.000000e+00> : vector<256x128xf32>
    %6 = tpu.matmul %4, %5, %cst {dimension_numbers = #tpu.dot_dimension_numbers<[1], [0], [0], [1], [0, 0, 1, 1], [], []>} : vector<256x128xbf16>, vector<128x128xbf16>, vector<256x128xf32> -> vector<256x128xf32>
    %7 = arith.addf %3, %6 : vector<256x128xf32>
    %c0_6 = arith.constant 0 : index
    %c0_7 = arith.constant 0 : index
    %8 = vector.load %arg7[%c0_6, %c0_7] : memref<256x128xf32, #tpu.memory_space<vmem>>, vector<256x128xf32>
    tpu.vector_store %arg7[%c0_6, %c0_7], %7 {strides = array<i32>} : memref<256x128xf32, #tpu.memory_space<vmem>>, vector<256x128xf32>,
    %c0_i32_8 = arith.constant 0 : i32
    %9 = arith.cmpi eq, %arg2, %c0_i32_8 : i32
    %10 = arith.extui %9 : i1 to i32
    %c0_i32_9 = arith.constant 0 : i32
    %11 = arith.cmpi ne, %10, %c0_i32_9 : i32
    scf.if %11 {
      %c0_10 = arith.constant 0 : index
      %c0_11 = arith.constant 0 : index
      %12 = vector.load %arg7[%c0_10, %c0_11] : memref<256x128xf32, #tpu.memory_space<vmem>>, vector<256x128xf32>
      %c0_12 = arith.constant 0 : index
      %c0_13 = arith.constant 0 : index
      %13 = vector.load %arg5[%c0_12, %c0_13] : memref<1x128xf32, #tpu.memory_space<vmem>>, vector<1x128xf32>
      %14 = vector.broadcast %13 : vector<1x128xf32> to vector<256x128xf32>
      %15 = arith.addf %12, %14 : vector<256x128xf32>
      %cst_14 = arith.constant 0.000000e+00 : f32
      %16 = vector.broadcast %cst_14 : f32 to vector<256x128xf32>
      %17 = arith.maximumf %15, %16 : vector<256x128xf32>
      %c0_15 = arith.constant 0 : index
      %c0_16 = arith.constant 0 : index
      %18 = vector.load %arg6[%c0_15, %c0_16] : memref<256x128xf32, #tpu.memory_space<vmem>>, vector<256x128xf32>
      tpu.vector_store %arg6[%c0_15, %c0_16], %17 {strides = array<i32>} : memref<256x128xf32, #tpu.memory_space<vmem>>, vector<256x128xf32>,
    } else {
    }
    return
  }
  func.func @transform_0(%arg0: i32, %arg1: i32, %arg2: i32) -> (i32, i32) {
    %c0_i32 = arith.constant 0 : i32
    return %arg0, %arg2 : i32, i32
  }
  func.func @transform_1(%arg0: i32, %arg1: i32, %arg2: i32) -> (i32, i32) {
    %c0_i32 = arith.constant 0 : i32
    return %arg2, %arg1 : i32, i32
  }
  func.func @transform_2(%arg0: i32, %arg1: i32, %arg2: i32) -> (i32, i32) {
    %c0_i32 = arith.constant 0 : i32
    %c0_i32_0 = arith.constant 0 : i32
    return %c0_i32, %arg1 : i32, i32
  }
  func.func @transform_3(%arg0: i32, %arg1: i32, %arg2: i32) -> (i32, i32) {
    %c0_i32 = arith.constant 0 : i32
    return %arg0, %arg1 : i32, i32
  }
}

module attributes {stable_mosaic.version = 11 : i64} {
  func.func @_mm_bias_act_kernel(%arg0: i32, %arg1: i32, %arg2: i32, %arg3: memref<32x256xbf16, #tpu.memory_space<vmem>>, %arg4: memref<256x128xbf16, #tpu.memory_space<vmem>>, %arg5: memref<1x128xf32, #tpu.memory_space<vmem>>, %arg6: memref<32x128xf32, #tpu.memory_space<vmem>>, %arg7: memref<32x128xf32, #tpu.memory_space<vmem>>) attributes {dimension_semantics = [#tpu.dimension_semantics<parallel>, #tpu.dimension_semantics<parallel>, #tpu.dimension_semantics<arbitrary>], iteration_bounds = array<i64: 1, 1, 1>, scalar_prefetch = 0 : i64, scratch_operands = 1 : i64, tpu.core_type = #tpu.core_type<tc>, window_params = [{transform_indices = @transform_0, window_bounds = array<i64: 32, 256>}, {transform_indices = @transform_1, window_bounds = array<i64: 256, 128>}, {transform_indices = @transform_2, window_bounds = array<i64: 1, 128>}, {transform_indices = @transform_3, window_bounds = array<i64: 32, 128>}]} {
    %c0_i32 = arith.constant 0 : i32
    %0 = arith.cmpi eq, %arg2, %c0_i32 : i32
    %1 = arith.extui %0 : i1 to i32
    %c0_i32_0 = arith.constant 0 : i32
    %2 = arith.cmpi ne, %1, %c0_i32_0 : i32
    scf.if %2 {
      %cst_10 = arith.constant 0.000000e+00 : f32
      %12 = vector.broadcast %cst_10 : f32 to vector<32x128xf32>
      %c0_11 = arith.constant 0 : index
      %c0_12 = arith.constant 0 : index
      %13 = vector.load %arg7[%c0_11, %c0_12] : memref<32x128xf32, #tpu.memory_space<vmem>>, vector<32x128xf32>
      tpu.vector_store %arg7[%c0_11, %c0_12], %12 {strides = array<i32>} : memref<32x128xf32, #tpu.memory_space<vmem>>, vector<32x128xf32>,
    } else {
    }
    %c0 = arith.constant 0 : index
    %c0_1 = arith.constant 0 : index
    %3 = vector.load %arg7[%c0, %c0_1] : memref<32x128xf32, #tpu.memory_space<vmem>>, vector<32x128xf32>
    %c0_2 = arith.constant 0 : index
    %c0_3 = arith.constant 0 : index
    %4 = vector.load %arg3[%c0_2, %c0_3] : memref<32x256xbf16, #tpu.memory_space<vmem>>, vector<32x256xbf16>
    %c0_4 = arith.constant 0 : index
    %c0_5 = arith.constant 0 : index
    %5 = vector.load %arg4[%c0_4, %c0_5] : memref<256x128xbf16, #tpu.memory_space<vmem>>, vector<256x128xbf16>
    %cst = arith.constant dense<0.000000e+00> : vector<32x128xf32>
    %6 = tpu.matmul %4, %5, %cst {dimension_numbers = #tpu.dot_dimension_numbers<[1], [0], [0], [1], [0, 0, 1, 1], [], []>} : vector<32x256xbf16>, vector<256x128xbf16>, vector<32x128xf32> -> vector<32x128xf32>
    %7 = arith.addf %3, %6 : vector<32x128xf32>
    %c0_6 = arith.constant 0 : index
    %c0_7 = arith.constant 0 : index
    %8 = vector.load %arg7[%c0_6, %c0_7] : memref<32x128xf32, #tpu.memory_space<vmem>>, vector<32x128xf32>
    tpu.vector_store %arg7[%c0_6, %c0_7], %7 {strides = array<i32>} : memref<32x128xf32, #tpu.memory_space<vmem>>, vector<32x128xf32>,
    %c0_i32_8 = arith.constant 0 : i32
    %9 = arith.cmpi eq, %arg2, %c0_i32_8 : i32
    %10 = arith.extui %9 : i1 to i32
    %c0_i32_9 = arith.constant 0 : i32
    %11 = arith.cmpi ne, %10, %c0_i32_9 : i32
    scf.if %11 {
      %c0_10 = arith.constant 0 : index
      %c0_11 = arith.constant 0 : index
      %12 = vector.load %arg7[%c0_10, %c0_11] : memref<32x128xf32, #tpu.memory_space<vmem>>, vector<32x128xf32>
      %c0_12 = arith.constant 0 : index
      %c0_13 = arith.constant 0 : index
      %13 = vector.load %arg5[%c0_12, %c0_13] : memref<1x128xf32, #tpu.memory_space<vmem>>, vector<1x128xf32>
      %14 = vector.broadcast %13 : vector<1x128xf32> to vector<32x128xf32>
      %15 = arith.addf %12, %14 : vector<32x128xf32>
      %cst_14 = arith.constant 0.000000e+00 : f32
      %16 = vector.broadcast %cst_14 : f32 to vector<32x128xf32>
      %17 = arith.maximumf %15, %16 : vector<32x128xf32>
      %c0_15 = arith.constant 0 : index
      %c0_16 = arith.constant 0 : index
      %18 = vector.load %arg6[%c0_15, %c0_16] : memref<32x128xf32, #tpu.memory_space<vmem>>, vector<32x128xf32>
      tpu.vector_store %arg6[%c0_15, %c0_16], %17 {strides = array<i32>} : memref<32x128xf32, #tpu.memory_space<vmem>>, vector<32x128xf32>,
    } else {
    }
    return
  }
  func.func @transform_0(%arg0: i32, %arg1: i32, %arg2: i32) -> (i32, i32) {
    %c0_i32 = arith.constant 0 : i32
    return %arg0, %arg2 : i32, i32
  }
  func.func @transform_1(%arg0: i32, %arg1: i32, %arg2: i32) -> (i32, i32) {
    %c0_i32 = arith.constant 0 : i32
    return %arg2, %arg1 : i32, i32
  }
  func.func @transform_2(%arg0: i32, %arg1: i32, %arg2: i32) -> (i32, i32) {
    %c0_i32 = arith.constant 0 : i32
    %c0_i32_0 = arith.constant 0 : i32
    return %c0_i32, %arg1 : i32, i32
  }
  func.func @transform_3(%arg0: i32, %arg1: i32, %arg2: i32) -> (i32, i32) {
    %c0_i32 = arith.constant 0 : i32
    return %arg0, %arg1 : i32, i32
  }
}

module attributes {stable_mosaic.version = 11 : i64} {
  func.func @_mm_bias_act_kernel(%arg0: i32, %arg1: i32, %arg2: i32, %arg3: memref<16x128xbf16, #tpu.memory_space<vmem>>, %arg4: memref<128x128xbf16, #tpu.memory_space<vmem>>, %arg5: memref<1x128xf32, #tpu.memory_space<vmem>>, %arg6: memref<16x128xf32, #tpu.memory_space<vmem>>, %arg7: memref<16x128xf32, #tpu.memory_space<vmem>>) attributes {dimension_semantics = [#tpu.dimension_semantics<parallel>, #tpu.dimension_semantics<parallel>, #tpu.dimension_semantics<arbitrary>], iteration_bounds = array<i64: 1, 1, 1>, scalar_prefetch = 0 : i64, scratch_operands = 1 : i64, tpu.core_type = #tpu.core_type<tc>, window_params = [{transform_indices = @transform_0, window_bounds = array<i64: 16, 128>}, {transform_indices = @transform_1, window_bounds = array<i64: 128, 128>}, {transform_indices = @transform_2, window_bounds = array<i64: 1, 128>}, {transform_indices = @transform_3, window_bounds = array<i64: 16, 128>}]} {
    %c0_i32 = arith.constant 0 : i32
    %0 = arith.cmpi eq, %arg2, %c0_i32 : i32
    %1 = arith.extui %0 : i1 to i32
    %c0_i32_0 = arith.constant 0 : i32
    %2 = arith.cmpi ne, %1, %c0_i32_0 : i32
    scf.if %2 {
      %cst_10 = arith.constant 0.000000e+00 : f32
      %12 = vector.broadcast %cst_10 : f32 to vector<16x128xf32>
      %c0_11 = arith.constant 0 : index
      %c0_12 = arith.constant 0 : index
      %13 = vector.load %arg7[%c0_11, %c0_12] : memref<16x128xf32, #tpu.memory_space<vmem>>, vector<16x128xf32>
      tpu.vector_store %arg7[%c0_11, %c0_12], %12 {strides = array<i32>} : memref<16x128xf32, #tpu.memory_space<vmem>>, vector<16x128xf32>,
    } else {
    }
    %c0 = arith.constant 0 : index
    %c0_1 = arith.constant 0 : index
    %3 = vector.load %arg7[%c0, %c0_1] : memref<16x128xf32, #tpu.memory_space<vmem>>, vector<16x128xf32>
    %c0_2 = arith.constant 0 : index
    %c0_3 = arith.constant 0 : index
    %4 = vector.load %arg3[%c0_2, %c0_3] : memref<16x128xbf16, #tpu.memory_space<vmem>>, vector<16x128xbf16>
    %c0_4 = arith.constant 0 : index
    %c0_5 = arith.constant 0 : index
    %5 = vector.load %arg4[%c0_4, %c0_5] : memref<128x128xbf16, #tpu.memory_space<vmem>>, vector<128x128xbf16>
    %cst = arith.constant dense<0.000000e+00> : vector<16x128xf32>
    %6 = tpu.matmul %4, %5, %cst {dimension_numbers = #tpu.dot_dimension_numbers<[1], [0], [0], [1], [0, 0, 1, 1], [], []>} : vector<16x128xbf16>, vector<128x128xbf16>, vector<16x128xf32> -> vector<16x128xf32>
    %7 = arith.addf %3, %6 : vector<16x128xf32>
    %c0_6 = arith.constant 0 : index
    %c0_7 = arith.constant 0 : index
    %8 = vector.load %arg7[%c0_6, %c0_7] : memref<16x128xf32, #tpu.memory_space<vmem>>, vector<16x128xf32>
    tpu.vector_store %arg7[%c0_6, %c0_7], %7 {strides = array<i32>} : memref<16x128xf32, #tpu.memory_space<vmem>>, vector<16x128xf32>,
    %c0_i32_8 = arith.constant 0 : i32
    %9 = arith.cmpi eq, %arg2, %c0_i32_8 : i32
    %10 = arith.extui %9 : i1 to i32
    %c0_i32_9 = arith.constant 0 : i32
    %11 = arith.cmpi ne, %10, %c0_i32_9 : i32
    scf.if %11 {
      %c0_10 = arith.constant 0 : index
      %c0_11 = arith.constant 0 : index
      %12 = vector.load %arg7[%c0_10, %c0_11] : memref<16x128xf32, #tpu.memory_space<vmem>>, vector<16x128xf32>
      %c0_12 = arith.constant 0 : index
      %c0_13 = arith.constant 0 : index
      %13 = vector.load %arg5[%c0_12, %c0_13] : memref<1x128xf32, #tpu.memory_space<vmem>>, vector<1x128xf32>
      %14 = vector.broadcast %13 : vector<1x128xf32> to vector<16x128xf32>
      %15 = arith.addf %12, %14 : vector<16x128xf32>
      %cst_14 = arith.constant 0.000000e+00 : f32
      %16 = vector.broadcast %cst_14 : f32 to vector<16x128xf32>
      %17 = arith.maximumf %15, %16 : vector<16x128xf32>
      %c0_15 = arith.constant 0 : index
      %c0_16 = arith.constant 0 : index
      %18 = vector.load %arg6[%c0_15, %c0_16] : memref<16x128xf32, #tpu.memory_space<vmem>>, vector<16x128xf32>
      tpu.vector_store %arg6[%c0_15, %c0_16], %17 {strides = array<i32>} : memref<16x128xf32, #tpu.memory_space<vmem>>, vector<16x128xf32>,
    } else {
    }
    return
  }
  func.func @transform_0(%arg0: i32, %arg1: i32, %arg2: i32) -> (i32, i32) {
    %c0_i32 = arith.constant 0 : i32
    return %arg0, %arg2 : i32, i32
  }
  func.func @transform_1(%arg0: i32, %arg1: i32, %arg2: i32) -> (i32, i32) {
    %c0_i32 = arith.constant 0 : i32
    return %arg2, %arg1 : i32, i32
  }
  func.func @transform_2(%arg0: i32, %arg1: i32, %arg2: i32) -> (i32, i32) {
    %c0_i32 = arith.constant 0 : i32
    %c0_i32_0 = arith.constant 0 : i32
    return %c0_i32, %arg1 : i32, i32
  }
  func.func @transform_3(%arg0: i32, %arg1: i32, %arg2: i32) -> (i32, i32) {
    %c0_i32 = arith.constant 0 : i32
    return %arg0, %arg1 : i32, i32
  }
}

module attributes {stable_mosaic.version = 11 : i64} {
  func.func @_mm_bias_act_kernel(%arg0: i32, %arg1: i32, %arg2: i32, %arg3: memref<16x256xbf16, #tpu.memory_space<vmem>>, %arg4: memref<256x128xbf16, #tpu.memory_space<vmem>>, %arg5: memref<1x128xf32, #tpu.memory_space<vmem>>, %arg6: memref<16x128xf32, #tpu.memory_space<vmem>>, %arg7: memref<16x128xf32, #tpu.memory_space<vmem>>) attributes {dimension_semantics = [#tpu.dimension_semantics<parallel>, #tpu.dimension_semantics<parallel>, #tpu.dimension_semantics<arbitrary>], iteration_bounds = array<i64: 1, 1, 1>, scalar_prefetch = 0 : i64, scratch_operands = 1 : i64, tpu.core_type = #tpu.core_type<tc>, window_params = [{transform_indices = @transform_0, window_bounds = array<i64: 16, 256>}, {transform_indices = @transform_1, window_bounds = array<i64: 256, 128>}, {transform_indices = @transform_2, window_bounds = array<i64: 1, 128>}, {transform_indices = @transform_3, window_bounds = array<i64: 16, 128>}]} {
    %c0_i32 = arith.constant 0 : i32
    %0 = arith.cmpi eq, %arg2, %c0_i32 : i32
    %1 = arith.extui %0 : i1 to i32
    %c0_i32_0 = arith.constant 0 : i32
    %2 = arith.cmpi ne, %1, %c0_i32_0 : i32
    scf.if %2 {
      %cst_10 = arith.constant 0.000000e+00 : f32
      %12 = vector.broadcast %cst_10 : f32 to vector<16x128xf32>
      %c0_11 = arith.constant 0 : index
      %c0_12 = arith.constant 0 : index
      %13 = vector.load %arg7[%c0_11, %c0_12] : memref<16x128xf32, #tpu.memory_space<vmem>>, vector<16x128xf32>
      tpu.vector_store %arg7[%c0_11, %c0_12], %12 {strides = array<i32>} : memref<16x128xf32, #tpu.memory_space<vmem>>, vector<16x128xf32>,
    } else {
    }
    %c0 = arith.constant 0 : index
    %c0_1 = arith.constant 0 : index
    %3 = vector.load %arg7[%c0, %c0_1] : memref<16x128xf32, #tpu.memory_space<vmem>>, vector<16x128xf32>
    %c0_2 = arith.constant 0 : index
    %c0_3 = arith.constant 0 : index
    %4 = vector.load %arg3[%c0_2, %c0_3] : memref<16x256xbf16, #tpu.memory_space<vmem>>, vector<16x256xbf16>
    %c0_4 = arith.constant 0 : index
    %c0_5 = arith.constant 0 : index
    %5 = vector.load %arg4[%c0_4, %c0_5] : memref<256x128xbf16, #tpu.memory_space<vmem>>, vector<256x128xbf16>
    %cst = arith.constant dense<0.000000e+00> : vector<16x128xf32>
    %6 = tpu.matmul %4, %5, %cst {dimension_numbers = #tpu.dot_dimension_numbers<[1], [0], [0], [1], [0, 0, 1, 1], [], []>} : vector<16x256xbf16>, vector<256x128xbf16>, vector<16x128xf32> -> vector<16x128xf32>
    %7 = arith.addf %3, %6 : vector<16x128xf32>
    %c0_6 = arith.constant 0 : index
    %c0_7 = arith.constant 0 : index
    %8 = vector.load %arg7[%c0_6, %c0_7] : memref<16x128xf32, #tpu.memory_space<vmem>>, vector<16x128xf32>
    tpu.vector_store %arg7[%c0_6, %c0_7], %7 {strides = array<i32>} : memref<16x128xf32, #tpu.memory_space<vmem>>, vector<16x128xf32>,
    %c0_i32_8 = arith.constant 0 : i32
    %9 = arith.cmpi eq, %arg2, %c0_i32_8 : i32
    %10 = arith.extui %9 : i1 to i32
    %c0_i32_9 = arith.constant 0 : i32
    %11 = arith.cmpi ne, %10, %c0_i32_9 : i32
    scf.if %11 {
      %c0_10 = arith.constant 0 : index
      %c0_11 = arith.constant 0 : index
      %12 = vector.load %arg7[%c0_10, %c0_11] : memref<16x128xf32, #tpu.memory_space<vmem>>, vector<16x128xf32>
      %c0_12 = arith.constant 0 : index
      %c0_13 = arith.constant 0 : index
      %13 = vector.load %arg5[%c0_12, %c0_13] : memref<1x128xf32, #tpu.memory_space<vmem>>, vector<1x128xf32>
      %14 = vector.broadcast %13 : vector<1x128xf32> to vector<16x128xf32>
      %15 = arith.addf %12, %14 : vector<16x128xf32>
      %c0_14 = arith.constant 0 : index
      %c0_15 = arith.constant 0 : index
      %16 = vector.load %arg6[%c0_14, %c0_15] : memref<16x128xf32, #tpu.memory_space<vmem>>, vector<16x128xf32>
      tpu.vector_store %arg6[%c0_14, %c0_15], %15 {strides = array<i32>} : memref<16x128xf32, #tpu.memory_space<vmem>>, vector<16x128xf32>,
    } else {
    }
    return
  }
  func.func @transform_0(%arg0: i32, %arg1: i32, %arg2: i32) -> (i32, i32) {
    %c0_i32 = arith.constant 0 : i32
    return %arg0, %arg2 : i32, i32
  }
  func.func @transform_1(%arg0: i32, %arg1: i32, %arg2: i32) -> (i32, i32) {
    %c0_i32 = arith.constant 0 : i32
    return %arg2, %arg1 : i32, i32
  }
  func.func @transform_2(%arg0: i32, %arg1: i32, %arg2: i32) -> (i32, i32) {
    %c0_i32 = arith.constant 0 : i32
    %c0_i32_0 = arith.constant 0 : i32
    return %c0_i32, %arg1 : i32, i32
  }
  func.func @transform_3(%arg0: i32, %arg1: i32, %arg2: i32) -> (i32, i32) {
    %c0_i32 = arith.constant 0 : i32
    return %arg0, %arg1 : i32, i32
  }
}

module attributes {stable_mosaic.version = 11 : i64} {
  func.func @_mm_bias_act_kernel(%arg0: i32, %arg1: i32, %arg2: i32, %arg3: memref<32x384xbf16, #tpu.memory_space<vmem>>, %arg4: memref<384x128xbf16, #tpu.memory_space<vmem>>, %arg5: memref<1x128xf32, #tpu.memory_space<vmem>>, %arg6: memref<32x128xf32, #tpu.memory_space<vmem>>, %arg7: memref<32x128xf32, #tpu.memory_space<vmem>>) attributes {dimension_semantics = [#tpu.dimension_semantics<parallel>, #tpu.dimension_semantics<parallel>, #tpu.dimension_semantics<arbitrary>], iteration_bounds = array<i64: 1, 1, 1>, scalar_prefetch = 0 : i64, scratch_operands = 1 : i64, tpu.core_type = #tpu.core_type<tc>, window_params = [{transform_indices = @transform_0, window_bounds = array<i64: 32, 384>}, {transform_indices = @transform_1, window_bounds = array<i64: 384, 128>}, {transform_indices = @transform_2, window_bounds = array<i64: 1, 128>}, {transform_indices = @transform_3, window_bounds = array<i64: 32, 128>}]} {
    %c0_i32 = arith.constant 0 : i32
    %0 = arith.cmpi eq, %arg2, %c0_i32 : i32
    %1 = arith.extui %0 : i1 to i32
    %c0_i32_0 = arith.constant 0 : i32
    %2 = arith.cmpi ne, %1, %c0_i32_0 : i32
    scf.if %2 {
      %cst_10 = arith.constant 0.000000e+00 : f32
      %12 = vector.broadcast %cst_10 : f32 to vector<32x128xf32>
      %c0_11 = arith.constant 0 : index
      %c0_12 = arith.constant 0 : index
      %13 = vector.load %arg7[%c0_11, %c0_12] : memref<32x128xf32, #tpu.memory_space<vmem>>, vector<32x128xf32>
      tpu.vector_store %arg7[%c0_11, %c0_12], %12 {strides = array<i32>} : memref<32x128xf32, #tpu.memory_space<vmem>>, vector<32x128xf32>,
    } else {
    }
    %c0 = arith.constant 0 : index
    %c0_1 = arith.constant 0 : index
    %3 = vector.load %arg7[%c0, %c0_1] : memref<32x128xf32, #tpu.memory_space<vmem>>, vector<32x128xf32>
    %c0_2 = arith.constant 0 : index
    %c0_3 = arith.constant 0 : index
    %4 = vector.load %arg3[%c0_2, %c0_3] : memref<32x384xbf16, #tpu.memory_space<vmem>>, vector<32x384xbf16>
    %c0_4 = arith.constant 0 : index
    %c0_5 = arith.constant 0 : index
    %5 = vector.load %arg4[%c0_4, %c0_5] : memref<384x128xbf16, #tpu.memory_space<vmem>>, vector<384x128xbf16>
    %cst = arith.constant dense<0.000000e+00> : vector<32x128xf32>
    %6 = tpu.matmul %4, %5, %cst {dimension_numbers = #tpu.dot_dimension_numbers<[1], [0], [0], [1], [0, 0, 1, 1], [], []>} : vector<32x384xbf16>, vector<384x128xbf16>, vector<32x128xf32> -> vector<32x128xf32>
    %7 = arith.addf %3, %6 : vector<32x128xf32>
    %c0_6 = arith.constant 0 : index
    %c0_7 = arith.constant 0 : index
    %8 = vector.load %arg7[%c0_6, %c0_7] : memref<32x128xf32, #tpu.memory_space<vmem>>, vector<32x128xf32>
    tpu.vector_store %arg7[%c0_6, %c0_7], %7 {strides = array<i32>} : memref<32x128xf32, #tpu.memory_space<vmem>>, vector<32x128xf32>,
    %c0_i32_8 = arith.constant 0 : i32
    %9 = arith.cmpi eq, %arg2, %c0_i32_8 : i32
    %10 = arith.extui %9 : i1 to i32
    %c0_i32_9 = arith.constant 0 : i32
    %11 = arith.cmpi ne, %10, %c0_i32_9 : i32
    scf.if %11 {
      %c0_10 = arith.constant 0 : index
      %c0_11 = arith.constant 0 : index
      %12 = vector.load %arg7[%c0_10, %c0_11] : memref<32x128xf32, #tpu.memory_space<vmem>>, vector<32x128xf32>
      %c0_12 = arith.constant 0 : index
      %c0_13 = arith.constant 0 : index
      %13 = vector.load %arg5[%c0_12, %c0_13] : memref<1x128xf32, #tpu.memory_space<vmem>>, vector<1x128xf32>
      %14 = vector.broadcast %13 : vector<1x128xf32> to vector<32x128xf32>
      %15 = arith.addf %12, %14 : vector<32x128xf32>
      %cst_14 = arith.constant 0.000000e+00 : f32
      %16 = vector.broadcast %cst_14 : f32 to vector<32x128xf32>
      %17 = arith.maximumf %15, %16 : vector<32x128xf32>
      %c0_15 = arith.constant 0 : index
      %c0_16 = arith.constant 0 : index
      %18 = vector.load %arg6[%c0_15, %c0_16] : memref<32x128xf32, #tpu.memory_space<vmem>>, vector<32x128xf32>
      tpu.vector_store %arg6[%c0_15, %c0_16], %17 {strides = array<i32>} : memref<32x128xf32, #tpu.memory_space<vmem>>, vector<32x128xf32>,
    } else {
    }
    return
  }
  func.func @transform_0(%arg0: i32, %arg1: i32, %arg2: i32) -> (i32, i32) {
    %c0_i32 = arith.constant 0 : i32
    return %arg0, %arg2 : i32, i32
  }
  func.func @transform_1(%arg0: i32, %arg1: i32, %arg2: i32) -> (i32, i32) {
    %c0_i32 = arith.constant 0 : i32
    return %arg2, %arg1 : i32, i32
  }
  func.func @transform_2(%arg0: i32, %arg1: i32, %arg2: i32) -> (i32, i32) {
    %c0_i32 = arith.constant 0 : i32
    %c0_i32_0 = arith.constant 0 : i32
    return %c0_i32, %arg1 : i32, i32
  }
  func.func @transform_3(%arg0: i32, %arg1: i32, %arg2: i32) -> (i32, i32) {
    %c0_i32 = arith.constant 0 : i32
    return %arg0, %arg1 : i32, i32
  }
}

module attributes {stable_mosaic.version = 11 : i64} {
  func.func @_mm_bias_act_kernel(%arg0: i32, %arg1: i32, %arg2: i32, %arg3: memref<32x384xbf16, #tpu.memory_space<vmem>>, %arg4: memref<384x128xbf16, #tpu.memory_space<vmem>>, %arg5: memref<1x128xf32, #tpu.memory_space<vmem>>, %arg6: memref<32x128xf32, #tpu.memory_space<vmem>>, %arg7: memref<32x128xf32, #tpu.memory_space<vmem>>) attributes {dimension_semantics = [#tpu.dimension_semantics<parallel>, #tpu.dimension_semantics<parallel>, #tpu.dimension_semantics<arbitrary>], iteration_bounds = array<i64: 1, 1, 1>, scalar_prefetch = 0 : i64, scratch_operands = 1 : i64, tpu.core_type = #tpu.core_type<tc>, window_params = [{transform_indices = @transform_0, window_bounds = array<i64: 32, 384>}, {transform_indices = @transform_1, window_bounds = array<i64: 384, 128>}, {transform_indices = @transform_2, window_bounds = array<i64: 1, 128>}, {transform_indices = @transform_3, window_bounds = array<i64: 32, 128>}]} {
    %c0_i32 = arith.constant 0 : i32
    %0 = arith.cmpi eq, %arg2, %c0_i32 : i32
    %1 = arith.extui %0 : i1 to i32
    %c0_i32_0 = arith.constant 0 : i32
    %2 = arith.cmpi ne, %1, %c0_i32_0 : i32
    scf.if %2 {
      %cst_10 = arith.constant 0.000000e+00 : f32
      %12 = vector.broadcast %cst_10 : f32 to vector<32x128xf32>
      %c0_11 = arith.constant 0 : index
      %c0_12 = arith.constant 0 : index
      %13 = vector.load %arg7[%c0_11, %c0_12] : memref<32x128xf32, #tpu.memory_space<vmem>>, vector<32x128xf32>
      tpu.vector_store %arg7[%c0_11, %c0_12], %12 {strides = array<i32>} : memref<32x128xf32, #tpu.memory_space<vmem>>, vector<32x128xf32>,
    } else {
    }
    %c0 = arith.constant 0 : index
    %c0_1 = arith.constant 0 : index
    %3 = vector.load %arg7[%c0, %c0_1] : memref<32x128xf32, #tpu.memory_space<vmem>>, vector<32x128xf32>
    %c0_2 = arith.constant 0 : index
    %c0_3 = arith.constant 0 : index
    %4 = vector.load %arg3[%c0_2, %c0_3] : memref<32x384xbf16, #tpu.memory_space<vmem>>, vector<32x384xbf16>
    %c0_4 = arith.constant 0 : index
    %c0_5 = arith.constant 0 : index
    %5 = vector.load %arg4[%c0_4, %c0_5] : memref<384x128xbf16, #tpu.memory_space<vmem>>, vector<384x128xbf16>
    %cst = arith.constant dense<0.000000e+00> : vector<32x128xf32>
    %6 = tpu.matmul %4, %5, %cst {dimension_numbers = #tpu.dot_dimension_numbers<[1], [0], [0], [1], [0, 0, 1, 1], [], []>} : vector<32x384xbf16>, vector<384x128xbf16>, vector<32x128xf32> -> vector<32x128xf32>
    %7 = arith.addf %3, %6 : vector<32x128xf32>
    %c0_6 = arith.constant 0 : index
    %c0_7 = arith.constant 0 : index
    %8 = vector.load %arg7[%c0_6, %c0_7] : memref<32x128xf32, #tpu.memory_space<vmem>>, vector<32x128xf32>
    tpu.vector_store %arg7[%c0_6, %c0_7], %7 {strides = array<i32>} : memref<32x128xf32, #tpu.memory_space<vmem>>, vector<32x128xf32>,
    %c0_i32_8 = arith.constant 0 : i32
    %9 = arith.cmpi eq, %arg2, %c0_i32_8 : i32
    %10 = arith.extui %9 : i1 to i32
    %c0_i32_9 = arith.constant 0 : i32
    %11 = arith.cmpi ne, %10, %c0_i32_9 : i32
    scf.if %11 {
      %c0_10 = arith.constant 0 : index
      %c0_11 = arith.constant 0 : index
      %12 = vector.load %arg7[%c0_10, %c0_11] : memref<32x128xf32, #tpu.memory_space<vmem>>, vector<32x128xf32>
      %c0_12 = arith.constant 0 : index
      %c0_13 = arith.constant 0 : index
      %13 = vector.load %arg5[%c0_12, %c0_13] : memref<1x128xf32, #tpu.memory_space<vmem>>, vector<1x128xf32>
      %14 = vector.broadcast %13 : vector<1x128xf32> to vector<32x128xf32>
      %15 = arith.addf %12, %14 : vector<32x128xf32>
      %16 = arith.negf %15 : vector<32x128xf32>
      %17 = math.exp %16 : vector<32x128xf32>
      %cst_14 = arith.constant 1.000000e+00 : f32
      %18 = vector.broadcast %cst_14 : f32 to vector<32x128xf32>
      %19 = arith.addf %18, %17 : vector<32x128xf32>
      %20 = arith.divf %18, %19 : vector<32x128xf32>
      %c0_15 = arith.constant 0 : index
      %c0_16 = arith.constant 0 : index
      %21 = vector.load %arg6[%c0_15, %c0_16] : memref<32x128xf32, #tpu.memory_space<vmem>>, vector<32x128xf32>
      tpu.vector_store %arg6[%c0_15, %c0_16], %20 {strides = array<i32>} : memref<32x128xf32, #tpu.memory_space<vmem>>, vector<32x128xf32>,
    } else {
    }
    return
  }
  func.func @transform_0(%arg0: i32, %arg1: i32, %arg2: i32) -> (i32, i32) {
    %c0_i32 = arith.constant 0 : i32
    return %arg0, %arg2 : i32, i32
  }
  func.func @transform_1(%arg0: i32, %arg1: i32, %arg2: i32) -> (i32, i32) {
    %c0_i32 = arith.constant 0 : i32
    return %arg2, %arg1 : i32, i32
  }
  func.func @transform_2(%arg0: i32, %arg1: i32, %arg2: i32) -> (i32, i32) {
    %c0_i32 = arith.constant 0 : i32
    %c0_i32_0 = arith.constant 0 : i32
    return %c0_i32, %arg1 : i32, i32
  }
  func.func @transform_3(%arg0: i32, %arg1: i32, %arg2: i32) -> (i32, i32) {
    %c0_i32 = arith.constant 0 : i32
    return %arg0, %arg1 : i32, i32
  }
}

module attributes {stable_mosaic.version = 11 : i64} {
  func.func @_mul_kernel(%arg0: i32, %arg1: memref<8x128xf32, #tpu.memory_space<vmem>>, %arg2: memref<8x128xf32, #tpu.memory_space<vmem>>, %arg3: memref<8x128xf32, #tpu.memory_space<vmem>>) attributes {dimension_semantics = [#tpu.dimension_semantics<parallel>], iteration_bounds = array<i64: 1>, scalar_prefetch = 0 : i64, scratch_operands = 0 : i64, tpu.core_type = #tpu.core_type<tc>, window_params = [{transform_indices = @transform_0, window_bounds = array<i64: 8, 128>}, {transform_indices = @transform_1, window_bounds = array<i64: 8, 128>}, {transform_indices = @transform_2, window_bounds = array<i64: 8, 128>}]} {
    %c0 = arith.constant 0 : index
    %c0_0 = arith.constant 0 : index
    %0 = vector.load %arg1[%c0, %c0_0] : memref<8x128xf32, #tpu.memory_space<vmem>>, vector<8x128xf32>
    %c0_1 = arith.constant 0 : index
    %c0_2 = arith.constant 0 : index
    %1 = vector.load %arg2[%c0_1, %c0_2] : memref<8x128xf32, #tpu.memory_space<vmem>>, vector<8x128xf32>
    %2 = arith.mulf %0, %1 : vector<8x128xf32>
    %c0_3 = arith.constant 0 : index
    %c0_4 = arith.constant 0 : index
    %3 = vector.load %arg3[%c0_3, %c0_4] : memref<8x128xf32, #tpu.memory_space<vmem>>, vector<8x128xf32>
    tpu.vector_store %arg3[%c0_3, %c0_4], %2 {strides = array<i32>} : memref<8x128xf32, #tpu.memory_space<vmem>>, vector<8x128xf32>,
    return
  }
  func.func @transform_0(%arg0: i32) -> (i32, i32) {
    %c0_i32 = arith.constant 0 : i32
    %c0_i32_0 = arith.constant 0 : i32
    return %arg0, %c0_i32 : i32, i32
  }
  func.func @transform_1(%arg0: i32) -> (i32, i32) {
    %c0_i32 = arith.constant 0 : i32
    %c0_i32_0 = arith.constant 0 : i32
    return %arg0, %c0_i32 : i32, i32
  }
  func.func @transform_2(%arg0: i32) -> (i32, i32) {
    %c0_i32 = arith.constant 0 : i32
    %c0_i32_0 = arith.constant 0 : i32
    return %arg0, %c0_i32 : i32, i32
  }
}

module attributes {stable_mosaic.version = 11 : i64} {
  func.func @_mm_bias_act_kernel(%arg0: i32, %arg1: i32, %arg2: i32, %arg3: memref<32x384xbf16, #tpu.memory_space<vmem>>, %arg4: memref<384x128xbf16, #tpu.memory_space<vmem>>, %arg5: memref<1x128xf32, #tpu.memory_space<vmem>>, %arg6: memref<32x128xf32, #tpu.memory_space<vmem>>, %arg7: memref<32x128xf32, #tpu.memory_space<vmem>>) attributes {dimension_semantics = [#tpu.dimension_semantics<parallel>, #tpu.dimension_semantics<parallel>, #tpu.dimension_semantics<arbitrary>], iteration_bounds = array<i64: 1, 1, 1>, scalar_prefetch = 0 : i64, scratch_operands = 1 : i64, tpu.core_type = #tpu.core_type<tc>, window_params = [{transform_indices = @transform_0, window_bounds = array<i64: 32, 384>}, {transform_indices = @transform_1, window_bounds = array<i64: 384, 128>}, {transform_indices = @transform_2, window_bounds = array<i64: 1, 128>}, {transform_indices = @transform_3, window_bounds = array<i64: 32, 128>}]} {
    %c0_i32 = arith.constant 0 : i32
    %0 = arith.cmpi eq, %arg2, %c0_i32 : i32
    %1 = arith.extui %0 : i1 to i32
    %c0_i32_0 = arith.constant 0 : i32
    %2 = arith.cmpi ne, %1, %c0_i32_0 : i32
    scf.if %2 {
      %cst_10 = arith.constant 0.000000e+00 : f32
      %12 = vector.broadcast %cst_10 : f32 to vector<32x128xf32>
      %c0_11 = arith.constant 0 : index
      %c0_12 = arith.constant 0 : index
      %13 = vector.load %arg7[%c0_11, %c0_12] : memref<32x128xf32, #tpu.memory_space<vmem>>, vector<32x128xf32>
      tpu.vector_store %arg7[%c0_11, %c0_12], %12 {strides = array<i32>} : memref<32x128xf32, #tpu.memory_space<vmem>>, vector<32x128xf32>,
    } else {
    }
    %c0 = arith.constant 0 : index
    %c0_1 = arith.constant 0 : index
    %3 = vector.load %arg7[%c0, %c0_1] : memref<32x128xf32, #tpu.memory_space<vmem>>, vector<32x128xf32>
    %c0_2 = arith.constant 0 : index
    %c0_3 = arith.constant 0 : index
    %4 = vector.load %arg3[%c0_2, %c0_3] : memref<32x384xbf16, #tpu.memory_space<vmem>>, vector<32x384xbf16>
    %c0_4 = arith.constant 0 : index
    %c0_5 = arith.constant 0 : index
    %5 = vector.load %arg4[%c0_4, %c0_5] : memref<384x128xbf16, #tpu.memory_space<vmem>>, vector<384x128xbf16>
    %cst = arith.constant dense<0.000000e+00> : vector<32x128xf32>
    %6 = tpu.matmul %4, %5, %cst {dimension_numbers = #tpu.dot_dimension_numbers<[1], [0], [0], [1], [0, 0, 1, 1], [], []>} : vector<32x384xbf16>, vector<384x128xbf16>, vector<32x128xf32> -> vector<32x128xf32>
    %7 = arith.addf %3, %6 : vector<32x128xf32>
    %c0_6 = arith.constant 0 : index
    %c0_7 = arith.constant 0 : index
    %8 = vector.load %arg7[%c0_6, %c0_7] : memref<32x128xf32, #tpu.memory_space<vmem>>, vector<32x128xf32>
    tpu.vector_store %arg7[%c0_6, %c0_7], %7 {strides = array<i32>} : memref<32x128xf32, #tpu.memory_space<vmem>>, vector<32x128xf32>,
    %c0_i32_8 = arith.constant 0 : i32
    %9 = arith.cmpi eq, %arg2, %c0_i32_8 : i32
    %10 = arith.extui %9 : i1 to i32
    %c0_i32_9 = arith.constant 0 : i32
    %11 = arith.cmpi ne, %10, %c0_i32_9 : i32
    scf.if %11 {
      %c0_10 = arith.constant 0 : index
      %c0_11 = arith.constant 0 : index
      %12 = vector.load %arg7[%c0_10, %c0_11] : memref<32x128xf32, #tpu.memory_space<vmem>>, vector<32x128xf32>
      %c0_12 = arith.constant 0 : index
      %c0_13 = arith.constant 0 : index
      %13 = vector.load %arg5[%c0_12, %c0_13] : memref<1x128xf32, #tpu.memory_space<vmem>>, vector<1x128xf32>
      %14 = vector.broadcast %13 : vector<1x128xf32> to vector<32x128xf32>
      %15 = arith.addf %12, %14 : vector<32x128xf32>
      %16 = math.tanh %15 : vector<32x128xf32>
      %c0_14 = arith.constant 0 : index
      %c0_15 = arith.constant 0 : index
      %17 = vector.load %arg6[%c0_14, %c0_15] : memref<32x128xf32, #tpu.memory_space<vmem>>, vector<32x128xf32>
      tpu.vector_store %arg6[%c0_14, %c0_15], %16 {strides = array<i32>} : memref<32x128xf32, #tpu.memory_space<vmem>>, vector<32x128xf32>,
    } else {
    }
    return
  }
  func.func @transform_0(%arg0: i32, %arg1: i32, %arg2: i32) -> (i32, i32) {
    %c0_i32 = arith.constant 0 : i32
    return %arg0, %arg2 : i32, i32
  }
  func.func @transform_1(%arg0: i32, %arg1: i32, %arg2: i32) -> (i32, i32) {
    %c0_i32 = arith.constant 0 : i32
    return %arg2, %arg1 : i32, i32
  }
  func.func @transform_2(%arg0: i32, %arg1: i32, %arg2: i32) -> (i32, i32) {
    %c0_i32 = arith.constant 0 : i32
    %c0_i32_0 = arith.constant 0 : i32
    return %c0_i32, %arg1 : i32, i32
  }
  func.func @transform_3(%arg0: i32, %arg1: i32, %arg2: i32) -> (i32, i32) {
    %c0_i32 = arith.constant 0 : i32
    return %arg0, %arg1 : i32, i32
  }
}

module attributes {stable_mosaic.version = 11 : i64} {
  func.func @_gru_combine_kernel(%arg0: i32, %arg1: memref<8x128xf32, #tpu.memory_space<vmem>>, %arg2: memref<8x128xf32, #tpu.memory_space<vmem>>, %arg3: memref<8x128xf32, #tpu.memory_space<vmem>>, %arg4: memref<8x128xf32, #tpu.memory_space<vmem>>) attributes {dimension_semantics = [#tpu.dimension_semantics<parallel>], iteration_bounds = array<i64: 1>, scalar_prefetch = 0 : i64, scratch_operands = 0 : i64, tpu.core_type = #tpu.core_type<tc>, window_params = [{transform_indices = @transform_0, window_bounds = array<i64: 8, 128>}, {transform_indices = @transform_1, window_bounds = array<i64: 8, 128>}, {transform_indices = @transform_2, window_bounds = array<i64: 8, 128>}, {transform_indices = @transform_3, window_bounds = array<i64: 8, 128>}]} {
    %c0 = arith.constant 0 : index
    %c0_0 = arith.constant 0 : index
    %0 = vector.load %arg1[%c0, %c0_0] : memref<8x128xf32, #tpu.memory_space<vmem>>, vector<8x128xf32>
    %cst = arith.constant 1.000000e+00 : f32
    %1 = vector.broadcast %cst : f32 to vector<8x128xf32>
    %2 = arith.subf %1, %0 : vector<8x128xf32>
    %c0_1 = arith.constant 0 : index
    %c0_2 = arith.constant 0 : index
    %3 = vector.load %arg3[%c0_1, %c0_2] : memref<8x128xf32, #tpu.memory_space<vmem>>, vector<8x128xf32>
    %4 = arith.mulf %2, %3 : vector<8x128xf32>
    %c0_3 = arith.constant 0 : index
    %c0_4 = arith.constant 0 : index
    %5 = vector.load %arg2[%c0_3, %c0_4] : memref<8x128xf32, #tpu.memory_space<vmem>>, vector<8x128xf32>
    %6 = arith.mulf %0, %5 : vector<8x128xf32>
    %7 = arith.addf %4, %6 : vector<8x128xf32>
    %c0_5 = arith.constant 0 : index
    %c0_6 = arith.constant 0 : index
    %8 = vector.load %arg4[%c0_5, %c0_6] : memref<8x128xf32, #tpu.memory_space<vmem>>, vector<8x128xf32>
    tpu.vector_store %arg4[%c0_5, %c0_6], %7 {strides = array<i32>} : memref<8x128xf32, #tpu.memory_space<vmem>>, vector<8x128xf32>,
    return
  }
  func.func @transform_0(%arg0: i32) -> (i32, i32) {
    %c0_i32 = arith.constant 0 : i32
    %c0_i32_0 = arith.constant 0 : i32
    return %arg0, %c0_i32 : i32, i32
  }
  func.func @transform_1(%arg0: i32) -> (i32, i32) {
    %c0_i32 = arith.constant 0 : i32
    %c0_i32_0 = arith.constant 0 : i32
    return %arg0, %c0_i32 : i32, i32
  }
  func.func @transform_2(%arg0: i32) -> (i32, i32) {
    %c0_i32 = arith.constant 0 : i32
    %c0_i32_0 = arith.constant 0 : i32
    return %arg0, %c0_i32 : i32, i32
  }
  func.func @transform_3(%arg0: i32) -> (i32, i32) {
    %c0_i32 = arith.constant 0 : i32
    %c0_i32_0 = arith.constant 0 : i32
    return %arg0, %c0_i32 : i32, i32
  }
}

module attributes {stable_mosaic.version = 11 : i64} {
  func.func @_mm_bias_act_kernel(%arg0: i32, %arg1: i32, %arg2: i32, %arg3: memref<128x256xbf16, #tpu.memory_space<vmem>>, %arg4: memref<256x128xbf16, #tpu.memory_space<vmem>>, %arg5: memref<1x128xf32, #tpu.memory_space<vmem>>, %arg6: memref<128x128xf32, #tpu.memory_space<vmem>>, %arg7: memref<128x128xf32, #tpu.memory_space<vmem>>) attributes {dimension_semantics = [#tpu.dimension_semantics<parallel>, #tpu.dimension_semantics<parallel>, #tpu.dimension_semantics<arbitrary>], iteration_bounds = array<i64: 1, 1, 1>, scalar_prefetch = 0 : i64, scratch_operands = 1 : i64, tpu.core_type = #tpu.core_type<tc>, window_params = [{transform_indices = @transform_0, window_bounds = array<i64: 128, 256>}, {transform_indices = @transform_1, window_bounds = array<i64: 256, 128>}, {transform_indices = @transform_2, window_bounds = array<i64: 1, 128>}, {transform_indices = @transform_3, window_bounds = array<i64: 128, 128>}]} {
    %c0_i32 = arith.constant 0 : i32
    %0 = arith.cmpi eq, %arg2, %c0_i32 : i32
    %1 = arith.extui %0 : i1 to i32
    %c0_i32_0 = arith.constant 0 : i32
    %2 = arith.cmpi ne, %1, %c0_i32_0 : i32
    scf.if %2 {
      %cst_10 = arith.constant 0.000000e+00 : f32
      %12 = vector.broadcast %cst_10 : f32 to vector<128x128xf32>
      %c0_11 = arith.constant 0 : index
      %c0_12 = arith.constant 0 : index
      %13 = vector.load %arg7[%c0_11, %c0_12] : memref<128x128xf32, #tpu.memory_space<vmem>>, vector<128x128xf32>
      tpu.vector_store %arg7[%c0_11, %c0_12], %12 {strides = array<i32>} : memref<128x128xf32, #tpu.memory_space<vmem>>, vector<128x128xf32>,
    } else {
    }
    %c0 = arith.constant 0 : index
    %c0_1 = arith.constant 0 : index
    %3 = vector.load %arg7[%c0, %c0_1] : memref<128x128xf32, #tpu.memory_space<vmem>>, vector<128x128xf32>
    %c0_2 = arith.constant 0 : index
    %c0_3 = arith.constant 0 : index
    %4 = vector.load %arg3[%c0_2, %c0_3] : memref<128x256xbf16, #tpu.memory_space<vmem>>, vector<128x256xbf16>
    %c0_4 = arith.constant 0 : index
    %c0_5 = arith.constant 0 : index
    %5 = vector.load %arg4[%c0_4, %c0_5] : memref<256x128xbf16, #tpu.memory_space<vmem>>, vector<256x128xbf16>
    %cst = arith.constant dense<0.000000e+00> : vector<128x128xf32>
    %6 = tpu.matmul %4, %5, %cst {dimension_numbers = #tpu.dot_dimension_numbers<[1], [0], [0], [1], [0, 0, 1, 1], [], []>} : vector<128x256xbf16>, vector<256x128xbf16>, vector<128x128xf32> -> vector<128x128xf32>
    %7 = arith.addf %3, %6 : vector<128x128xf32>
    %c0_6 = arith.constant 0 : index
    %c0_7 = arith.constant 0 : index
    %8 = vector.load %arg7[%c0_6, %c0_7] : memref<128x128xf32, #tpu.memory_space<vmem>>, vector<128x128xf32>
    tpu.vector_store %arg7[%c0_6, %c0_7], %7 {strides = array<i32>} : memref<128x128xf32, #tpu.memory_space<vmem>>, vector<128x128xf32>,
    %c0_i32_8 = arith.constant 0 : i32
    %9 = arith.cmpi eq, %arg2, %c0_i32_8 : i32
    %10 = arith.extui %9 : i1 to i32
    %c0_i32_9 = arith.constant 0 : i32
    %11 = arith.cmpi ne, %10, %c0_i32_9 : i32
    scf.if %11 {
      %c0_10 = arith.constant 0 : index
      %c0_11 = arith.constant 0 : index
      %12 = vector.load %arg7[%c0_10, %c0_11] : memref<128x128xf32, #tpu.memory_space<vmem>>, vector<128x128xf32>
      %c0_12 = arith.constant 0 : index
      %c0_13 = arith.constant 0 : index
      %13 = vector.load %arg5[%c0_12, %c0_13] : memref<1x128xf32, #tpu.memory_space<vmem>>, vector<1x128xf32>
      %14 = vector.broadcast %13 : vector<1x128xf32> to vector<128x128xf32>
      %15 = arith.addf %12, %14 : vector<128x128xf32>
      %16 = arith.negf %15 : vector<128x128xf32>
      %17 = math.exp %16 : vector<128x128xf32>
      %cst_14 = arith.constant 1.000000e+00 : f32
      %18 = vector.broadcast %cst_14 : f32 to vector<128x128xf32>
      %19 = arith.addf %18, %17 : vector<128x128xf32>
      %20 = arith.divf %18, %19 : vector<128x128xf32>
      %c0_15 = arith.constant 0 : index
      %c0_16 = arith.constant 0 : index
      %21 = vector.load %arg6[%c0_15, %c0_16] : memref<128x128xf32, #tpu.memory_space<vmem>>, vector<128x128xf32>
      tpu.vector_store %arg6[%c0_15, %c0_16], %20 {strides = array<i32>} : memref<128x128xf32, #tpu.memory_space<vmem>>, vector<128x128xf32>,
    } else {
    }
    return
  }
  func.func @transform_0(%arg0: i32, %arg1: i32, %arg2: i32) -> (i32, i32) {
    %c0_i32 = arith.constant 0 : i32
    return %arg0, %arg2 : i32, i32
  }
  func.func @transform_1(%arg0: i32, %arg1: i32, %arg2: i32) -> (i32, i32) {
    %c0_i32 = arith.constant 0 : i32
    return %arg2, %arg1 : i32, i32
  }
  func.func @transform_2(%arg0: i32, %arg1: i32, %arg2: i32) -> (i32, i32) {
    %c0_i32 = arith.constant 0 : i32
    %c0_i32_0 = arith.constant 0 : i32
    return %c0_i32, %arg1 : i32, i32
  }
  func.func @transform_3(%arg0: i32, %arg1: i32, %arg2: i32) -> (i32, i32) {
    %c0_i32 = arith.constant 0 : i32
    return %arg0, %arg1 : i32, i32
  }
}

module attributes {stable_mosaic.version = 11 : i64} {
  func.func @_mm_bias_act_kernel(%arg0: i32, %arg1: i32, %arg2: i32, %arg3: memref<128x256xbf16, #tpu.memory_space<vmem>>, %arg4: memref<256x128xbf16, #tpu.memory_space<vmem>>, %arg5: memref<1x128xf32, #tpu.memory_space<vmem>>, %arg6: memref<128x128xf32, #tpu.memory_space<vmem>>, %arg7: memref<128x128xf32, #tpu.memory_space<vmem>>) attributes {dimension_semantics = [#tpu.dimension_semantics<parallel>, #tpu.dimension_semantics<parallel>, #tpu.dimension_semantics<arbitrary>], iteration_bounds = array<i64: 1, 1, 1>, scalar_prefetch = 0 : i64, scratch_operands = 1 : i64, tpu.core_type = #tpu.core_type<tc>, window_params = [{transform_indices = @transform_0, window_bounds = array<i64: 128, 256>}, {transform_indices = @transform_1, window_bounds = array<i64: 256, 128>}, {transform_indices = @transform_2, window_bounds = array<i64: 1, 128>}, {transform_indices = @transform_3, window_bounds = array<i64: 128, 128>}]} {
    %c0_i32 = arith.constant 0 : i32
    %0 = arith.cmpi eq, %arg2, %c0_i32 : i32
    %1 = arith.extui %0 : i1 to i32
    %c0_i32_0 = arith.constant 0 : i32
    %2 = arith.cmpi ne, %1, %c0_i32_0 : i32
    scf.if %2 {
      %cst_10 = arith.constant 0.000000e+00 : f32
      %12 = vector.broadcast %cst_10 : f32 to vector<128x128xf32>
      %c0_11 = arith.constant 0 : index
      %c0_12 = arith.constant 0 : index
      %13 = vector.load %arg7[%c0_11, %c0_12] : memref<128x128xf32, #tpu.memory_space<vmem>>, vector<128x128xf32>
      tpu.vector_store %arg7[%c0_11, %c0_12], %12 {strides = array<i32>} : memref<128x128xf32, #tpu.memory_space<vmem>>, vector<128x128xf32>,
    } else {
    }
    %c0 = arith.constant 0 : index
    %c0_1 = arith.constant 0 : index
    %3 = vector.load %arg7[%c0, %c0_1] : memref<128x128xf32, #tpu.memory_space<vmem>>, vector<128x128xf32>
    %c0_2 = arith.constant 0 : index
    %c0_3 = arith.constant 0 : index
    %4 = vector.load %arg3[%c0_2, %c0_3] : memref<128x256xbf16, #tpu.memory_space<vmem>>, vector<128x256xbf16>
    %c0_4 = arith.constant 0 : index
    %c0_5 = arith.constant 0 : index
    %5 = vector.load %arg4[%c0_4, %c0_5] : memref<256x128xbf16, #tpu.memory_space<vmem>>, vector<256x128xbf16>
    %cst = arith.constant dense<0.000000e+00> : vector<128x128xf32>
    %6 = tpu.matmul %4, %5, %cst {dimension_numbers = #tpu.dot_dimension_numbers<[1], [0], [0], [1], [0, 0, 1, 1], [], []>} : vector<128x256xbf16>, vector<256x128xbf16>, vector<128x128xf32> -> vector<128x128xf32>
    %7 = arith.addf %3, %6 : vector<128x128xf32>
    %c0_6 = arith.constant 0 : index
    %c0_7 = arith.constant 0 : index
    %8 = vector.load %arg7[%c0_6, %c0_7] : memref<128x128xf32, #tpu.memory_space<vmem>>, vector<128x128xf32>
    tpu.vector_store %arg7[%c0_6, %c0_7], %7 {strides = array<i32>} : memref<128x128xf32, #tpu.memory_space<vmem>>, vector<128x128xf32>,
    %c0_i32_8 = arith.constant 0 : i32
    %9 = arith.cmpi eq, %arg2, %c0_i32_8 : i32
    %10 = arith.extui %9 : i1 to i32
    %c0_i32_9 = arith.constant 0 : i32
    %11 = arith.cmpi ne, %10, %c0_i32_9 : i32
    scf.if %11 {
      %c0_10 = arith.constant 0 : index
      %c0_11 = arith.constant 0 : index
      %12 = vector.load %arg7[%c0_10, %c0_11] : memref<128x128xf32, #tpu.memory_space<vmem>>, vector<128x128xf32>
      %c0_12 = arith.constant 0 : index
      %c0_13 = arith.constant 0 : index
      %13 = vector.load %arg5[%c0_12, %c0_13] : memref<1x128xf32, #tpu.memory_space<vmem>>, vector<1x128xf32>
      %14 = vector.broadcast %13 : vector<1x128xf32> to vector<128x128xf32>
      %15 = arith.addf %12, %14 : vector<128x128xf32>
      %16 = math.tanh %15 : vector<128x128xf32>
      %c0_14 = arith.constant 0 : index
      %c0_15 = arith.constant 0 : index
      %17 = vector.load %arg6[%c0_14, %c0_15] : memref<128x128xf32, #tpu.memory_space<vmem>>, vector<128x128xf32>
      tpu.vector_store %arg6[%c0_14, %c0_15], %16 {strides = array<i32>} : memref<128x128xf32, #tpu.memory_space<vmem>>, vector<128x128xf32>,
    } else {
    }
    return
  }
  func.func @transform_0(%arg0: i32, %arg1: i32, %arg2: i32) -> (i32, i32) {
    %c0_i32 = arith.constant 0 : i32
    return %arg0, %arg2 : i32, i32
  }
  func.func @transform_1(%arg0: i32, %arg1: i32, %arg2: i32) -> (i32, i32) {
    %c0_i32 = arith.constant 0 : i32
    return %arg2, %arg1 : i32, i32
  }
  func.func @transform_2(%arg0: i32, %arg1: i32, %arg2: i32) -> (i32, i32) {
    %c0_i32 = arith.constant 0 : i32
    %c0_i32_0 = arith.constant 0 : i32
    return %c0_i32, %arg1 : i32, i32
  }
  func.func @transform_3(%arg0: i32, %arg1: i32, %arg2: i32) -> (i32, i32) {
    %c0_i32 = arith.constant 0 : i32
    return %arg0, %arg1 : i32, i32
  }
}

module attributes {stable_mosaic.version = 11 : i64} {
  func.func @_mm_bias_act_kernel(%arg0: i32, %arg1: i32, %arg2: i32, %arg3: memref<128x128xbf16, #tpu.memory_space<vmem>>, %arg4: memref<128x128xbf16, #tpu.memory_space<vmem>>, %arg5: memref<1x128xf32, #tpu.memory_space<vmem>>, %arg6: memref<128x128xf32, #tpu.memory_space<vmem>>, %arg7: memref<128x128xf32, #tpu.memory_space<vmem>>) attributes {dimension_semantics = [#tpu.dimension_semantics<parallel>, #tpu.dimension_semantics<parallel>, #tpu.dimension_semantics<arbitrary>], iteration_bounds = array<i64: 1, 1, 1>, scalar_prefetch = 0 : i64, scratch_operands = 1 : i64, tpu.core_type = #tpu.core_type<tc>, window_params = [{transform_indices = @transform_0, window_bounds = array<i64: 128, 128>}, {transform_indices = @transform_1, window_bounds = array<i64: 128, 128>}, {transform_indices = @transform_2, window_bounds = array<i64: 1, 128>}, {transform_indices = @transform_3, window_bounds = array<i64: 128, 128>}]} {
    %c0_i32 = arith.constant 0 : i32
    %0 = arith.cmpi eq, %arg2, %c0_i32 : i32
    %1 = arith.extui %0 : i1 to i32
    %c0_i32_0 = arith.constant 0 : i32
    %2 = arith.cmpi ne, %1, %c0_i32_0 : i32
    scf.if %2 {
      %cst_10 = arith.constant 0.000000e+00 : f32
      %12 = vector.broadcast %cst_10 : f32 to vector<128x128xf32>
      %c0_11 = arith.constant 0 : index
      %c0_12 = arith.constant 0 : index
      %13 = vector.load %arg7[%c0_11, %c0_12] : memref<128x128xf32, #tpu.memory_space<vmem>>, vector<128x128xf32>
      tpu.vector_store %arg7[%c0_11, %c0_12], %12 {strides = array<i32>} : memref<128x128xf32, #tpu.memory_space<vmem>>, vector<128x128xf32>,
    } else {
    }
    %c0 = arith.constant 0 : index
    %c0_1 = arith.constant 0 : index
    %3 = vector.load %arg7[%c0, %c0_1] : memref<128x128xf32, #tpu.memory_space<vmem>>, vector<128x128xf32>
    %c0_2 = arith.constant 0 : index
    %c0_3 = arith.constant 0 : index
    %4 = vector.load %arg3[%c0_2, %c0_3] : memref<128x128xbf16, #tpu.memory_space<vmem>>, vector<128x128xbf16>
    %c0_4 = arith.constant 0 : index
    %c0_5 = arith.constant 0 : index
    %5 = vector.load %arg4[%c0_4, %c0_5] : memref<128x128xbf16, #tpu.memory_space<vmem>>, vector<128x128xbf16>
    %cst = arith.constant dense<0.000000e+00> : vector<128x128xf32>
    %6 = tpu.matmul %4, %5, %cst {dimension_numbers = #tpu.dot_dimension_numbers<[1], [0], [0], [1], [0, 0, 1, 1], [], []>} : vector<128x128xbf16>, vector<128x128xbf16>, vector<128x128xf32> -> vector<128x128xf32>
    %7 = arith.addf %3, %6 : vector<128x128xf32>
    %c0_6 = arith.constant 0 : index
    %c0_7 = arith.constant 0 : index
    %8 = vector.load %arg7[%c0_6, %c0_7] : memref<128x128xf32, #tpu.memory_space<vmem>>, vector<128x128xf32>
    tpu.vector_store %arg7[%c0_6, %c0_7], %7 {strides = array<i32>} : memref<128x128xf32, #tpu.memory_space<vmem>>, vector<128x128xf32>,
    %c0_i32_8 = arith.constant 0 : i32
    %9 = arith.cmpi eq, %arg2, %c0_i32_8 : i32
    %10 = arith.extui %9 : i1 to i32
    %c0_i32_9 = arith.constant 0 : i32
    %11 = arith.cmpi ne, %10, %c0_i32_9 : i32
    scf.if %11 {
      %c0_10 = arith.constant 0 : index
      %c0_11 = arith.constant 0 : index
      %12 = vector.load %arg7[%c0_10, %c0_11] : memref<128x128xf32, #tpu.memory_space<vmem>>, vector<128x128xf32>
      %c0_12 = arith.constant 0 : index
      %c0_13 = arith.constant 0 : index
      %13 = vector.load %arg5[%c0_12, %c0_13] : memref<1x128xf32, #tpu.memory_space<vmem>>, vector<1x128xf32>
      %14 = vector.broadcast %13 : vector<1x128xf32> to vector<128x128xf32>
      %15 = arith.addf %12, %14 : vector<128x128xf32>
      %c0_14 = arith.constant 0 : index
      %c0_15 = arith.constant 0 : index
      %16 = vector.load %arg6[%c0_14, %c0_15] : memref<128x128xf32, #tpu.memory_space<vmem>>, vector<128x128xf32>
      tpu.vector_store %arg6[%c0_14, %c0_15], %15 {strides = array<i32>} : memref<128x128xf32, #tpu.memory_space<vmem>>, vector<128x128xf32>,
    } else {
    }
    return
  }
  func.func @transform_0(%arg0: i32, %arg1: i32, %arg2: i32) -> (i32, i32) {
    %c0_i32 = arith.constant 0 : i32
    return %arg0, %arg2 : i32, i32
  }
  func.func @transform_1(%arg0: i32, %arg1: i32, %arg2: i32) -> (i32, i32) {
    %c0_i32 = arith.constant 0 : i32
    return %arg2, %arg1 : i32, i32
  }
  func.func @transform_2(%arg0: i32, %arg1: i32, %arg2: i32) -> (i32, i32) {
    %c0_i32 = arith.constant 0 : i32
    %c0_i32_0 = arith.constant 0 : i32
    return %c0_i32, %arg1 : i32, i32
  }
  func.func @transform_3(%arg0: i32, %arg1: i32, %arg2: i32) -> (i32, i32) {
    %c0_i32 = arith.constant 0 : i32
    return %arg0, %arg1 : i32, i32
  }
}

</mosaic_0001>

<bundles_post_ra>
// kernel: _lambda_.30
= control target key start
LH: loop header
LB: loop body
LE: loop exit
PB: predicated region body
PF: predicated region fallthrough
CT: control target
= control target key end

     0   :  { %8 = vsyncpa [#allocation4], 0  ;;  %s1801_s0 = inlined_call_operand.hbm [shape: bf16[1024,128], index: 0, kind: input, shape index: {}]   ;;  %s1802_s1 = inlined_call_operand.hbm [shape: bf16[128,128], index: 1, kind: input, shape index: {}]   ;;  %s1803_s2 = inlined_call_operand.hbm [shape: f32[1,128], index: 2, kind: input, shape index: {}]   ;;  %s1804_s3 = inlined_call_operand.hbm [shape: f32[1024,128], index: 3, kind: output, shape index: {}]  }
   0x1   :  { %10 = vsyncpa [#allocation4 + $0x1], 0 }
   0x2   :  { %11 = vsyncpa [#allocation7], 0 }
   0x3   :  { %12 = vsyncpa [#allocation5], 0 }
   0x4   :  { %14 = vsyncpa [#allocation5 + $0x1], 0  ;;  %s1460_s12 = smov 0   ;;  %s1462_s13 = smov 0  }
   0x5   :  { %s1464_s14 = smov 0   ;;  %s1466_s15 = smov 0  }
   0x6   :  { %s1468_s16 = smov 0   ;;  %s1470_s17 = smov 0  }
   0x7 LB: > { %s1013_s18 = sadd.s32 4294967295, %s1430_s17   ;;  %s1014_s19 = sadd.s32 4294967294, %s1430_s17   ;;  %s1430_s17 = sphi %s1470_s17, %s20_s17   ;;  %s1426_s16 = sphi %s1468_s16, %s1826_s16   ;;  %s1422_s15 = sphi %s1466_s15, %s1825_s15   ;;  %s1418_s14 = sphi %s1464_s14, %s1824_s14   ;;  %s1414_s13 = sphi %s1462_s13, %s1823_s13   ;;  %s1410_s12 = sphi %s1460_s12, %s1822_s12  }
   0x8   : > { %p61_p0 = scmp.ne.s32.totalorder %s1414_s13, %s1410_s12  ;;  %p1494_p1 = scmp.eq.s32.totalorder %s1013_s18, 0 }
   0x9   : > { %p1498_p2 = scmp.eq.s32.totalorder %s1013_s18, 3  ;;  %p147_p3 = scmp.eq.s32.totalorder %s1014_s19, 3 }
   0xa   : > { %s1809_s20 = scalar_select %p1494_p1, 1, 0 }
   0xb   : > { %s1810_s21 = scalar_select %p1498_p2, 1, 0 }
   0xc   : > { %p1504_p4 = por %p1494_p1, %p61_p0  ;;  %p1015_p5 = scmp.ge.s32.totalorder %s1430_s17, 1 }
   0xd   : > { %p1509_p6 = por %p147_p3, %p61_p0  ;;  %p154_p7 = scmp.lt.s32.totalorder %s1430_s17, 5 }
   0xe   : > { %s1811_s22 = scalar_select %p1504_p4, 1, 0 }
   0xf   : > { %s1812_s23 = scalar_select %p1509_p6, 1, 0 }
  0x10   : > { %p1514_p8 = pnand %p1015_p5, %p154_p7  ;;  %s1432_s25 = smov [#allocation6]  }
  0x11   : > { %s170_s26 = sshll.u32 %s1432_s25, 4  ;;  %s1433_s28 = smov [#allocation8]   ;;  %s171_s26 = int_to_ptr.vmem [resolvable:$true] %s170_s26 }
  0x12   : > { %s1813_s24 = scalar_select %p1514_p8, 1, 0 }
  0x13   : > { %p1159_p9 = pneg %p1514_p8  ;;  %s186_s29 = sshll.u32 %s1433_s28, 4  ;;  %s1526_s29 = int_to_ptr.vmem [resolvable:$true] %s186_s29 }
  0x14   : > { %s1258_s5 = scalar_lea.hbm %s1802_s1, 1024 }
  0x15   : > { %p1522_p10 = pnand %p1159_p9, %p1494_p1  ;;  %p1259_p11 = scmp.ne.s32.totalorder %s1802_s1, %s1258_s5 }
  0x16   : > { %p1265_p3 = scmp.lt.u32.totalorder %s1258_s5, %s1802_s1 }
  0x17   : > { %p1260_p12 = pneg %p1522_p10 }
  0x19   : > { %p1261_p13 = pnand %p1260_p12, %p1259_p11 }
  0x1b   : > { %p1262_p0 = pneg %p1261_p13 }
  0x1d   : > { %p1267_p5 = pnand %p1265_p3, %p1262_p0 }
  0x1f   : > { %1270 = shalt.err (!%p1267_p5)
}
  0x20   : > { %s1271_s10 = scalar_lea.vmem %s171_s26, 1024  ;;  %p1279_p1 = scmp.lt.s32.totalorder %s171_s26, %s171_s26 }
  0x21   : > { %p1272_p7 = scmp.ne.s32.totalorder %s171_s26, %s1271_s10  ;;  %p1280_p4 = scmp.lt.s32.totalorder %s1271_s10, %s1271_s10 }
  0x23   : > { %p1274_p9 = pnand %p1272_p7, %p1260_p12  ;;  %p1281_p8 = por %p1280_p4, %p1279_p1 }
  0x25   : > { %p1275_p6 = pneg %p1274_p9 }
  0x27   : > { %p1282_p2 = pnand %p1281_p8, %p1275_p6 }
  0x29   : > { %1285 = shalt.err (!%p1282_p2)
}
  0x2a   : > { %s1434_s11 = smov 64   ;;  %s1435_s18 = smov 4  }
  0x2b   : > { %1162 = dma.hbm_to_vmem [thread:$0]  (!%p1522_p10), %s1802_s1, 1024, %s171_s26, [#allocation7], %s1434_s11, %s1434_s11, %s1435_s18  }
  0x2c   : > { %s1286_s4 = scalar_lea.hbm %s1803_s2, 16 }
  0x2d   : > { %p1287_p1 = scmp.ne.s32.totalorder %s1803_s2, %s1286_s4  ;;  %p1293_p6 = scmp.lt.u32.totalorder %s1286_s4, %s1803_s2 }
  0x2f   : > { %p1289_p2 = pnand %p1287_p1, %p1260_p12 }
  0x31   : > { %p1290_p4 = pneg %p1289_p2 }
  0x33   : > { %p1295_p8 = pnand %p1293_p6, %p1290_p4 }
  0x35   : > { %1298 = shalt.err (!%p1295_p8)
}
  0x36   : > { %s1299_s26 = scalar_lea.vmem %s1526_s29, 16  ;;  %s1306_s9 = scalar_lea.vmem %s1526_s29, 32 }
  0x37   : > { %p1300_p11 = scmp.ne.s32.totalorder %s1526_s29, %s1299_s26  ;;  %p1307_p3 = scmp.lt.s32.totalorder %s1526_s29, %s1526_s29 }
  0x38   : > { %p1308_p5 = scmp.lt.s32.totalorder %s1306_s9, %s1299_s26 }
  0x39   : > { %p1302_p13 = pnand %p1300_p11, %p1260_p12 }
  0x3a   : > { %p1309_p7 = por %p1308_p5, %p1307_p3 }
  0x3b   : > { %p1303_p0 = pneg %p1302_p13 }
  0x3d   : > { %p1310_p9 = pnand %p1309_p7, %p1303_p0 }
  0x3f   : > { %1313 = shalt.err (!%p1310_p9)
}
  0x40   : > { %1165 = dma.hbm_to_vmem [thread:$0]  (!%p1522_p10), %s1803_s2, 16, %s1526_s29, [#allocation7]  }
  0x41   : > { %s39_s25 = sadd.s32 1, %s1426_s16  ;;  %s48_s28 = sadd.s32 1, %s1418_s14 }
  0x42   : > { %p41_p12 = scmp.ge.s32.totalorder %s39_s25, 4  ;;  %p55_p1 = scmp.ne.s32.totalorder %s1418_s14, %s1414_s13 }
  0x43   : > { %p56_p2 = scmp.eq.s32.totalorder %s1430_s17, 0  ;;  %p1176_p4 = scmp.lt.s32.totalorder %s1430_s17, 4 }
  0x44   : > { %s1828_s25 = smov (%p41_p12, %s39_s25), 0  ;;  %p1815_p8 = scmp.ne.s32.totalorder %s1810_s21, 0 }
  0x45   : > { %p57_p6 = por %p56_p2, %p55_p1  ;;  %s43_s30 = ssub.s32 %s1426_s16, %s1828_s25 }
  0x46   : > { %p1589_p11 = por %p1815_p8, %p55_p1  ;;  %s197_s4 = sand.u32 1, %s1418_s14  }
  0x47   : > { %p46_p13 = scmp.eq.s32.totalorder %s43_s30, 0  ;;  %s1019_s29 = sshll.u32 %s197_s4, 7 }
  0x48   : > { %s1057_s5 = sshll.u32 %s1426_s16, 11  ;;  %s201_s21 = scalar_lea.vmem [#allocation3], %s1019_s29 }
  0x49   : > { %s1598_s6 = scalar_select %p46_p13, %s1418_s14, %s48_s28  }
  0x4a   : > { %s1603_s26 = scalar_lea.hbm %s1801_s0, %s1057_s5  ;;  %s209_s9 = sshll.u32 %s201_s21, 4  ;;  %s1611_s9 = int_to_ptr.vmem [resolvable:$true] %s209_s9 }
  0x4b   : > { %p1607_p10 = pnand %p1176_p4, %p57_p6  ;;  %s1613_s19 = scalar_lea.sflag [#allocation4], %s197_s4 }
  0x4c   : > { %s1314_s28 = scalar_lea.hbm %s1603_s26, 2048  ;;  %s1319_s5 = scalar_lea.hbm %s1801_s0, 8192 }
  0x4d   : > { %p1315_p0 = scmp.ne.s32.totalorder %s1603_s26, %s1314_s28  ;;  %p1316_p3 = pneg %p1607_p10 }
  0x4e   : > { %p1320_p9 = scmp.lt.u32.totalorder %s1603_s26, %s1801_s0  ;;  %p1321_p12 = scmp.lt.u32.totalorder %s1319_s5, %s1314_s28 }
  0x4f   : > { %p1317_p5 = pnand %p1316_p3, %p1315_p0  ;;  %p1323_p2 = scmp.lt.u32.totalorder %s1314_s28, %s1603_s26 }
  0x50   : > { %p1322_p1 = por %p1321_p12, %p1320_p9 }
  0x51   : > { %p1318_p7 = pneg %p1317_p5 }
  0x52   : > { %p1324_p4 = por %p1323_p2, %p1322_p1 }
  0x54   : > { %p1325_p6 = pnand %p1324_p4, %p1318_p7 }
  0x56   : > { %1328 = shalt.err (!%p1325_p6)
}
  0x57   : > { %s1329_s4 = scalar_lea.vmem %s1611_s9, 2048  ;;  %s1436_s21 = smov [#allocation3]  }
  0x58   : > { %p1330_p8 = scmp.ne.s32.totalorder %s1611_s9, %s1329_s4  ;;  %s1334_s30 = sshll.u32 %s1436_s21, 4  ;;  %s1335_s30 = int_to_ptr.vmem [resolvable:$false] %s1334_s30 }
  0x59   : > { %s1336_s29 = scalar_lea.vmem %s1335_s30, 4096  ;;  %p1337_p5 = scmp.lt.s32.totalorder %s1611_s9, %s1335_s30 }
  0x5a   : > { %p1332_p13 = pnand %p1330_p8, %p1316_p3  ;;  %p1338_p9 = scmp.lt.s32.totalorder %s1336_s29, %s1329_s4 }
  0x5c   : > { %p1333_p0 = pneg %p1332_p13  ;;  %p1339_p12 = por %p1338_p9, %p1337_p5 }
  0x5e   : > { %p1340_p1 = pnand %p1339_p12, %p1333_p0 }
  0x60   : > { %1343 = shalt.err (!%p1340_p1)
}
  0x61   : > { %1169 = dma.hbm_to_vmem [thread:$0]  (!%p1607_p10), %s1603_s26, 2048, %s1611_s9, %s1613_s19, %s1434_s11, %s1434_s11, %s1435_s18  }
  0x62   : > { %p1818_p3 = scmp.ne.s32.totalorder %s1813_s24, 0 }
  0x63   : > { %s1647_s28 = sand.u32 (!%p1818_p3), 1, %s1414_s13   ;;  %p1819_p7 = scmp.ne.s32.totalorder (!%p1818_p3), %s1811_s22, 0 }
  0x64   : > { %221 = sbr.rel (%p1818_p3) target bundleno = 402 (0x192), region = 32  ;;  %s1023_s5 = sshll.u32 (!%p1818_p3), %s1647_s28, 7 }
  0x65   : > { %s224_s7 = scalar_lea.sflag (!%p1818_p3), [#allocation4], %s1647_s28  ;;  %s1651_s8 = scalar_lea.vmem (!%p1818_p3), [#allocation3], %s1023_s5 }
  0x6b   : > { %1397 = dma.done.wait (%p1819_p7), %s224_s7, 2048  }
  0x6c   : > { %1399 = vsyncadd (%p1819_p7), %s224_s7, 4294965248  ;;  %p1820_p10 = scmp.ne.s32.totalorder %s1809_s20, 0 }
  0x6e   : > { %1401 = dma.done.wait (%p1820_p10), [#allocation7], 1040  }
  0x6f   : > { %1403 = vsyncadd (%p1820_p10), [#allocation7], 4294966256  ;;  %v1234_v0 = vld [vmem:[#allocation6] sm:$0xff]   ;;  %v1235_v1 = vld [vmem:[#allocation6 + $0x8] sm:$0xff]   ;;  %s1026_s20 = sshll.u32 %s1647_s28, 8  ;;  %s1058_s24 = sshll.u32 %s1422_s15, 12 }
  0x70   : > { %1083 = vmatprep.subr.bf16.mxu0 %v1234_v0  ;;  %1131 = vmatprep.subr.bf16.mxu1 %v1234_v0  ;;  %v1236_v2 = vld [vmem:[#allocation6 + $0x10] sm:$0xff]   ;;  %v1237_v3 = vld [vmem:[#allocation6 + $0x18] sm:$0xff]   ;;  %v1242_v4 = vld [vmem:[%s1651_s8] sm:$0xff]   ;;  %s1688_s22 = scalar_lea.vmem [#allocation9], %s1026_s20  ;;  %s1745_s26 = scalar_lea.hbm %s1804_s3, %s1058_s24 }
  0x71   : > { %1084 = vmatpush3.bf16.msra.mxu0 %v1234_v0  ;;  %1139 = vmatpush3.bf16.msra.mxu1 %v1234_v0  ;;  %v1243_v5 = vld [vmem:[%s1651_s8 + $0x40] sm:$0xff]   ;;  %v1239_v7 = vld [vmem:[#allocation6 + $0x28] sm:$0xff]   ;;  %v1240_v8 = vld [vmem:[#allocation6 + $0x30] sm:$0xff]   ;;  %s900_s11 = sshll.u32 %s1688_s22, 4  ;;  %s886_s9 = scalar_lea.sflag [#allocation5], %s1647_s28  ;;  %s1747_s11 = int_to_ptr.vmem [resolvable:$true] %s900_s11 }
  0x72   : > { %1085 = vmatprep.subr.bf16.mxu0 %v1235_v1  ;;  %1132 = vmatprep.subr.bf16.mxu1 %v1235_v1  ;;  %v1238_v6 = vld [vmem:[#allocation6 + $0x20] sm:$0xff]   ;;  %v1241_v9 = vld [vmem:[#allocation6 + $0x38] sm:$0xff]   ;;  %v1244_v10 = vld [vmem:[%s1651_s8 + $0x8] sm:$0xff]   ;;  %s1344_s10 = scalar_lea.vmem %s1747_s11, 4096  ;;  %s1437_s19 = smov [#allocation9]  }
  0x73   : > { %1099 = vmatprep.mubr.bf16.mxu0 %v1242_v4  ;;  %1115 = vmatprep.mubr.bf16.mxu1 %v1243_v5  ;;  %v1245_v11 = vld [vmem:[%s1651_s8 + $0x48] sm:$0xff]   ;;  %v1246_v12 = vld [vmem:[%s1651_s8 + $0x10] sm:$0xff]   ;;  %v1248_v14 = vld [vmem:[%s1651_s8 + $0x18] sm:$0xff]   ;;  %p1345_p2 = scmp.ne.s32.totalorder %s1747_s11, %s1344_s10  ;;  %s1348_s4 = sshll.u32 %s1437_s19, 4  ;;  %s1349_s4 = int_to_ptr.vmem [resolvable:$false] %s1348_s4 }
  0x74   : > { %v1247_v13 = vld [vmem:[%s1651_s8 + $0x50] sm:$0xff]   ;;  %v1249_v15 = vld [vmem:[%s1651_s8 + $0x58] sm:$0xff]   ;;  %v1250_v16 = vld [vmem:[%s1651_s8 + $0x20] sm:$0xff]   ;;  %s1350_s21 = scalar_lea.vmem %s1349_s4, 8192  ;;  %p1351_p8 = scmp.lt.s32.totalorder %s1747_s11, %s1349_s4 }
  0x75   : > { %1086 = vmatpush3.bf16.msra.mxu0 %v1235_v1  ;;  %1140 = vmatpush3.bf16.msra.mxu1 %v1235_v1  ;;  %v1251_v17 = vld [vmem:[%s1651_s8 + $0x60] sm:$0xff]   ;;  %v1252_v18 = vld [vmem:[%s1651_s8 + $0x28] sm:$0xff]   ;;  %v1254_v20 = vld [vmem:[%s1651_s8 + $0x30] sm:$0xff]   ;;  %p1346_p4 = pnand %p1345_p2, %p1589_p11  ;;  %p1352_p13 = scmp.lt.s32.totalorder %s1350_s21, %s1344_s10 }
  0x76   : > { %1087 = vmatprep.subr.bf16.mxu0 %v1236_v2  ;;  %1133 = vmatprep.subr.bf16.mxu1 %v1236_v2  ;;  %v1253_v19 = vld [vmem:[%s1651_s8 + $0x68] sm:$0xff]   ;;  %v1255_v21 = vld [vmem:[%s1651_s8 + $0x70] sm:$0xff]   ;;  %v1256_v22 = vld [vmem:[%s1651_s8 + $0x38] sm:$0xff]  }
  0x77   : > { %v1257_v23 = vld [vmem:[%s1651_s8 + $0x78] sm:$0xff]   ;;  %v1677_v24 = vld [vmem:[#allocation8] ss:$0 sm:$0xff]  ;;  %p1347_p6 = pneg %p1346_p4  ;;  %p1353_p0 = por %p1352_p13, %p1351_p8 }
  0x79   : > { %1088 = vmatpush3.bf16.msra.mxu0 %v1236_v2  ;;  %1141 = vmatpush3.bf16.msra.mxu1 %v1236_v2  ;;  %p1354_p5 = pnand %p1353_p0, %p1347_p6 }
  0x7a   : > { %1089 = vmatprep.subr.bf16.mxu0 %v1237_v3  ;;  %1134 = vmatprep.subr.bf16.mxu1 %v1237_v3 }
  0x7d   : > { %1090 = vmatpush3.bf16.msra.mxu0 %v1237_v3  ;;  %1142 = vmatpush3.bf16.msra.mxu1 %v1237_v3 }
  0x7e   : > { %1091 = vmatprep.subr.bf16.mxu0 %v1238_v6  ;;  %1135 = vmatprep.subr.bf16.mxu1 %v1238_v6 }
  0x81   : > { %1092 = vmatpush3.bf16.msra.mxu0 %v1238_v6  ;;  %1143 = vmatpush3.bf16.msra.mxu1 %v1238_v6 }
  0x82   : > { %1093 = vmatprep.subr.bf16.mxu0 %v1239_v7  ;;  %1136 = vmatprep.subr.bf16.mxu1 %v1239_v7 }
  0x85   : > { %1094 = vmatpush3.bf16.msra.mxu0 %v1239_v7  ;;  %1144 = vmatpush3.bf16.msra.mxu1 %v1239_v7 }
  0x86   : > { %1095 = vmatprep.subr.bf16.mxu0 %v1240_v8  ;;  %1137 = vmatprep.subr.bf16.mxu1 %v1240_v8 }
  0x89   : > { %1096 = vmatpush3.bf16.msra.mxu0 %v1240_v8  ;;  %1145 = vmatpush3.bf16.msra.mxu1 %v1240_v8 }
  0x8a   : > { %1097 = vmatprep.subr.bf16.mxu0 %v1241_v9  ;;  %1138 = vmatprep.subr.bf16.mxu1 %v1241_v9 }
  0x8d   : > { %1098 = vmatpush3.bf16.msra.mxu0 %v1241_v9  ;;  %1146 = vmatpush3.bf16.msra.mxu1 %v1241_v9 }
  0x90   : > { %1100 = vmatmul.mubr.bf16.vlgmr.msra.gmra.mrb[0].mxu0 %v1244_v10  ;;  %1116 = vmatmul.mubr.bf16.vlgmr.msra.gmra.mrb[0].mxu1 %v1245_v11 }
  0x91   : > { %1103 = vmatprep.mubr.bf16.mxu0 %v1246_v12  ;;  %1119 = vmatprep.mubr.bf16.mxu1 %v1247_v13 }
  0x98   : > { %1104 = vmatmul.mubr.bf16.gmra.mrb[4].mxu0 %v1248_v14  ;;  %1120 = vmatmul.mubr.bf16.gmra.mrb[4].mxu1 %v1249_v15 }
  0x99   : > { %1107 = vmatprep.mubr.bf16.mxu0 %v1250_v16  ;;  %1123 = vmatprep.mubr.bf16.mxu1 %v1251_v17 }
  0xa0   : > { %1108 = vmatmul.mubr.bf16.gmra.mrb[8].mxu0 %v1252_v18  ;;  %1124 = vmatmul.mubr.bf16.gmra.mrb[8].mxu1 %v1253_v19 }
  0xa1   : > { %1111 = vmatprep.mubr.bf16.mxu0 %v1254_v20  ;;  %1127 = vmatprep.mubr.bf16.mxu1 %v1255_v21 }
  0xa8   : > { %1112 = vmatmul.mubr.bf16.gmra.mrb[12].mxu0 %v1256_v22  ;;  %1128 = vmatmul.mubr.bf16.gmra.mrb[12].mxu1 %v1257_v23 }
 0x163   : > { %v1101_v25 = vpop.f32.mrb[0].mxu0  ;;  %v1117_v26 = vpop.f32.mrb[0].mxu1 }
 0x164   : > { %v791_v27 = vadd.f32 %v1101_v25, %v1677_v24  ;;  %v807_v28 = vadd.f32 %v1117_v26, %v1677_v24  ;;  %v556_v29 = vpop.f32.mrb[1].mxu0  ;;  %v620_v30 = vpop.f32.mrb[1].mxu1 }
 0x165   : > { %v789_v31 = vadd.f32 %v1677_v24, %v556_v29  ;;  %v805_v32 = vadd.f32 %v1677_v24, %v620_v30  ;;  %v1102_v33 = vpop.f32.mrb[2].mxu0  ;;  %v1118_v34 = vpop.f32.mrb[2].mxu1 }
 0x166   : > { %v823_v35 = vmax.f32 %v791_v27, 0.0  ;;  %v839_v36 = vmax.f32 %v807_v28, 0.0  ;;  %v792_v37 = vadd.f32 %v1102_v33, %v1677_v24  ;;  %v808_v38 = vadd.f32 %v1118_v34, %v1677_v24  ;;  %v559_v39 = vpop.f32.mrb[3].mxu0  ;;  %v623_v40 = vpop.f32.mrb[3].mxu1 }
 0x167   : > { %v821_v41 = vmax.f32 %v789_v31, 0.0  ;;  %v837_v42 = vmax.f32 %v805_v32, 0.0  ;;  %v790_v43 = vadd.f32 %v1677_v24, %v559_v39  ;;  %v806_v44 = vadd.f32 %v1677_v24, %v623_v40 }
 0x168   : > { %855 = vst [vmem:[%s1688_s22 + $0x10] sm:$0xff] %v823_v35  ;;  %871 = vst [vmem:[%s1688_s22 + $0x90] sm:$0xff] %v839_v36  ;;  %v824_v45 = vmax.f32 %v792_v37, 0.0  ;;  %v840_v46 = vmax.f32 %v808_v38, 0.0 }
 0x169   : > { %853 = vst [vmem:[%s1688_s22] sm:$0xff] %v821_v41  ;;  %869 = vst [vmem:[%s1688_s22 + $0x80] sm:$0xff] %v837_v42  ;;  %v822_v47 = vmax.f32 %v790_v43, 0.0  ;;  %v838_v48 = vmax.f32 %v806_v44, 0.0 }
 0x16a   : > { %856 = vst [vmem:[%s1688_s22 + $0x18] sm:$0xff] %v824_v45  ;;  %872 = vst [vmem:[%s1688_s22 + $0x98] sm:$0xff] %v840_v46 }
 0x16b   : > { %854 = vst [vmem:[%s1688_s22 + $0x8] sm:$0xff] %v822_v47  ;;  %870 = vst [vmem:[%s1688_s22 + $0x88] sm:$0xff] %v838_v48  ;;  %v1105_v49 = vpop.f32.mrb[4].mxu0  ;;  %v1121_v50 = vpop.f32.mrb[4].mxu1 }
 0x16c   : > { %v795_v51 = vadd.f32 %v1105_v49, %v1677_v24  ;;  %v811_v52 = vadd.f32 %v1121_v50, %v1677_v24  ;;  %v572_v53 = vpop.f32.mrb[5].mxu0  ;;  %v636_v54 = vpop.f32.mrb[5].mxu1 }
 0x16d   : > { %v793_v55 = vadd.f32 %v1677_v24, %v572_v53  ;;  %v809_v56 = vadd.f32 %v1677_v24, %v636_v54  ;;  %v1106_v57 = vpop.f32.mrb[6].mxu0  ;;  %v1122_v58 = vpop.f32.mrb[6].mxu1 }
 0x16e   : > { %v827_v59 = vmax.f32 %v795_v51, 0.0  ;;  %v843_v60 = vmax.f32 %v811_v52, 0.0  ;;  %v796_v61 = vadd.f32 %v1106_v57, %v1677_v24  ;;  %v812_v62 = vadd.f32 %v1122_v58, %v1677_v24  ;;  %v575_v63 = vpop.f32.mrb[7].mxu0  ;;  %v639_v0 = vpop.f32.mrb[7].mxu1 }
 0x16f   : > { %v825_v1 = vmax.f32 %v793_v55, 0.0  ;;  %v841_v2 = vmax.f32 %v809_v56, 0.0  ;;  %v794_v3 = vadd.f32 %v1677_v24, %v575_v63  ;;  %v810_v4 = vadd.f32 %v1677_v24, %v639_v0 }
 0x170   : > { %859 = vst [vmem:[%s1688_s22 + $0x30] sm:$0xff] %v827_v59  ;;  %875 = vst [vmem:[%s1688_s22 + $0xb0] sm:$0xff] %v843_v60  ;;  %v828_v5 = vmax.f32 %v796_v61, 0.0  ;;  %v844_v6 = vmax.f32 %v812_v62, 0.0 }
 0x171   : > { %857 = vst [vmem:[%s1688_s22 + $0x20] sm:$0xff] %v825_v1  ;;  %873 = vst [vmem:[%s1688_s22 + $0xa0] sm:$0xff] %v841_v2  ;;  %v826_v7 = vmax.f32 %v794_v3, 0.0  ;;  %v842_v8 = vmax.f32 %v810_v4, 0.0 }
 0x172   : > { %860 = vst [vmem:[%s1688_s22 + $0x38] sm:$0xff] %v828_v5  ;;  %876 = vst [vmem:[%s1688_s22 + $0xb8] sm:$0xff] %v844_v6 }
 0x173   : > { %858 = vst [vmem:[%s1688_s22 + $0x28] sm:$0xff] %v826_v7  ;;  %874 = vst [vmem:[%s1688_s22 + $0xa8] sm:$0xff] %v842_v8  ;;  %v1109_v9 = vpop.f32.mrb[8].mxu0  ;;  %v1125_v10 = vpop.f32.mrb[8].mxu1 }
 0x174   : > { %v799_v11 = vadd.f32 %v1109_v9, %v1677_v24  ;;  %v815_v12 = vadd.f32 %v1125_v10, %v1677_v24  ;;  %v588_v13 = vpop.f32.mrb[9].mxu0  ;;  %v652_v14 = vpop.f32.mrb[9].mxu1 }
 0x175   : > { %v797_v15 = vadd.f32 %v1677_v24, %v588_v13  ;;  %v813_v16 = vadd.f32 %v1677_v24, %v652_v14  ;;  %v1110_v17 = vpop.f32.mrb[10].mxu0  ;;  %v1126_v18 = vpop.f32.mrb[10].mxu1 }
 0x176   : > { %v831_v19 = vmax.f32 %v799_v11, 0.0  ;;  %v847_v20 = vmax.f32 %v815_v12, 0.0  ;;  %v800_v21 = vadd.f32 %v1110_v17, %v1677_v24  ;;  %v816_v22 = vadd.f32 %v1126_v18, %v1677_v24  ;;  %v591_v23 = vpop.f32.mrb[11].mxu0  ;;  %v655_v25 = vpop.f32.mrb[11].mxu1 }
 0x177   : > { %v829_v26 = vmax.f32 %v797_v15, 0.0  ;;  %v845_v27 = vmax.f32 %v813_v16, 0.0  ;;  %v798_v28 = vadd.f32 %v1677_v24, %v591_v23  ;;  %v814_v29 = vadd.f32 %v1677_v24, %v655_v25 }
 0x178   : > { %863 = vst [vmem:[%s1688_s22 + $0x50] sm:$0xff] %v831_v19  ;;  %879 = vst [vmem:[%s1688_s22 + $0xd0] sm:$0xff] %v847_v20  ;;  %v832_v30 = vmax.f32 %v800_v21, 0.0  ;;  %v848_v31 = vmax.f32 %v816_v22, 0.0 }
 0x179   : > { %861 = vst [vmem:[%s1688_s22 + $0x40] sm:$0xff] %v829_v26  ;;  %877 = vst [vmem:[%s1688_s22 + $0xc0] sm:$0xff] %v845_v27  ;;  %v830_v32 = vmax.f32 %v798_v28, 0.0  ;;  %v846_v33 = vmax.f32 %v814_v29, 0.0 }
 0x17a   : > { %864 = vst [vmem:[%s1688_s22 + $0x58] sm:$0xff] %v832_v30  ;;  %880 = vst [vmem:[%s1688_s22 + $0xd8] sm:$0xff] %v848_v31 }
 0x17b   : > { %862 = vst [vmem:[%s1688_s22 + $0x48] sm:$0xff] %v830_v32  ;;  %878 = vst [vmem:[%s1688_s22 + $0xc8] sm:$0xff] %v846_v33  ;;  %v1113_v34 = vpop.f32.mrb[12].mxu0  ;;  %v1129_v35 = vpop.f32.mrb[12].mxu1 }
 0x17c   : > { %v803_v36 = vadd.f32 %v1113_v34, %v1677_v24  ;;  %v819_v37 = vadd.f32 %v1129_v35, %v1677_v24  ;;  %v604_v38 = vpop.f32.mrb[13].mxu0  ;;  %v668_v39 = vpop.f32.mrb[13].mxu1 }
 0x17d   : > { %v801_v40 = vadd.f32 %v1677_v24, %v604_v38  ;;  %v817_v41 = vadd.f32 %v1677_v24, %v668_v39  ;;  %v1114_v42 = vpop.f32.mrb[14].mxu0  ;;  %v1130_v43 = vpop.f32.mrb[14].mxu1 }
 0x17e   : > { %v835_v44 = vmax.f32 %v803_v36, 0.0  ;;  %v851_v45 = vmax.f32 %v819_v37, 0.0  ;;  %v804_v46 = vadd.f32 %v1114_v42, %v1677_v24  ;;  %v820_v47 = vadd.f32 %v1130_v43, %v1677_v24  ;;  %v607_v48 = vpop.f32.mrb[15].mxu0  ;;  %v671_v49 = vpop.f32.mrb[15].mxu1 }
 0x17f   : > { %v833_v50 = vmax.f32 %v801_v40, 0.0  ;;  %v849_v51 = vmax.f32 %v817_v41, 0.0  ;;  %v802_v52 = vadd.f32 %v1677_v24, %v607_v48  ;;  %v818_v53 = vadd.f32 %v1677_v24, %v671_v49 }
 0x180   : > { %867 = vst [vmem:[%s1688_s22 + $0x70] sm:$0xff] %v835_v44  ;;  %883 = vst [vmem:[%s1688_s22 + $0xf0] sm:$0xff] %v851_v45  ;;  %v836_v54 = vmax.f32 %v804_v46, 0.0  ;;  %v852_v55 = vmax.f32 %v820_v47, 0.0 }
 0x181   : > { %865 = vst [vmem:[%s1688_s22 + $0x60] sm:$0xff] %v833_v50  ;;  %881 = vst [vmem:[%s1688_s22 + $0xe0] sm:$0xff] %v849_v51  ;;  %v834_v56 = vmax.f32 %v802_v52, 0.0  ;;  %v850_v57 = vmax.f32 %v818_v53, 0.0 }
 0x182   : > { %868 = vst [vmem:[%s1688_s22 + $0x78] sm:$0xff] %v836_v54  ;;  %884 = vst [vmem:[%s1688_s22 + $0xf8] sm:$0xff] %v852_v55 }
 0x183   : > { %866 = vst [vmem:[%s1688_s22 + $0x68] sm:$0xff] %v834_v56  ;;  %882 = vst [vmem:[%s1688_s22 + $0xe8] sm:$0xff] %v850_v57 }
 0x184   : > { %1357 = shalt.err (!%p1354_p5)
}
 0x185   : > { %s1358_s30 = scalar_lea.hbm %s1745_s26, 4096  ;;  %s1362_s7 = scalar_lea.hbm %s1804_s3, 16384 }
 0x186   : > { %p1359_p9 = scmp.ne.s32.totalorder %s1745_s26, %s1358_s30  ;;  %p1363_p3 = scmp.lt.u32.totalorder %s1745_s26, %s1804_s3 }
 0x187   : > { %p1364_p7 = scmp.lt.u32.totalorder %s1362_s7, %s1358_s30  ;;  %p1366_p2 = scmp.lt.u32.totalorder %s1358_s30, %s1745_s26 }
 0x188   : > { %p1360_p12 = pnand %p1359_p9, %p1589_p11 }
 0x189   : > { %p1365_p10 = por %p1364_p7, %p1363_p3 }
 0x18a   : > { %p1361_p1 = pneg %p1360_p12 }
 0x18b   : > { %p1367_p4 = por %p1366_p2, %p1365_p10 }
 0x18d   : > { %p1368_p6 = pnand %p1367_p4, %p1361_p1 }
 0x18f   : > { %1371 = shalt.err (!%p1368_p6)
}
 0x190   : > { %s1438_s22 = smov 128   ;;  %s1439_s24 = smov 8  }
 0x191   : > { %1157 = dma.vmem_to_hbm [thread:$0]  (%p1589_p11), %s1747_s11, 4096, %s1745_s26, %s886_s9, %s1438_s22, %s1438_s22, %s1439_s24  }
 0x192 PF: > { %p1179_p8 = scmp.ge.s32.totalorder %s1430_s17, 2  ;;  %s915_s15 = sand.u32 1, %s1410_s12  }
 0x193   : > { %p1821_p13 = scmp.ne.s32.totalorder %s1812_s23, 0  ;;  %s916_s18 = scalar_lea.sflag [#allocation5], %s915_s15 }
 0x195   : > { %p1171_p0 = pnand %p1179_p8, %p1821_p13 }
 0x197   : > { %1405 = dma.done.wait (!%p1171_p0), %s916_s18, 4096  }
 0x198   : > { %1407 = vsyncadd (!%p1171_p0), %s916_s18, 4294963200  ;;  %s20_s17 = sadd.s32 1, %s1430_s17   ;;  %s1822_s12 = smov %s1414_s13 }
 0x199   : > { %p17_p5 = scmp.ge.s32.totalorder %s20_s17, 6   ;;  %s1823_s13 = smov %s1418_s14 }
 0x19a   : > { %s1824_s14 = smov %s1598_s6  ;;  %s1825_s15 = smov %s1426_s16 }
 0x19b   : > { %s1826_s16 = smov %s1828_s25  ;;  %19 = sbr.rel (!%p17_p5) target bundleno = 7 (0x7), region = 95 }
 0x1a2   :  { %921 = vsyncpa [#allocation4], 1 }
 0x1a3   :  { %923 = vsyncpa [#allocation4 + $0x1], 1 }
 0x1a4   :  { %924 = vsyncpa [#allocation7], 1 }
 0x1a5   :  { %925 = vsyncpa [#allocation5], 1 }
 0x1a6   :  { %927 = vsyncpa [#allocation5 + $0x1], 1 }

// kernel: _lambda_.38
= control target key start
LH: loop header
LB: loop body
LE: loop exit
PB: predicated region body
PF: predicated region fallthrough
CT: control target
= control target key end

     0   :  { %8 = vsyncpa [#allocation4], 0  ;;  %s722_s0 = inlined_call_operand.hbm [shape: bf16[128,128], index: 0, kind: input, shape index: {}]   ;;  %s723_s1 = inlined_call_operand.hbm [shape: bf16[128,128], index: 1, kind: input, shape index: {}]   ;;  %s724_s2 = inlined_call_operand.hbm [shape: f32[1,128], index: 2, kind: input, shape index: {}]   ;;  %s725_s3 = inlined_call_operand.hbm [shape: f32[128,128], index: 3, kind: output, shape index: {}]  }
   0x1   :  { %9 = vsyncpa [#allocation7], 0 }
   0x2   :  { %10 = vsyncpa [#allocation5], 0  ;;  %s639_s12 = smov [#allocation6]   ;;  %s640_s14 = smov [#allocation3]  }
   0x3   :  { %s28_s13 = sshll.u32 %s639_s12, 4  ;;  %s16_s15 = sshll.u32 %s640_s14, 4  ;;  %s29_s13 = int_to_ptr.vmem [resolvable:$true] %s28_s13  ;;  %s667_s15 = int_to_ptr.vmem [resolvable:$true] %s16_s15 }
   0x4   :  { %s545_s18 = scalar_lea.hbm %s723_s1, 1024 }
   0x5   :  { %p546_p0 = scmp.ne.s32.totalorder %s723_s1, %s545_s18  ;;  %p549_p1 = scmp.lt.u32.totalorder %s545_s18, %s723_s1 }
   0x7   :  { %p551_p2 = pnand %p549_p1, %p546_p0 }
   0x9   :  { %554 = shalt.err (!%p551_p2)
}
   0xa   :  { %s555_s23 = scalar_lea.vmem %s29_s13, 1024  ;;  %p560_p4 = scmp.lt.s32.totalorder %s29_s13, %s29_s13 }
   0xb   :  { %p556_p3 = scmp.ne.s32.totalorder %s29_s13, %s555_s23  ;;  %p561_p5 = scmp.lt.s32.totalorder %s555_s23, %s555_s23 }
   0xd   :  { %p562_p6 = por %p561_p5, %p560_p4 }
   0xf   :  { %p563_p7 = pnand %p562_p6, %p556_p3 }
  0x11   :  { %566 = shalt.err (!%p563_p7)
}
  0x12   :  { %s641_s24 = smov 64   ;;  %s642_s25 = smov 4  }
  0x13   :  { %34 = dma.hbm_to_vmem [thread:$0]  %s723_s1, 1024, %s29_s13, [#allocation7], %s641_s24, %s641_s24, %s642_s25  }
  0x14   :  { %s567_s30 = scalar_lea.hbm %s722_s0, 1024 }
  0x15   :  { %p568_p8 = scmp.ne.s32.totalorder %s722_s0, %s567_s30  ;;  %p571_p9 = scmp.lt.u32.totalorder %s567_s30, %s722_s0 }
  0x17   :  { %p573_p10 = pnand %p571_p9, %p568_p8 }
  0x19   :  { %576 = shalt.err (!%p573_p10)
}
  0x1a   :  { %s577_s8 = scalar_lea.vmem %s667_s15, 1024  ;;  %p582_p12 = scmp.lt.s32.totalorder %s667_s15, %s667_s15 }
  0x1b   :  { %p578_p11 = scmp.ne.s32.totalorder %s667_s15, %s577_s8  ;;  %p583_p13 = scmp.lt.s32.totalorder %s577_s8, %s577_s8 }
  0x1d   :  { %p584_p0 = por %p583_p13, %p582_p12 }
  0x1f   :  { %p585_p1 = pnand %p584_p0, %p578_p11 }
  0x21   :  { %588 = shalt.err (!%p585_p1)
}
  0x22   :  { %22 = dma.hbm_to_vmem [thread:$0]  %s722_s0, 1024, %s667_s15, [#allocation4], %s641_s24, %s641_s24, %s642_s25  }
  0x23   :  { %s643_s10 = smov [#allocation8]   ;;  %s589_s14 = scalar_lea.hbm %s724_s2, 16 }
  0x24   :  { %s41_s11 = sshll.u32 %s643_s10, 4  ;;  %p590_p2 = scmp.ne.s32.totalorder %s724_s2, %s589_s14  ;;  %s42_s11 = int_to_ptr.vmem [resolvable:$true] %s41_s11 }
  0x25   :  { %p593_p3 = scmp.lt.u32.totalorder %s589_s14, %s724_s2 }
  0x27   :  { %p595_p4 = pnand %p593_p3, %p590_p2 }
  0x29   :  { %598 = shalt.err (!%p595_p4)
}
  0x2a   :  { %s599_s20 = scalar_lea.vmem %s42_s11, 16  ;;  %s603_s0 = scalar_lea.vmem %s42_s11, 32 }
  0x2b   :  { %p600_p5 = scmp.ne.s32.totalorder %s42_s11, %s599_s20  ;;  %p604_p6 = scmp.lt.s32.totalorder %s42_s11, %s42_s11 }
  0x2c   :  { %p605_p7 = scmp.lt.s32.totalorder %s603_s0, %s599_s20 }
  0x2e   :  { %p606_p8 = por %p605_p7, %p604_p6 }
  0x30   :  { %p607_p9 = pnand %p606_p8, %p600_p5 }
  0x32   :  { %610 = shalt.err (!%p607_p9)
}
  0x33   :  { %44 = dma.hbm_to_vmem [thread:$0]  %s724_s2, 16, %s42_s11, [#allocation7]  }
  0x34   :  { %633 = dma.done.wait [#allocation4], 1024  }
  0x35   :  { %634 = vsyncadd [#allocation4], 4294966272 }
  0x36   :  { %635 = dma.done.wait [#allocation7], 1040  }
  0x37   :  { %636 = vsyncadd [#allocation7], 4294966256  ;;  %v529_v0 = vld [vmem:[#allocation6] sm:$0xff]   ;;  %v530_v1 = vld [vmem:[#allocation6 + $0x8] sm:$0xff]   ;;  %s644_s2 = smov [#allocation9]  }
  0x38   :  { %473 = vmatprep.subr.bf16.mxu0 %v529_v0  ;;  %505 = vmatprep.subr.bf16.mxu1 %v529_v0  ;;  %v531_v2 = vld [vmem:[#allocation6 + $0x10] sm:$0xff]   ;;  %v532_v3 = vld [vmem:[#allocation6 + $0x18] sm:$0xff]   ;;  %v537_v4 = vld [vmem:[#allocation3] sm:$0xff]   ;;  %s427_s22 = sshll.u32 %s644_s2, 4  ;;  %s428_s22 = int_to_ptr.vmem [resolvable:$true] %s427_s22 }
  0x39   :  { %474 = vmatpush3.bf16.msra.mxu0 %v529_v0  ;;  %513 = vmatpush3.bf16.msra.mxu1 %v529_v0  ;;  %v538_v5 = vld [vmem:[#allocation3 + $0x20] sm:$0xff]   ;;  %v534_v7 = vld [vmem:[#allocation6 + $0x28] sm:$0xff]   ;;  %v535_v8 = vld [vmem:[#allocation6 + $0x30] sm:$0xff]   ;;  %s611_s23 = scalar_lea.vmem %s428_s22, 2048  ;;  %p616_p11 = scmp.lt.s32.totalorder %s428_s22, %s428_s22 }
  0x3a   :  { %475 = vmatprep.subr.bf16.mxu0 %v530_v1  ;;  %506 = vmatprep.subr.bf16.mxu1 %v530_v1  ;;  %v533_v6 = vld [vmem:[#allocation6 + $0x20] sm:$0xff]   ;;  %v536_v9 = vld [vmem:[#allocation6 + $0x38] sm:$0xff]   ;;  %v539_v10 = vld [vmem:[#allocation3 + $0x8] sm:$0xff]   ;;  %p612_p10 = scmp.ne.s32.totalorder %s428_s22, %s611_s23  ;;  %p617_p12 = scmp.lt.s32.totalorder %s611_s23, %s611_s23 }
  0x3b   :  { %489 = vmatprep.mubr.bf16.mxu0 %v537_v4  ;;  %497 = vmatprep.mubr.bf16.mxu1 %v538_v5  ;;  %v540_v11 = vld [vmem:[#allocation3 + $0x28] sm:$0xff]   ;;  %v541_v12 = vld [vmem:[#allocation3 + $0x10] sm:$0xff]   ;;  %v543_v14 = vld [vmem:[#allocation3 + $0x18] sm:$0xff]  }
  0x3c   :  { %v542_v13 = vld [vmem:[#allocation3 + $0x30] sm:$0xff]   ;;  %v544_v15 = vld [vmem:[#allocation3 + $0x38] sm:$0xff]   ;;  %v456_v16 = vld [vmem:[#allocation8] ss:$0 sm:$0xff]  ;;  %p618_p13 = por %p617_p12, %p616_p11 }
  0x3d   :  { %476 = vmatpush3.bf16.msra.mxu0 %v530_v1  ;;  %514 = vmatpush3.bf16.msra.mxu1 %v530_v1 }
  0x3e   :  { %477 = vmatprep.subr.bf16.mxu0 %v531_v2  ;;  %507 = vmatprep.subr.bf16.mxu1 %v531_v2  ;;  %p619_p0 = pnand %p618_p13, %p612_p10 }
  0x41   :  { %478 = vmatpush3.bf16.msra.mxu0 %v531_v2  ;;  %515 = vmatpush3.bf16.msra.mxu1 %v531_v2 }
  0x42   :  { %479 = vmatprep.subr.bf16.mxu0 %v532_v3  ;;  %508 = vmatprep.subr.bf16.mxu1 %v532_v3 }
  0x45   :  { %480 = vmatpush3.bf16.msra.mxu0 %v532_v3  ;;  %516 = vmatpush3.bf16.msra.mxu1 %v532_v3 }
  0x46   :  { %481 = vmatprep.subr.bf16.mxu0 %v533_v6  ;;  %509 = vmatprep.subr.bf16.mxu1 %v533_v6 }
  0x49   :  { %482 = vmatpush3.bf16.msra.mxu0 %v533_v6  ;;  %517 = vmatpush3.bf16.msra.mxu1 %v533_v6 }
  0x4a   :  { %483 = vmatprep.subr.bf16.mxu0 %v534_v7  ;;  %510 = vmatprep.subr.bf16.mxu1 %v534_v7 }
  0x4d   :  { %484 = vmatpush3.bf16.msra.mxu0 %v534_v7  ;;  %518 = vmatpush3.bf16.msra.mxu1 %v534_v7 }
  0x4e   :  { %485 = vmatprep.subr.bf16.mxu0 %v535_v8  ;;  %511 = vmatprep.subr.bf16.mxu1 %v535_v8 }
  0x51   :  { %486 = vmatpush3.bf16.msra.mxu0 %v535_v8  ;;  %519 = vmatpush3.bf16.msra.mxu1 %v535_v8 }
  0x52   :  { %487 = vmatprep.subr.bf16.mxu0 %v536_v9  ;;  %512 = vmatprep.subr.bf16.mxu1 %v536_v9 }
  0x55   :  { %488 = vmatpush3.bf16.msra.mxu0 %v536_v9  ;;  %520 = vmatpush3.bf16.msra.mxu1 %v536_v9 }
  0x58   :  { %490 = vmatmul.mubr.bf16.vlgmr.msra.gmra.mrb[0].mxu0 %v539_v10  ;;  %498 = vmatmul.mubr.bf16.vlgmr.msra.gmra.mrb[0].mxu1 %v540_v11 }
  0x59   :  { %493 = vmatprep.mubr.bf16.mxu0 %v541_v12  ;;  %501 = vmatprep.mubr.bf16.mxu1 %v542_v13 }
  0x60   :  { %494 = vmatmul.mubr.bf16.gmra.mrb[4].mxu0 %v543_v14  ;;  %502 = vmatmul.mubr.bf16.gmra.mrb[4].mxu1 %v544_v15 }
 0x12b   :  { %v491_v17 = vpop.f32.mrb[0].mxu0  ;;  %v499_v18 = vpop.f32.mrb[0].mxu1 }
 0x12c   :  { %v376_v19 = vadd.f32 %v491_v17, %v456_v16  ;;  %v384_v20 = vadd.f32 %v499_v18, %v456_v16  ;;  %v253_v21 = vpop.f32.mrb[1].mxu0  ;;  %v285_v22 = vpop.f32.mrb[1].mxu1 }
 0x12d   :  { %v374_v23 = vadd.f32 %v456_v16, %v253_v21  ;;  %v382_v24 = vadd.f32 %v456_v16, %v285_v22  ;;  %v492_v25 = vpop.f32.mrb[2].mxu0  ;;  %v500_v26 = vpop.f32.mrb[2].mxu1 }
 0x12e   :  { %v392_v27 = vmax.f32 %v376_v19, 0.0  ;;  %v400_v28 = vmax.f32 %v384_v20, 0.0  ;;  %v377_v29 = vadd.f32 %v492_v25, %v456_v16  ;;  %v385_v30 = vadd.f32 %v500_v26, %v456_v16  ;;  %v256_v31 = vpop.f32.mrb[3].mxu0  ;;  %v288_v32 = vpop.f32.mrb[3].mxu1 }
 0x12f   :  { %v390_v33 = vmax.f32 %v374_v23, 0.0  ;;  %v398_v34 = vmax.f32 %v382_v24, 0.0  ;;  %v375_v35 = vadd.f32 %v456_v16, %v256_v31  ;;  %v383_v36 = vadd.f32 %v456_v16, %v288_v32 }
 0x130   :  { %408 = vst [vmem:[#allocation9 + $0x10] sm:$0xff] %v392_v27  ;;  %416 = vst [vmem:[#allocation9 + $0x50] sm:$0xff] %v400_v28  ;;  %v393_v37 = vmax.f32 %v377_v29, 0.0  ;;  %v401_v38 = vmax.f32 %v385_v30, 0.0 }
 0x131   :  { %406 = vst [vmem:[#allocation9] sm:$0xff] %v390_v33  ;;  %414 = vst [vmem:[#allocation9 + $0x40] sm:$0xff] %v398_v34  ;;  %v391_v39 = vmax.f32 %v375_v35, 0.0  ;;  %v399_v40 = vmax.f32 %v383_v36, 0.0 }
 0x132   :  { %409 = vst [vmem:[#allocation9 + $0x18] sm:$0xff] %v393_v37  ;;  %417 = vst [vmem:[#allocation9 + $0x58] sm:$0xff] %v401_v38 }
 0x133   :  { %407 = vst [vmem:[#allocation9 + $0x8] sm:$0xff] %v391_v39  ;;  %415 = vst [vmem:[#allocation9 + $0x48] sm:$0xff] %v399_v40  ;;  %v495_v41 = vpop.f32.mrb[4].mxu0  ;;  %v503_v42 = vpop.f32.mrb[4].mxu1 }
 0x134   :  { %v380_v43 = vadd.f32 %v495_v41, %v456_v16  ;;  %v388_v44 = vadd.f32 %v503_v42, %v456_v16  ;;  %v269_v45 = vpop.f32.mrb[5].mxu0  ;;  %v301_v46 = vpop.f32.mrb[5].mxu1 }
 0x135   :  { %v378_v47 = vadd.f32 %v456_v16, %v269_v45  ;;  %v386_v48 = vadd.f32 %v456_v16, %v301_v46  ;;  %v496_v49 = vpop.f32.mrb[6].mxu0  ;;  %v504_v50 = vpop.f32.mrb[6].mxu1 }
 0x136   :  { %v396_v51 = vmax.f32 %v380_v43, 0.0  ;;  %v404_v52 = vmax.f32 %v388_v44, 0.0  ;;  %v381_v53 = vadd.f32 %v496_v49, %v456_v16  ;;  %v389_v54 = vadd.f32 %v504_v50, %v456_v16  ;;  %v272_v55 = vpop.f32.mrb[7].mxu0  ;;  %v304_v56 = vpop.f32.mrb[7].mxu1 }
 0x137   :  { %v394_v57 = vmax.f32 %v378_v47, 0.0  ;;  %v402_v58 = vmax.f32 %v386_v48, 0.0  ;;  %v379_v59 = vadd.f32 %v456_v16, %v272_v55  ;;  %v387_v60 = vadd.f32 %v456_v16, %v304_v56 }
 0x138   :  { %412 = vst [vmem:[#allocation9 + $0x30] sm:$0xff] %v396_v51  ;;  %420 = vst [vmem:[#allocation9 + $0x70] sm:$0xff] %v404_v52  ;;  %v397_v61 = vmax.f32 %v381_v53, 0.0  ;;  %v405_v62 = vmax.f32 %v389_v54, 0.0 }
 0x139   :  { %410 = vst [vmem:[#allocation9 + $0x20] sm:$0xff] %v394_v57  ;;  %418 = vst [vmem:[#allocation9 + $0x60] sm:$0xff] %v402_v58  ;;  %v395_v63 = vmax.f32 %v379_v59, 0.0  ;;  %v403_v0 = vmax.f32 %v387_v60, 0.0 }
 0x13a   :  { %413 = vst [vmem:[#allocation9 + $0x38] sm:$0xff] %v397_v61  ;;  %421 = vst [vmem:[#allocation9 + $0x78] sm:$0xff] %v405_v62 }
 0x13b   :  { %411 = vst [vmem:[#allocation9 + $0x28] sm:$0xff] %v395_v63  ;;  %419 = vst [vmem:[#allocation9 + $0x68] sm:$0xff] %v403_v0 }
 0x13c   :  { %622 = shalt.err (!%p619_p0)
}
 0x13d   :  { %s623_s26 = scalar_lea.hbm %s725_s3, 2048 }
 0x13e   :  { %p624_p1 = scmp.ne.s32.totalorder %s725_s3, %s623_s26  ;;  %p627_p2 = scmp.lt.u32.totalorder %s623_s26, %s725_s3 }
 0x140   :  { %p629_p3 = pnand %p627_p2, %p624_p1 }
 0x142   :  { %632 = shalt.err (!%p629_p3)
}
 0x143   :  { %s645_s4 = smov 128   ;;  %s646_s5 = smov 8  }
 0x144   :  { %433 = dma.vmem_to_hbm [thread:$0]  %s428_s22, 2048, %s725_s3, [#allocation5], %s645_s4, %s645_s4, %s646_s5  }
 0x145   :  { %637 = dma.done.wait [#allocation5], 2048  }
 0x146   :  { %638 = vsyncadd [#allocation5], 4294965248 }
 0x147   :  { %437 = vsyncpa [#allocation4], 1 }
 0x148   :  { %438 = vsyncpa [#allocation7], 1 }
 0x149   :  { %439 = vsyncpa [#allocation5], 1 }

// kernel: _lambda_.31
= control target key start
LH: loop header
LB: loop body
LE: loop exit
PB: predicated region body
PF: predicated region fallthrough
CT: control target
= control target key end

     0   :  { %8 = vsyncpa [#allocation4], 0  ;;  %s1052_s0 = inlined_call_operand.hbm [shape: bf16[256,128], index: 0, kind: input, shape index: {}]   ;;  %s1053_s1 = inlined_call_operand.hbm [shape: bf16[128,128], index: 1, kind: input, shape index: {}]   ;;  %s1054_s2 = inlined_call_operand.hbm [shape: f32[1,128], index: 2, kind: input, shape index: {}]   ;;  %s1055_s3 = inlined_call_operand.hbm [shape: f32[256,128], index: 3, kind: output, shape index: {}]  }
   0x1   :  { %9 = vsyncpa [#allocation7], 0 }
   0x2   :  { %10 = vsyncpa [#allocation5], 0  ;;  %s935_s12 = smov [#allocation6]   ;;  %s936_s14 = smov [#allocation3]  }
   0x3   :  { %s28_s13 = sshll.u32 %s935_s12, 4  ;;  %s16_s15 = sshll.u32 %s936_s14, 4  ;;  %s29_s13 = int_to_ptr.vmem [resolvable:$true] %s28_s13  ;;  %s963_s15 = int_to_ptr.vmem [resolvable:$true] %s16_s15 }
   0x4   :  { %s841_s18 = scalar_lea.hbm %s1053_s1, 1024 }
   0x5   :  { %p842_p0 = scmp.ne.s32.totalorder %s1053_s1, %s841_s18  ;;  %p845_p1 = scmp.lt.u32.totalorder %s841_s18, %s1053_s1 }
   0x7   :  { %p847_p2 = pnand %p845_p1, %p842_p0 }
   0x9   :  { %850 = shalt.err (!%p847_p2)
}
   0xa   :  { %s851_s23 = scalar_lea.vmem %s29_s13, 1024  ;;  %p856_p4 = scmp.lt.s32.totalorder %s29_s13, %s29_s13 }
   0xb   :  { %p852_p3 = scmp.ne.s32.totalorder %s29_s13, %s851_s23  ;;  %p857_p5 = scmp.lt.s32.totalorder %s851_s23, %s851_s23 }
   0xd   :  { %p858_p6 = por %p857_p5, %p856_p4 }
   0xf   :  { %p859_p7 = pnand %p858_p6, %p852_p3 }
  0x11   :  { %862 = shalt.err (!%p859_p7)
}
  0x12   :  { %s937_s24 = smov 64   ;;  %s938_s25 = smov 4  }
  0x13   :  { %34 = dma.hbm_to_vmem [thread:$0]  %s1053_s1, 1024, %s29_s13, [#allocation7], %s937_s24, %s937_s24, %s938_s25  }
  0x14   :  { %s863_s30 = scalar_lea.hbm %s1052_s0, 2048 }
  0x15   :  { %p864_p8 = scmp.ne.s32.totalorder %s1052_s0, %s863_s30  ;;  %p867_p9 = scmp.lt.u32.totalorder %s863_s30, %s1052_s0 }
  0x17   :  { %p869_p10 = pnand %p867_p9, %p864_p8 }
  0x19   :  { %872 = shalt.err (!%p869_p10)
}
  0x1a   :  { %s873_s8 = scalar_lea.vmem %s963_s15, 2048  ;;  %p878_p12 = scmp.lt.s32.totalorder %s963_s15, %s963_s15 }
  0x1b   :  { %p874_p11 = scmp.ne.s32.totalorder %s963_s15, %s873_s8  ;;  %p879_p13 = scmp.lt.s32.totalorder %s873_s8, %s873_s8 }
  0x1d   :  { %p880_p0 = por %p879_p13, %p878_p12 }
  0x1f   :  { %p881_p1 = pnand %p880_p0, %p874_p11 }
  0x21   :  { %884 = shalt.err (!%p881_p1)
}
  0x22   :  { %22 = dma.hbm_to_vmem [thread:$0]  %s1052_s0, 2048, %s963_s15, [#allocation4], %s937_s24, %s937_s24, %s938_s25  }
  0x23   :  { %s939_s10 = smov [#allocation8]   ;;  %s885_s14 = scalar_lea.hbm %s1054_s2, 16 }
  0x24   :  { %s41_s11 = sshll.u32 %s939_s10, 4  ;;  %p886_p2 = scmp.ne.s32.totalorder %s1054_s2, %s885_s14  ;;  %s42_s11 = int_to_ptr.vmem [resolvable:$true] %s41_s11 }
  0x25   :  { %p889_p3 = scmp.lt.u32.totalorder %s885_s14, %s1054_s2 }
  0x27   :  { %p891_p4 = pnand %p889_p3, %p886_p2 }
  0x29   :  { %894 = shalt.err (!%p891_p4)
}
  0x2a   :  { %s895_s20 = scalar_lea.vmem %s42_s11, 16  ;;  %s899_s0 = scalar_lea.vmem %s42_s11, 32 }
  0x2b   :  { %p896_p5 = scmp.ne.s32.totalorder %s42_s11, %s895_s20  ;;  %p900_p6 = scmp.lt.s32.totalorder %s42_s11, %s42_s11 }
  0x2c   :  { %p901_p7 = scmp.lt.s32.totalorder %s899_s0, %s895_s20 }
  0x2e   :  { %p902_p8 = por %p901_p7, %p900_p6 }
  0x30   :  { %p903_p9 = pnand %p902_p8, %p896_p5 }
  0x32   :  { %906 = shalt.err (!%p903_p9)
}
  0x33   :  { %44 = dma.hbm_to_vmem [thread:$0]  %s1054_s2, 16, %s42_s11, [#allocation7]  }
  0x34   :  { %929 = dma.done.wait [#allocation4], 2048  }
  0x35   :  { %930 = vsyncadd [#allocation4], 4294965248 }
  0x36   :  { %931 = dma.done.wait [#allocation7], 1040  }
  0x37   :  { %932 = vsyncadd [#allocation7], 4294966256  ;;  %v817_v0 = vld [vmem:[#allocation6] sm:$0xff]   ;;  %v818_v1 = vld [vmem:[#allocation6 + $0x8] sm:$0xff]   ;;  %s940_s2 = smov [#allocation9]  }
  0x38   :  { %745 = vmatprep.subr.bf16.mxu0 %v817_v0  ;;  %793 = vmatprep.subr.bf16.mxu1 %v817_v0  ;;  %v819_v2 = vld [vmem:[#allocation6 + $0x10] sm:$0xff]   ;;  %v820_v3 = vld [vmem:[#allocation6 + $0x18] sm:$0xff]   ;;  %v825_v4 = vld [vmem:[#allocation3] sm:$0xff]   ;;  %s683_s22 = sshll.u32 %s940_s2, 4  ;;  %s684_s22 = int_to_ptr.vmem [resolvable:$true] %s683_s22 }
  0x39   :  { %746 = vmatpush3.bf16.msra.mxu0 %v817_v0  ;;  %801 = vmatpush3.bf16.msra.mxu1 %v817_v0  ;;  %v826_v5 = vld [vmem:[#allocation3 + $0x40] sm:$0xff]   ;;  %v822_v7 = vld [vmem:[#allocation6 + $0x28] sm:$0xff]   ;;  %v823_v8 = vld [vmem:[#allocation6 + $0x30] sm:$0xff]   ;;  %s907_s23 = scalar_lea.vmem %s684_s22, 4096  ;;  %p912_p11 = scmp.lt.s32.totalorder %s684_s22, %s684_s22 }
  0x3a   :  { %747 = vmatprep.subr.bf16.mxu0 %v818_v1  ;;  %794 = vmatprep.subr.bf16.mxu1 %v818_v1  ;;  %v821_v6 = vld [vmem:[#allocation6 + $0x20] sm:$0xff]   ;;  %v824_v9 = vld [vmem:[#allocation6 + $0x38] sm:$0xff]   ;;  %v827_v10 = vld [vmem:[#allocation3 + $0x8] sm:$0xff]   ;;  %p908_p10 = scmp.ne.s32.totalorder %s684_s22, %s907_s23  ;;  %p913_p12 = scmp.lt.s32.totalorder %s907_s23, %s907_s23 }
  0x3b   :  { %761 = vmatprep.mubr.bf16.mxu0 %v825_v4  ;;  %777 = vmatprep.mubr.bf16.mxu1 %v826_v5  ;;  %v828_v11 = vld [vmem:[#allocation3 + $0x48] sm:$0xff]   ;;  %v829_v12 = vld [vmem:[#allocation3 + $0x10] sm:$0xff]   ;;  %v831_v14 = vld [vmem:[#allocation3 + $0x18] sm:$0xff]  }
  0x3c   :  { %v830_v13 = vld [vmem:[#allocation3 + $0x50] sm:$0xff]   ;;  %v832_v15 = vld [vmem:[#allocation3 + $0x58] sm:$0xff]   ;;  %v833_v16 = vld [vmem:[#allocation3 + $0x20] sm:$0xff]   ;;  %p914_p13 = por %p913_p12, %p912_p11 }
  0x3d   :  { %748 = vmatpush3.bf16.msra.mxu0 %v818_v1  ;;  %802 = vmatpush3.bf16.msra.mxu1 %v818_v1  ;;  %v834_v17 = vld [vmem:[#allocation3 + $0x60] sm:$0xff]   ;;  %v835_v18 = vld [vmem:[#allocation3 + $0x28] sm:$0xff]   ;;  %v837_v20 = vld [vmem:[#allocation3 + $0x30] sm:$0xff]  }
  0x3e   :  { %749 = vmatprep.subr.bf16.mxu0 %v819_v2  ;;  %795 = vmatprep.subr.bf16.mxu1 %v819_v2  ;;  %v836_v19 = vld [vmem:[#allocation3 + $0x68] sm:$0xff]   ;;  %v838_v21 = vld [vmem:[#allocation3 + $0x70] sm:$0xff]   ;;  %v839_v22 = vld [vmem:[#allocation3 + $0x38] sm:$0xff]   ;;  %p915_p0 = pnand %p914_p13, %p908_p10 }
  0x3f   :  { %v840_v23 = vld [vmem:[#allocation3 + $0x78] sm:$0xff]   ;;  %v1006_v24 = vld [vmem:[#allocation8] ss:$0 sm:$0xff] }
  0x41   :  { %750 = vmatpush3.bf16.msra.mxu0 %v819_v2  ;;  %803 = vmatpush3.bf16.msra.mxu1 %v819_v2 }
  0x42   :  { %751 = vmatprep.subr.bf16.mxu0 %v820_v3  ;;  %796 = vmatprep.subr.bf16.mxu1 %v820_v3 }
  0x45   :  { %752 = vmatpush3.bf16.msra.mxu0 %v820_v3  ;;  %804 = vmatpush3.bf16.msra.mxu1 %v820_v3 }
  0x46   :  { %753 = vmatprep.subr.bf16.mxu0 %v821_v6  ;;  %797 = vmatprep.subr.bf16.mxu1 %v821_v6 }
  0x49   :  { %754 = vmatpush3.bf16.msra.mxu0 %v821_v6  ;;  %805 = vmatpush3.bf16.msra.mxu1 %v821_v6 }
  0x4a   :  { %755 = vmatprep.subr.bf16.mxu0 %v822_v7  ;;  %798 = vmatprep.subr.bf16.mxu1 %v822_v7 }
  0x4d   :  { %756 = vmatpush3.bf16.msra.mxu0 %v822_v7  ;;  %806 = vmatpush3.bf16.msra.mxu1 %v822_v7 }
  0x4e   :  { %757 = vmatprep.subr.bf16.mxu0 %v823_v8  ;;  %799 = vmatprep.subr.bf16.mxu1 %v823_v8 }
  0x51   :  { %758 = vmatpush3.bf16.msra.mxu0 %v823_v8  ;;  %807 = vmatpush3.bf16.msra.mxu1 %v823_v8 }
  0x52   :  { %759 = vmatprep.subr.bf16.mxu0 %v824_v9  ;;  %800 = vmatprep.subr.bf16.mxu1 %v824_v9 }
  0x55   :  { %760 = vmatpush3.bf16.msra.mxu0 %v824_v9  ;;  %808 = vmatpush3.bf16.msra.mxu1 %v824_v9 }
  0x58   :  { %762 = vmatmul.mubr.bf16.vlgmr.msra.gmra.mrb[0].mxu0 %v827_v10  ;;  %778 = vmatmul.mubr.bf16.vlgmr.msra.gmra.mrb[0].mxu1 %v828_v11 }
  0x59   :  { %765 = vmatprep.mubr.bf16.mxu0 %v829_v12  ;;  %781 = vmatprep.mubr.bf16.mxu1 %v830_v13 }
  0x60   :  { %766 = vmatmul.mubr.bf16.gmra.mrb[4].mxu0 %v831_v14  ;;  %782 = vmatmul.mubr.bf16.gmra.mrb[4].mxu1 %v832_v15 }
  0x61   :  { %769 = vmatprep.mubr.bf16.mxu0 %v833_v16  ;;  %785 = vmatprep.mubr.bf16.mxu1 %v834_v17 }
  0x68   :  { %770 = vmatmul.mubr.bf16.gmra.mrb[8].mxu0 %v835_v18  ;;  %786 = vmatmul.mubr.bf16.gmra.mrb[8].mxu1 %v836_v19 }
  0x69   :  { %773 = vmatprep.mubr.bf16.mxu0 %v837_v20  ;;  %789 = vmatprep.mubr.bf16.mxu1 %v838_v21 }
  0x70   :  { %774 = vmatmul.mubr.bf16.gmra.mrb[12].mxu0 %v839_v22  ;;  %790 = vmatmul.mubr.bf16.gmra.mrb[12].mxu1 %v840_v23 }
 0x12b   :  { %v763_v25 = vpop.f32.mrb[0].mxu0  ;;  %v779_v26 = vpop.f32.mrb[0].mxu1 }
 0x12c   :  { %v584_v27 = vadd.f32 %v763_v25, %v1006_v24  ;;  %v600_v28 = vadd.f32 %v779_v26, %v1006_v24  ;;  %v349_v29 = vpop.f32.mrb[1].mxu0  ;;  %v413_v30 = vpop.f32.mrb[1].mxu1 }
 0x12d   :  { %v582_v31 = vadd.f32 %v1006_v24, %v349_v29  ;;  %v598_v32 = vadd.f32 %v1006_v24, %v413_v30  ;;  %v764_v33 = vpop.f32.mrb[2].mxu0  ;;  %v780_v34 = vpop.f32.mrb[2].mxu1 }
 0x12e   :  { %v616_v35 = vmax.f32 %v584_v27, 0.0  ;;  %v632_v36 = vmax.f32 %v600_v28, 0.0  ;;  %v585_v37 = vadd.f32 %v764_v33, %v1006_v24  ;;  %v601_v38 = vadd.f32 %v780_v34, %v1006_v24  ;;  %v352_v39 = vpop.f32.mrb[3].mxu0  ;;  %v416_v40 = vpop.f32.mrb[3].mxu1 }
 0x12f   :  { %v614_v41 = vmax.f32 %v582_v31, 0.0  ;;  %v630_v42 = vmax.f32 %v598_v32, 0.0  ;;  %v583_v43 = vadd.f32 %v1006_v24, %v352_v39  ;;  %v599_v44 = vadd.f32 %v1006_v24, %v416_v40 }
 0x130   :  { %648 = vst [vmem:[#allocation9 + $0x10] sm:$0xff] %v616_v35  ;;  %664 = vst [vmem:[#allocation9 + $0x90] sm:$0xff] %v632_v36  ;;  %v617_v45 = vmax.f32 %v585_v37, 0.0  ;;  %v633_v46 = vmax.f32 %v601_v38, 0.0 }
 0x131   :  { %646 = vst [vmem:[#allocation9] sm:$0xff] %v614_v41  ;;  %662 = vst [vmem:[#allocation9 + $0x80] sm:$0xff] %v630_v42  ;;  %v615_v47 = vmax.f32 %v583_v43, 0.0  ;;  %v631_v48 = vmax.f32 %v599_v44, 0.0 }
 0x132   :  { %649 = vst [vmem:[#allocation9 + $0x18] sm:$0xff] %v617_v45  ;;  %665 = vst [vmem:[#allocation9 + $0x98] sm:$0xff] %v633_v46 }
 0x133   :  { %647 = vst [vmem:[#allocation9 + $0x8] sm:$0xff] %v615_v47  ;;  %663 = vst [vmem:[#allocation9 + $0x88] sm:$0xff] %v631_v48  ;;  %v767_v49 = vpop.f32.mrb[4].mxu0  ;;  %v783_v50 = vpop.f32.mrb[4].mxu1 }
 0x134   :  { %v588_v51 = vadd.f32 %v767_v49, %v1006_v24  ;;  %v604_v52 = vadd.f32 %v783_v50, %v1006_v24  ;;  %v365_v53 = vpop.f32.mrb[5].mxu0  ;;  %v429_v54 = vpop.f32.mrb[5].mxu1 }
 0x135   :  { %v586_v55 = vadd.f32 %v1006_v24, %v365_v53  ;;  %v602_v56 = vadd.f32 %v1006_v24, %v429_v54  ;;  %v768_v57 = vpop.f32.mrb[6].mxu0  ;;  %v784_v58 = vpop.f32.mrb[6].mxu1 }
 0x136   :  { %v620_v59 = vmax.f32 %v588_v51, 0.0  ;;  %v636_v60 = vmax.f32 %v604_v52, 0.0  ;;  %v589_v61 = vadd.f32 %v768_v57, %v1006_v24  ;;  %v605_v62 = vadd.f32 %v784_v58, %v1006_v24  ;;  %v368_v63 = vpop.f32.mrb[7].mxu0  ;;  %v432_v0 = vpop.f32.mrb[7].mxu1 }
 0x137   :  { %v618_v1 = vmax.f32 %v586_v55, 0.0  ;;  %v634_v2 = vmax.f32 %v602_v56, 0.0  ;;  %v587_v3 = vadd.f32 %v1006_v24, %v368_v63  ;;  %v603_v4 = vadd.f32 %v1006_v24, %v432_v0 }
 0x138   :  { %652 = vst [vmem:[#allocation9 + $0x30] sm:$0xff] %v620_v59  ;;  %668 = vst [vmem:[#allocation9 + $0xb0] sm:$0xff] %v636_v60  ;;  %v621_v5 = vmax.f32 %v589_v61, 0.0  ;;  %v637_v6 = vmax.f32 %v605_v62, 0.0 }
 0x139   :  { %650 = vst [vmem:[#allocation9 + $0x20] sm:$0xff] %v618_v1  ;;  %666 = vst [vmem:[#allocation9 + $0xa0] sm:$0xff] %v634_v2  ;;  %v619_v7 = vmax.f32 %v587_v3, 0.0  ;;  %v635_v8 = vmax.f32 %v603_v4, 0.0 }
 0x13a   :  { %653 = vst [vmem:[#allocation9 + $0x38] sm:$0xff] %v621_v5  ;;  %669 = vst [vmem:[#allocation9 + $0xb8] sm:$0xff] %v637_v6 }
 0x13b   :  { %651 = vst [vmem:[#allocation9 + $0x28] sm:$0xff] %v619_v7  ;;  %667 = vst [vmem:[#allocation9 + $0xa8] sm:$0xff] %v635_v8  ;;  %v771_v9 = vpop.f32.mrb[8].mxu0  ;;  %v787_v10 = vpop.f32.mrb[8].mxu1 }
 0x13c   :  { %v592_v11 = vadd.f32 %v771_v9, %v1006_v24  ;;  %v608_v12 = vadd.f32 %v787_v10, %v1006_v24  ;;  %v381_v13 = vpop.f32.mrb[9].mxu0  ;;  %v445_v14 = vpop.f32.mrb[9].mxu1 }
 0x13d   :  { %v590_v15 = vadd.f32 %v1006_v24, %v381_v13  ;;  %v606_v16 = vadd.f32 %v1006_v24, %v445_v14  ;;  %v772_v17 = vpop.f32.mrb[10].mxu0  ;;  %v788_v18 = vpop.f32.mrb[10].mxu1 }
 0x13e   :  { %v624_v19 = vmax.f32 %v592_v11, 0.0  ;;  %v640_v20 = vmax.f32 %v608_v12, 0.0  ;;  %v593_v21 = vadd.f32 %v772_v17, %v1006_v24  ;;  %v609_v22 = vadd.f32 %v788_v18, %v1006_v24  ;;  %v384_v23 = vpop.f32.mrb[11].mxu0  ;;  %v448_v25 = vpop.f32.mrb[11].mxu1 }
 0x13f   :  { %v622_v26 = vmax.f32 %v590_v15, 0.0  ;;  %v638_v27 = vmax.f32 %v606_v16, 0.0  ;;  %v591_v28 = vadd.f32 %v1006_v24, %v384_v23  ;;  %v607_v29 = vadd.f32 %v1006_v24, %v448_v25 }
 0x140   :  { %656 = vst [vmem:[#allocation9 + $0x50] sm:$0xff] %v624_v19  ;;  %672 = vst [vmem:[#allocation9 + $0xd0] sm:$0xff] %v640_v20  ;;  %v625_v30 = vmax.f32 %v593_v21, 0.0  ;;  %v641_v31 = vmax.f32 %v609_v22, 0.0 }
 0x141   :  { %654 = vst [vmem:[#allocation9 + $0x40] sm:$0xff] %v622_v26  ;;  %670 = vst [vmem:[#allocation9 + $0xc0] sm:$0xff] %v638_v27  ;;  %v623_v32 = vmax.f32 %v591_v28, 0.0  ;;  %v639_v33 = vmax.f32 %v607_v29, 0.0 }
 0x142   :  { %657 = vst [vmem:[#allocation9 + $0x58] sm:$0xff] %v625_v30  ;;  %673 = vst [vmem:[#allocation9 + $0xd8] sm:$0xff] %v641_v31 }
 0x143   :  { %655 = vst [vmem:[#allocation9 + $0x48] sm:$0xff] %v623_v32  ;;  %671 = vst [vmem:[#allocation9 + $0xc8] sm:$0xff] %v639_v33  ;;  %v775_v34 = vpop.f32.mrb[12].mxu0  ;;  %v791_v35 = vpop.f32.mrb[12].mxu1 }
 0x144   :  { %v596_v36 = vadd.f32 %v775_v34, %v1006_v24  ;;  %v612_v37 = vadd.f32 %v791_v35, %v1006_v24  ;;  %v397_v38 = vpop.f32.mrb[13].mxu0  ;;  %v461_v39 = vpop.f32.mrb[13].mxu1 }
 0x145   :  { %v594_v40 = vadd.f32 %v1006_v24, %v397_v38  ;;  %v610_v41 = vadd.f32 %v1006_v24, %v461_v39  ;;  %v776_v42 = vpop.f32.mrb[14].mxu0  ;;  %v792_v43 = vpop.f32.mrb[14].mxu1 }
 0x146   :  { %v628_v44 = vmax.f32 %v596_v36, 0.0  ;;  %v644_v45 = vmax.f32 %v612_v37, 0.0  ;;  %v597_v46 = vadd.f32 %v776_v42, %v1006_v24  ;;  %v613_v47 = vadd.f32 %v792_v43, %v1006_v24  ;;  %v400_v48 = vpop.f32.mrb[15].mxu0  ;;  %v464_v49 = vpop.f32.mrb[15].mxu1 }
 0x147   :  { %v626_v50 = vmax.f32 %v594_v40, 0.0  ;;  %v642_v51 = vmax.f32 %v610_v41, 0.0  ;;  %v595_v52 = vadd.f32 %v1006_v24, %v400_v48  ;;  %v611_v53 = vadd.f32 %v1006_v24, %v464_v49 }
 0x148   :  { %660 = vst [vmem:[#allocation9 + $0x70] sm:$0xff] %v628_v44  ;;  %676 = vst [vmem:[#allocation9 + $0xf0] sm:$0xff] %v644_v45  ;;  %v629_v54 = vmax.f32 %v597_v46, 0.0  ;;  %v645_v55 = vmax.f32 %v613_v47, 0.0 }
 0x149   :  { %658 = vst [vmem:[#allocation9 + $0x60] sm:$0xff] %v626_v50  ;;  %674 = vst [vmem:[#allocation9 + $0xe0] sm:$0xff] %v642_v51  ;;  %v627_v56 = vmax.f32 %v595_v52, 0.0  ;;  %v643_v57 = vmax.f32 %v611_v53, 0.0 }
 0x14a   :  { %661 = vst [vmem:[#allocation9 + $0x78] sm:$0xff] %v629_v54  ;;  %677 = vst [vmem:[#allocation9 + $0xf8] sm:$0xff] %v645_v55 }
 0x14b   :  { %659 = vst [vmem:[#allocation9 + $0x68] sm:$0xff] %v627_v56  ;;  %675 = vst [vmem:[#allocation9 + $0xe8] sm:$0xff] %v643_v57 }
 0x14c   :  { %918 = shalt.err (!%p915_p0)
}
 0x14d   :  { %s919_s26 = scalar_lea.hbm %s1055_s3, 4096 }
 0x14e   :  { %p920_p1 = scmp.ne.s32.totalorder %s1055_s3, %s919_s26  ;;  %p923_p2 = scmp.lt.u32.totalorder %s919_s26, %s1055_s3 }
 0x150   :  { %p925_p3 = pnand %p923_p2, %p920_p1 }
 0x152   :  { %928 = shalt.err (!%p925_p3)
}
 0x153   :  { %s941_s4 = smov 128   ;;  %s942_s5 = smov 8  }
 0x154   :  { %689 = dma.vmem_to_hbm [thread:$0]  %s684_s22, 4096, %s1055_s3, [#allocation5], %s941_s4, %s941_s4, %s942_s5  }
 0x155   :  { %933 = dma.done.wait [#allocation5], 4096  }
 0x156   :  { %934 = vsyncadd [#allocation5], 4294963200 }
 0x157   :  { %693 = vsyncpa [#allocation4], 1 }
 0x158   :  { %694 = vsyncpa [#allocation7], 1 }
 0x159   :  { %695 = vsyncpa [#allocation5], 1 }

// kernel: _lambda_.32
= control target key start
LH: loop header
LB: loop body
LE: loop exit
PB: predicated region body
PF: predicated region fallthrough
CT: control target
= control target key end

     0   :  { %8 = vsyncpa [#allocation4], 0  ;;  %s591_s0 = inlined_call_operand.hbm [shape: bf16[32,256], index: 0, kind: input, shape index: {}]   ;;  %s592_s1 = inlined_call_operand.hbm [shape: bf16[256,128], index: 1, kind: input, shape index: {}]   ;;  %s593_s2 = inlined_call_operand.hbm [shape: f32[1,128], index: 2, kind: input, shape index: {}]   ;;  %s594_s3 = inlined_call_operand.hbm [shape: f32[32,128], index: 3, kind: output, shape index: {}]  }
   0x1   :  { %9 = vsyncpa [#allocation7], 0 }
   0x2   :  { %10 = vsyncpa [#allocation5], 0  ;;  %s509_s12 = smov [#allocation6]   ;;  %s415_s16 = scalar_lea.hbm %s592_s1, 2048 }
   0x3   :  { %s28_s13 = sshll.u32 %s509_s12, 4  ;;  %p416_p0 = scmp.ne.s32.totalorder %s592_s1, %s415_s16  ;;  %s29_s13 = int_to_ptr.vmem [resolvable:$true] %s28_s13 }
   0x4   :  { %p419_p1 = scmp.lt.u32.totalorder %s415_s16, %s592_s1 }
   0x6   :  { %p421_p2 = pnand %p419_p1, %p416_p0 }
   0x8   :  { %424 = shalt.err (!%p421_p2)
}
   0x9   :  { %s425_s21 = scalar_lea.vmem %s29_s13, 2048  ;;  %p430_p4 = scmp.lt.s32.totalorder %s29_s13, %s29_s13 }
   0xa   :  { %p426_p3 = scmp.ne.s32.totalorder %s29_s13, %s425_s21  ;;  %p431_p5 = scmp.lt.s32.totalorder %s425_s21, %s425_s21 }
   0xc   :  { %p432_p6 = por %p431_p5, %p430_p4 }
   0xe   :  { %p433_p7 = pnand %p432_p6, %p426_p3 }
  0x10   :  { %436 = shalt.err (!%p433_p7)
}
  0x11   :  { %s510_s22 = smov 64   ;;  %s511_s23 = smov 4  }
  0x12   :  { %34 = dma.hbm_to_vmem [thread:$0]  %s592_s1, 2048, %s29_s13, [#allocation7], %s510_s22, %s510_s22, %s511_s23  }
  0x13   :  { %s512_s26 = smov [#allocation3]   ;;  %s437_s30 = scalar_lea.hbm %s591_s0, 512 }
  0x14   :  { %s16_s27 = sshll.u32 %s512_s26, 4  ;;  %p438_p8 = scmp.ne.s32.totalorder %s591_s0, %s437_s30  ;;  %s17_s27 = int_to_ptr.vmem [resolvable:$true] %s16_s27 }
  0x15   :  { %p441_p9 = scmp.lt.u32.totalorder %s437_s30, %s591_s0 }
  0x17   :  { %p443_p10 = pnand %p441_p9, %p438_p8 }
  0x19   :  { %446 = shalt.err (!%p443_p10)
}
  0x1a   :  { %s447_s8 = scalar_lea.vmem %s17_s27, 512  ;;  %p452_p12 = scmp.lt.s32.totalorder %s17_s27, %s17_s27 }
  0x1b   :  { %p448_p11 = scmp.ne.s32.totalorder %s17_s27, %s447_s8  ;;  %p453_p13 = scmp.lt.s32.totalorder %s447_s8, %s447_s8 }
  0x1d   :  { %p454_p0 = por %p453_p13, %p452_p12 }
  0x1f   :  { %p455_p1 = pnand %p454_p0, %p448_p11 }
  0x21   :  { %458 = shalt.err (!%p455_p1)
}
  0x22   :  { %s513_s1 = smov 128   ;;  %s514_s9 = smov 8  }
  0x23   :  { %22 = dma.hbm_to_vmem [thread:$0]  %s591_s0, 512, %s17_s27, [#allocation4], %s513_s1, %s513_s1, %s514_s9  }
  0x24   :  { %s515_s12 = smov [#allocation8]   ;;  %s459_s16 = scalar_lea.hbm %s593_s2, 16 }
  0x25   :  { %s41_s13 = sshll.u32 %s515_s12, 4  ;;  %p460_p2 = scmp.ne.s32.totalorder %s593_s2, %s459_s16  ;;  %s42_s13 = int_to_ptr.vmem [resolvable:$true] %s41_s13 }
  0x26   :  { %p463_p3 = scmp.lt.u32.totalorder %s459_s16, %s593_s2 }
  0x28   :  { %p465_p4 = pnand %p463_p3, %p460_p2 }
  0x2a   :  { %468 = shalt.err (!%p465_p4)
}
  0x2b   :  { %s469_s21 = scalar_lea.vmem %s42_s13, 16  ;;  %s473_s0 = scalar_lea.vmem %s42_s13, 32 }
  0x2c   :  { %p470_p5 = scmp.ne.s32.totalorder %s42_s13, %s469_s21  ;;  %p474_p6 = scmp.lt.s32.totalorder %s42_s13, %s42_s13 }
  0x2d   :  { %p475_p7 = scmp.lt.s32.totalorder %s473_s0, %s469_s21 }
  0x2f   :  { %p476_p8 = por %p475_p7, %p474_p6 }
  0x31   :  { %p477_p9 = pnand %p476_p8, %p470_p5 }
  0x33   :  { %480 = shalt.err (!%p477_p9)
}
  0x34   :  { %44 = dma.hbm_to_vmem [thread:$0]  %s593_s2, 16, %s42_s13, [#allocation7]  }
  0x35   :  { %503 = dma.done.wait [#allocation4], 512  }
  0x36   :  { %504 = vsyncadd [#allocation4], 4294966784 }
  0x37   :  { %505 = dma.done.wait [#allocation7], 2064  }
  0x38   :  { %506 = vsyncadd [#allocation7], 4294965232  ;;  %v393_v0 = vld [vmem:[#allocation6 + $0x40] sm:$0xff]   ;;  %v395_v2 = vld [vmem:[#allocation6 + $0x48] sm:$0xff]   ;;  %s516_s2 = smov [#allocation9]  }
  0x39   :  { %v394_v1 = vld [vmem:[#allocation6] sm:$0xff]   ;;  %341 = vmatprep.subr.bf16.mxu0 %v393_v0  ;;  %369 = vmatprep.subr.bf16.mxu1 %v393_v0  ;;  %v396_v3 = vld [vmem:[#allocation6 + $0x8] sm:$0xff]   ;;  %v397_v4 = vld [vmem:[#allocation6 + $0x50] sm:$0xff]   ;;  %s307_s24 = sshll.u32 %s516_s2, 4  ;;  %s308_s24 = int_to_ptr.vmem [resolvable:$true] %s307_s24 }
  0x3a   :  { %342 = vmatpush3.bf16.msra.mxu0 %v394_v1  ;;  %377 = vmatpush3.bf16.msra.mxu1 %v394_v1  ;;  %v398_v5 = vld [vmem:[#allocation6 + $0x10] sm:$0xff]   ;;  %v399_v6 = vld [vmem:[#allocation6 + $0x58] sm:$0xff]   ;;  %v401_v8 = vld [vmem:[#allocation6 + $0x60] sm:$0xff]   ;;  %s481_s25 = scalar_lea.vmem %s308_s24, 512  ;;  %p486_p11 = scmp.lt.s32.totalorder %s308_s24, %s308_s24 }
  0x3b   :  { %343 = vmatprep.subr.bf16.mxu0 %v395_v2  ;;  %370 = vmatprep.subr.bf16.mxu1 %v395_v2  ;;  %v400_v7 = vld [vmem:[#allocation6 + $0x18] sm:$0xff]   ;;  %v402_v9 = vld [vmem:[#allocation6 + $0x20] sm:$0xff]   ;;  %v403_v10 = vld [vmem:[#allocation6 + $0x68] sm:$0xff]   ;;  %p482_p10 = scmp.ne.s32.totalorder %s308_s24, %s481_s25  ;;  %p487_p12 = scmp.lt.s32.totalorder %s481_s25, %s481_s25 }
  0x3c   :  { %v411_v11 = vld [vmem:[#allocation3 + $0x4] ss:$8 sps:$4 sm:$0xff]   ;;  %v414_v12 = vld [vmem:[#allocation3 + $0x14] ss:$8 sps:$4 sm:$0xff]   ;;  %v409_v18 = vld [vmem:[#allocation3] ss:$8 sps:$4 sm:$0xff]  }
  0x3d   :  { %v404_v13 = vld [vmem:[#allocation6 + $0x28] sm:$0xff]   ;;  %v405_v14 = vld [vmem:[#allocation6 + $0x70] sm:$0xff]   ;;  %251 = vmatprep.mubr.bf16.mxu0 %v411_v11  ;;  %259 = vmatprep.mubr.bf16.mxu1 %v414_v12  ;;  %v407_v16 = vld [vmem:[#allocation6 + $0x78] sm:$0xff]   ;;  %p488_p13 = por %p487_p12, %p486_p11 }
  0x3e   :  { %344 = vmatpush3.bf16.msra.mxu0 %v396_v3  ;;  %378 = vmatpush3.bf16.msra.mxu1 %v396_v3  ;;  %v406_v15 = vld [vmem:[#allocation6 + $0x30] sm:$0xff]   ;;  %v408_v17 = vld [vmem:[#allocation6 + $0x38] sm:$0xff]   ;;  %v340_v23 = vld [vmem:[#allocation8] ss:$0 sm:$0xff] }
  0x3f   :  { %345 = vmatprep.subr.bf16.mxu0 %v397_v4  ;;  %371 = vmatprep.subr.bf16.mxu1 %v397_v4  ;;  %v412_v19 = vld [vmem:[#allocation3 + $0x10] ss:$8 sps:$4 sm:$0xff]   ;;  %p489_p0 = pnand %p488_p13, %p482_p10 }
  0x42   :  { %346 = vmatpush3.bf16.msra.mxu0 %v398_v5  ;;  %379 = vmatpush3.bf16.msra.mxu1 %v398_v5 }
  0x43   :  { %347 = vmatprep.subr.bf16.mxu0 %v399_v6  ;;  %372 = vmatprep.subr.bf16.mxu1 %v399_v6 }
  0x46   :  { %348 = vmatpush3.bf16.msra.mxu0 %v400_v7  ;;  %380 = vmatpush3.bf16.msra.mxu1 %v400_v7 }
  0x47   :  { %349 = vmatprep.subr.bf16.mxu0 %v401_v8  ;;  %373 = vmatprep.subr.bf16.mxu1 %v401_v8 }
  0x4a   :  { %350 = vmatpush3.bf16.msra.mxu0 %v402_v9  ;;  %381 = vmatpush3.bf16.msra.mxu1 %v402_v9 }
  0x4b   :  { %351 = vmatprep.subr.bf16.mxu0 %v403_v10  ;;  %374 = vmatprep.subr.bf16.mxu1 %v403_v10 }
  0x4e   :  { %352 = vmatpush3.bf16.msra.mxu0 %v404_v13  ;;  %382 = vmatpush3.bf16.msra.mxu1 %v404_v13 }
  0x4f   :  { %353 = vmatprep.subr.bf16.mxu0 %v405_v14  ;;  %375 = vmatprep.subr.bf16.mxu1 %v405_v14 }
  0x52   :  { %354 = vmatpush3.bf16.msra.mxu0 %v406_v15  ;;  %383 = vmatpush3.bf16.msra.mxu1 %v406_v15 }
  0x53   :  { %355 = vmatprep.subr.bf16.mxu0 %v407_v16  ;;  %376 = vmatprep.subr.bf16.mxu1 %v407_v16 }
  0x56   :  { %356 = vmatpush3.bf16.msra.mxu0 %v408_v17  ;;  %384 = vmatpush3.bf16.msra.mxu1 %v408_v17 }
  0x59   :  { %252 = vmatmul.mubr.bf16.vlgmr.msra.gmra.mrb[0].mxu0 %v409_v18  ;;  %260 = vmatmul.mubr.bf16.vlgmr.msra.gmra.mrb[0].mxu1 %v412_v19 }
 0x12c   :  { %v357_v20 = vpop.f32.mrb[0].mxu0  ;;  %v363_v21 = vpop.f32.mrb[0].mxu1 }
 0x12d   :  { %v358_v22 = vpop.f32.mrb[1].mxu0  ;;  %v364_v24 = vpop.f32.mrb[1].mxu1 }
 0x12e   :  { %v359_v25 = vadd.f32 %v358_v22, %v357_v20  ;;  %v365_v26 = vadd.f32 %v364_v24, %v363_v21  ;;  %v360_v27 = vpop.f32.mrb[2].mxu0  ;;  %v366_v28 = vpop.f32.mrb[2].mxu1 }
 0x12f   :  { %v361_v29 = vpop.f32.mrb[3].mxu0  ;;  %v367_v30 = vpop.f32.mrb[3].mxu1 }
 0x130   :  { %v290_v31 = vadd.f32 %v359_v25, %v340_v23  ;;  %v292_v32 = vadd.f32 %v365_v26, %v340_v23  ;;  %v362_v33 = vadd.f32 %v361_v29, %v360_v27  ;;  %v368_v34 = vadd.f32 %v367_v30, %v366_v28 }
 0x132   :  { %v294_v35 = vmax.f32 %v290_v31, 0.0  ;;  %v296_v36 = vmax.f32 %v292_v32, 0.0  ;;  %v291_v37 = vadd.f32 %v362_v33, %v340_v23  ;;  %v293_v38 = vadd.f32 %v368_v34, %v340_v23 }
 0x134   :  { %298 = vst [vmem:[#allocation9] sm:$0xff] %v294_v35  ;;  %300 = vst [vmem:[#allocation9 + $0x10] sm:$0xff] %v296_v36  ;;  %v295_v39 = vmax.f32 %v291_v37, 0.0  ;;  %v297_v40 = vmax.f32 %v293_v38, 0.0 }
 0x136   :  { %299 = vst [vmem:[#allocation9 + $0x8] sm:$0xff] %v295_v39  ;;  %301 = vst [vmem:[#allocation9 + $0x18] sm:$0xff] %v297_v40 }
 0x137   :  { %492 = shalt.err (!%p489_p0)
}
 0x138   :  { %s493_s28 = scalar_lea.hbm %s594_s3, 512 }
 0x139   :  { %p494_p1 = scmp.ne.s32.totalorder %s594_s3, %s493_s28  ;;  %p497_p2 = scmp.lt.u32.totalorder %s493_s28, %s594_s3 }
 0x13b   :  { %p499_p3 = pnand %p497_p2, %p494_p1 }
 0x13d   :  { %502 = shalt.err (!%p499_p3)
}
 0x13e   :  { %313 = dma.vmem_to_hbm [thread:$0]  %s308_s24, 512, %s594_s3, [#allocation5], %s513_s1, %s513_s1, %s514_s9  }
 0x13f   :  { %507 = dma.done.wait [#allocation5], 512  }
 0x140   :  { %508 = vsyncadd [#allocation5], 4294966784 }
 0x141   :  { %317 = vsyncpa [#allocation4], 1 }
 0x142   :  { %318 = vsyncpa [#allocation7], 1 }
 0x143   :  { %319 = vsyncpa [#allocation5], 1 }

// kernel: _lambda_.27
= control target key start
LH: loop header
LB: loop body
LE: loop exit
PB: predicated region body
PF: predicated region fallthrough
CT: control target
= control target key end

     0   :  { %8 = vsyncpa [#allocation4], 0  ;;  %s453_s0 = inlined_call_operand.hbm [shape: bf16[16,128], index: 0, kind: input, shape index: {}]   ;;  %s454_s1 = inlined_call_operand.hbm [shape: bf16[128,128], index: 1, kind: input, shape index: {}]   ;;  %s455_s2 = inlined_call_operand.hbm [shape: f32[1,128], index: 2, kind: input, shape index: {}]   ;;  %s456_s3 = inlined_call_operand.hbm [shape: f32[16,128], index: 3, kind: output, shape index: {}]  }
   0x1   :  { %9 = vsyncpa [#allocation7], 0 }
   0x2   :  { %10 = vsyncpa [#allocation5], 0  ;;  %s368_s12 = smov [#allocation6]   ;;  %s369_s14 = smov [#allocation3]  }
   0x3   :  { %s28_s13 = sshll.u32 %s368_s12, 4  ;;  %s16_s15 = sshll.u32 %s369_s14, 4  ;;  %s29_s13 = int_to_ptr.vmem [resolvable:$true] %s28_s13  ;;  %s398_s15 = int_to_ptr.vmem [resolvable:$true] %s16_s15 }
   0x4   :  { %s274_s18 = scalar_lea.hbm %s454_s1, 1024 }
   0x5   :  { %p275_p0 = scmp.ne.s32.totalorder %s454_s1, %s274_s18  ;;  %p278_p1 = scmp.lt.u32.totalorder %s274_s18, %s454_s1 }
   0x7   :  { %p280_p2 = pnand %p278_p1, %p275_p0 }
   0x9   :  { %283 = shalt.err (!%p280_p2)
}
   0xa   :  { %s284_s23 = scalar_lea.vmem %s29_s13, 1024  ;;  %p289_p4 = scmp.lt.s32.totalorder %s29_s13, %s29_s13 }
   0xb   :  { %p285_p3 = scmp.ne.s32.totalorder %s29_s13, %s284_s23  ;;  %p290_p5 = scmp.lt.s32.totalorder %s284_s23, %s284_s23 }
   0xd   :  { %p291_p6 = por %p290_p5, %p289_p4 }
   0xf   :  { %p292_p7 = pnand %p291_p6, %p285_p3 }
  0x11   :  { %295 = shalt.err (!%p292_p7)
}
  0x12   :  { %s370_s24 = smov 64   ;;  %s371_s25 = smov 4  }
  0x13   :  { %34 = dma.hbm_to_vmem [thread:$0]  %s454_s1, 1024, %s29_s13, [#allocation7], %s370_s24, %s370_s24, %s371_s25  }
  0x14   :  { %s296_s30 = scalar_lea.hbm %s453_s0, 128 }
  0x15   :  { %p297_p8 = scmp.ne.s32.totalorder %s453_s0, %s296_s30  ;;  %p300_p9 = scmp.lt.u32.totalorder %s296_s30, %s453_s0 }
  0x17   :  { %p302_p10 = pnand %p300_p9, %p297_p8 }
  0x19   :  { %305 = shalt.err (!%p302_p10)
}
  0x1a   :  { %s306_s8 = scalar_lea.vmem %s398_s15, 128  ;;  %p311_p12 = scmp.lt.s32.totalorder %s398_s15, %s398_s15 }
  0x1b   :  { %p307_p11 = scmp.ne.s32.totalorder %s398_s15, %s306_s8  ;;  %p312_p13 = scmp.lt.s32.totalorder %s306_s8, %s306_s8 }
  0x1d   :  { %p313_p0 = por %p312_p13, %p311_p12 }
  0x1f   :  { %p314_p1 = pnand %p313_p0, %p307_p11 }
  0x21   :  { %317 = shalt.err (!%p314_p1)
}
  0x22   :  { %22 = dma.hbm_to_vmem [thread:$0]  %s453_s0, 128, %s398_s15, [#allocation4], %s370_s24, %s370_s24, %s371_s25  }
  0x23   :  { %s372_s10 = smov [#allocation8]   ;;  %s318_s14 = scalar_lea.hbm %s455_s2, 16 }
  0x24   :  { %s41_s11 = sshll.u32 %s372_s10, 4  ;;  %p319_p2 = scmp.ne.s32.totalorder %s455_s2, %s318_s14  ;;  %s42_s11 = int_to_ptr.vmem [resolvable:$true] %s41_s11 }
  0x25   :  { %p322_p3 = scmp.lt.u32.totalorder %s318_s14, %s455_s2 }
  0x27   :  { %p324_p4 = pnand %p322_p3, %p319_p2 }
  0x29   :  { %327 = shalt.err (!%p324_p4)
}
  0x2a   :  { %s328_s20 = scalar_lea.vmem %s42_s11, 16  ;;  %s332_s0 = scalar_lea.vmem %s42_s11, 32 }
  0x2b   :  { %p329_p5 = scmp.ne.s32.totalorder %s42_s11, %s328_s20  ;;  %p333_p6 = scmp.lt.s32.totalorder %s42_s11, %s42_s11 }
  0x2c   :  { %p334_p7 = scmp.lt.s32.totalorder %s332_s0, %s328_s20 }
  0x2e   :  { %p335_p8 = por %p334_p7, %p333_p6 }
  0x30   :  { %p336_p9 = pnand %p335_p8, %p329_p5 }
  0x32   :  { %339 = shalt.err (!%p336_p9)
}
  0x33   :  { %44 = dma.hbm_to_vmem [thread:$0]  %s455_s2, 16, %s42_s11, [#allocation7]  }
  0x34   :  { %362 = dma.done.wait [#allocation4], 128  }
  0x35   :  { %363 = vsyncadd [#allocation4], 4294967168 }
  0x36   :  { %364 = dma.done.wait [#allocation7], 1040  }
  0x37   :  { %365 = vsyncadd [#allocation7], 4294966256  ;;  %v373_v0 = vmov 0.0   ;;  %vm374_vm0 = vmmov 0   ;;  %v265_v1 = vld [vmem:[#allocation6] sm:$0xff]   ;;  %v266_v2 = vld [vmem:[#allocation6 + $0x8] sm:$0xff]  }
  0x38   :  { %235 = vmatprep.subr.bf16.mxu0 %v373_v0  ;;  %251 = vmatprep.mubr.msk.bf16.mxu0 %vm374_vm0, %v373_v0  ;;  %v267_v3 = vld [vmem:[#allocation6 + $0x10] sm:$0xff]   ;;  %v268_v4 = vld [vmem:[#allocation6 + $0x18] sm:$0xff]   ;;  %v269_v5 = vld [vmem:[#allocation6 + $0x20] sm:$0xff]   ;;  %s375_s2 = smov [#allocation9]  }
  0x39   :  { %236 = vmatpush3.bf16.msra.mxu0 %v265_v1  ;;  %v270_v6 = vld [vmem:[#allocation6 + $0x28] sm:$0xff]   ;;  %v271_v7 = vld [vmem:[#allocation6 + $0x30] sm:$0xff]   ;;  %v272_v8 = vld [vmem:[#allocation6 + $0x38] sm:$0xff]   ;;  %s203_s22 = sshll.u32 %s375_s2, 4  ;;  %s204_s22 = int_to_ptr.vmem [resolvable:$true] %s203_s22 }
  0x3a   :  { %237 = vmatprep.subr.bf16.mxu0 %v373_v0  ;;  %v273_v9 = vld [vmem:[#allocation3] sm:$0xff]   ;;  %v225_v10 = vld [vmem:[#allocation8] ss:$0 sm:$0xff]  ;;  %s340_s23 = scalar_lea.vmem %s204_s22, 256  ;;  %p345_p11 = scmp.lt.s32.totalorder %s204_s22, %s204_s22 }
  0x3b   :  { %p341_p10 = scmp.ne.s32.totalorder %s204_s22, %s340_s23  ;;  %p346_p12 = scmp.lt.s32.totalorder %s340_s23, %s340_s23 }
  0x3d   :  { %238 = vmatpush3.bf16.msra.mxu0 %v266_v2  ;;  %p347_p13 = por %p346_p12, %p345_p11 }
  0x3e   :  { %239 = vmatprep.subr.bf16.mxu0 %v373_v0 }
  0x3f   :  { %p348_p0 = pnand %p347_p13, %p341_p10 }
  0x41   :  { %240 = vmatpush3.bf16.msra.mxu0 %v267_v3 }
  0x42   :  { %241 = vmatprep.subr.bf16.mxu0 %v373_v0 }
  0x45   :  { %242 = vmatpush3.bf16.msra.mxu0 %v268_v4 }
  0x46   :  { %243 = vmatprep.subr.bf16.mxu0 %v373_v0 }
  0x49   :  { %244 = vmatpush3.bf16.msra.mxu0 %v269_v5 }
  0x4a   :  { %245 = vmatprep.subr.bf16.mxu0 %v373_v0 }
  0x4d   :  { %246 = vmatpush3.bf16.msra.mxu0 %v270_v6 }
  0x4e   :  { %247 = vmatprep.subr.bf16.mxu0 %v373_v0 }
  0x51   :  { %248 = vmatpush3.bf16.msra.mxu0 %v271_v7 }
  0x52   :  { %249 = vmatprep.subr.bf16.mxu0 %v373_v0 }
  0x55   :  { %250 = vmatpush3.bf16.msra.mxu0 %v272_v8 }
  0x58   :  { %252 = vmatmul.mubr.bf16.vlgmr.msra.gmra.mrb[0].mxu0 %v273_v9 }
 0x12b   :  { %v169_v11 = vpop.f32.mrb[0].mxu0 }
 0x12c   :  { %v192_v12 = vadd.f32 %v225_v10, %v169_v11  ;;  %v253_v13 = vpop.f32.mrb[1].mxu0 }
 0x12d   :  { %v172_v14 = vpop.f32.mrb[2].mxu0 }
 0x12e   :  { %v194_v15 = vmax.f32 %v192_v12, 0.0  ;;  %v193_v16 = vadd.f32 %v225_v10, %v172_v14  ;;  %v254_v17 = vpop.f32.mrb[3].mxu0 }
 0x130   :  { %196 = vst [vmem:[#allocation9] sm:$0xff] %v194_v15  ;;  %v195_v18 = vmax.f32 %v193_v16, 0.0 }
 0x132   :  { %197 = vst [vmem:[#allocation9 + $0x8] sm:$0xff] %v195_v18 }
 0x133   :  { %351 = shalt.err (!%p348_p0)
}
 0x134   :  { %s352_s26 = scalar_lea.hbm %s456_s3, 256 }
 0x135   :  { %p353_p1 = scmp.ne.s32.totalorder %s456_s3, %s352_s26  ;;  %p356_p2 = scmp.lt.u32.totalorder %s352_s26, %s456_s3 }
 0x137   :  { %p358_p3 = pnand %p356_p2, %p353_p1 }
 0x139   :  { %361 = shalt.err (!%p358_p3)
}
 0x13a   :  { %s376_s4 = smov 128   ;;  %s377_s5 = smov 8  }
 0x13b   :  { %209 = dma.vmem_to_hbm [thread:$0]  %s204_s22, 256, %s456_s3, [#allocation5], %s376_s4, %s376_s4, %s377_s5  }
 0x13c   :  { %366 = dma.done.wait [#allocation5], 256  }
 0x13d   :  { %367 = vsyncadd [#allocation5], 4294967040 }
 0x13e   :  { %213 = vsyncpa [#allocation4], 1 }
 0x13f   :  { %214 = vsyncpa [#allocation7], 1 }
 0x140   :  { %215 = vsyncpa [#allocation5], 1 }

// kernel: _lambda_.28
= control target key start
LH: loop header
LB: loop body
LE: loop exit
PB: predicated region body
PF: predicated region fallthrough
CT: control target
= control target key end

     0   :  { %8 = vsyncpa [#allocation4], 0  ;;  %s526_s0 = inlined_call_operand.hbm [shape: bf16[16,256], index: 0, kind: input, shape index: {}]   ;;  %s527_s1 = inlined_call_operand.hbm [shape: bf16[256,128], index: 1, kind: input, shape index: {}]   ;;  %s528_s2 = inlined_call_operand.hbm [shape: f32[1,128], index: 2, kind: input, shape index: {}]   ;;  %s529_s3 = inlined_call_operand.hbm [shape: f32[16,128], index: 3, kind: output, shape index: {}]  }
   0x1   :  { %9 = vsyncpa [#allocation7], 0 }
   0x2   :  { %10 = vsyncpa [#allocation5], 0  ;;  %s444_s12 = smov [#allocation6]   ;;  %s350_s16 = scalar_lea.hbm %s527_s1, 2048 }
   0x3   :  { %s28_s13 = sshll.u32 %s444_s12, 4  ;;  %p351_p0 = scmp.ne.s32.totalorder %s527_s1, %s350_s16  ;;  %s29_s13 = int_to_ptr.vmem [resolvable:$true] %s28_s13 }
   0x4   :  { %p354_p1 = scmp.lt.u32.totalorder %s350_s16, %s527_s1 }
   0x6   :  { %p356_p2 = pnand %p354_p1, %p351_p0 }
   0x8   :  { %359 = shalt.err (!%p356_p2)
}
   0x9   :  { %s360_s21 = scalar_lea.vmem %s29_s13, 2048  ;;  %p365_p4 = scmp.lt.s32.totalorder %s29_s13, %s29_s13 }
   0xa   :  { %p361_p3 = scmp.ne.s32.totalorder %s29_s13, %s360_s21  ;;  %p366_p5 = scmp.lt.s32.totalorder %s360_s21, %s360_s21 }
   0xc   :  { %p367_p6 = por %p366_p5, %p365_p4 }
   0xe   :  { %p368_p7 = pnand %p367_p6, %p361_p3 }
  0x10   :  { %371 = shalt.err (!%p368_p7)
}
  0x11   :  { %s445_s22 = smov 64   ;;  %s446_s23 = smov 4  }
  0x12   :  { %34 = dma.hbm_to_vmem [thread:$0]  %s527_s1, 2048, %s29_s13, [#allocation7], %s445_s22, %s445_s22, %s446_s23  }
  0x13   :  { %s447_s26 = smov [#allocation3]   ;;  %s372_s30 = scalar_lea.hbm %s526_s0, 256 }
  0x14   :  { %s16_s27 = sshll.u32 %s447_s26, 4  ;;  %p373_p8 = scmp.ne.s32.totalorder %s526_s0, %s372_s30  ;;  %s17_s27 = int_to_ptr.vmem [resolvable:$true] %s16_s27 }
  0x15   :  { %p376_p9 = scmp.lt.u32.totalorder %s372_s30, %s526_s0 }
  0x17   :  { %p378_p10 = pnand %p376_p9, %p373_p8 }
  0x19   :  { %381 = shalt.err (!%p378_p10)
}
  0x1a   :  { %s382_s8 = scalar_lea.vmem %s17_s27, 256  ;;  %p387_p12 = scmp.lt.s32.totalorder %s17_s27, %s17_s27 }
  0x1b   :  { %p383_p11 = scmp.ne.s32.totalorder %s17_s27, %s382_s8  ;;  %p388_p13 = scmp.lt.s32.totalorder %s382_s8, %s382_s8 }
  0x1d   :  { %p389_p0 = por %p388_p13, %p387_p12 }
  0x1f   :  { %p390_p1 = pnand %p389_p0, %p383_p11 }
  0x21   :  { %393 = shalt.err (!%p390_p1)
}
  0x22   :  { %s448_s1 = smov 128   ;;  %s449_s9 = smov 8  }
  0x23   :  { %22 = dma.hbm_to_vmem [thread:$0]  %s526_s0, 256, %s17_s27, [#allocation4], %s448_s1, %s448_s1, %s449_s9  }
  0x24   :  { %s450_s12 = smov [#allocation8]   ;;  %s394_s16 = scalar_lea.hbm %s528_s2, 16 }
  0x25   :  { %s41_s13 = sshll.u32 %s450_s12, 4  ;;  %p395_p2 = scmp.ne.s32.totalorder %s528_s2, %s394_s16  ;;  %s42_s13 = int_to_ptr.vmem [resolvable:$true] %s41_s13 }
  0x26   :  { %p398_p3 = scmp.lt.u32.totalorder %s394_s16, %s528_s2 }
  0x28   :  { %p400_p4 = pnand %p398_p3, %p395_p2 }
  0x2a   :  { %403 = shalt.err (!%p400_p4)
}
  0x2b   :  { %s404_s21 = scalar_lea.vmem %s42_s13, 16  ;;  %s408_s0 = scalar_lea.vmem %s42_s13, 32 }
  0x2c   :  { %p405_p5 = scmp.ne.s32.totalorder %s42_s13, %s404_s21  ;;  %p409_p6 = scmp.lt.s32.totalorder %s42_s13, %s42_s13 }
  0x2d   :  { %p410_p7 = scmp.lt.s32.totalorder %s408_s0, %s404_s21 }
  0x2f   :  { %p411_p8 = por %p410_p7, %p409_p6 }
  0x31   :  { %p412_p9 = pnand %p411_p8, %p405_p5 }
  0x33   :  { %415 = shalt.err (!%p412_p9)
}
  0x34   :  { %44 = dma.hbm_to_vmem [thread:$0]  %s528_s2, 16, %s42_s13, [#allocation7]  }
  0x35   :  { %438 = dma.done.wait [#allocation4], 256  }
  0x36   :  { %439 = vsyncadd [#allocation4], 4294967040 }
  0x37   :  { %440 = dma.done.wait [#allocation7], 2064  }
  0x38   :  { %441 = vsyncadd [#allocation7], 4294965232  ;;  %v331_v0 = vld [vmem:[#allocation6 + $0x40] sm:$0xff]   ;;  %v333_v2 = vld [vmem:[#allocation6 + $0x48] sm:$0xff]   ;;  %s451_s2 = smov [#allocation9]  }
  0x39   :  { %v332_v1 = vld [vmem:[#allocation6] sm:$0xff]   ;;  %301 = vmatprep.subr.bf16.mxu0 %v331_v0  ;;  %v334_v3 = vld [vmem:[#allocation6 + $0x8] sm:$0xff]   ;;  %v335_v4 = vld [vmem:[#allocation6 + $0x50] sm:$0xff]   ;;  %s269_s24 = sshll.u32 %s451_s2, 4  ;;  %s270_s24 = int_to_ptr.vmem [resolvable:$true] %s269_s24 }
  0x3a   :  { %302 = vmatpush3.bf16.msra.mxu0 %v332_v1  ;;  %v336_v5 = vld [vmem:[#allocation6 + $0x10] sm:$0xff]   ;;  %v337_v6 = vld [vmem:[#allocation6 + $0x58] sm:$0xff]   ;;  %v339_v8 = vld [vmem:[#allocation6 + $0x60] sm:$0xff]   ;;  %s416_s25 = scalar_lea.vmem %s270_s24, 256  ;;  %p421_p11 = scmp.lt.s32.totalorder %s270_s24, %s270_s24 }
  0x3b   :  { %303 = vmatprep.subr.bf16.mxu0 %v333_v2  ;;  %v338_v7 = vld [vmem:[#allocation6 + $0x18] sm:$0xff]   ;;  %v340_v9 = vld [vmem:[#allocation6 + $0x20] sm:$0xff]   ;;  %v341_v10 = vld [vmem:[#allocation6 + $0x68] sm:$0xff]   ;;  %p417_p10 = scmp.ne.s32.totalorder %s270_s24, %s416_s25  ;;  %p422_p12 = scmp.lt.s32.totalorder %s416_s25, %s416_s25 }
  0x3c   :  { %v349_v11 = vld [vmem:[#allocation3 + $0x4] ss:$8 sps:$4 sm:$0xff]   ;;  %v342_v12 = vld [vmem:[#allocation6 + $0x28] sm:$0xff]   ;;  %v347_v17 = vld [vmem:[#allocation3] ss:$8 sps:$4 sm:$0xff]  }
  0x3d   :  { %235 = vmatprep.mubr.bf16.mxu0 %v349_v11  ;;  %v343_v13 = vld [vmem:[#allocation6 + $0x70] sm:$0xff]   ;;  %v345_v15 = vld [vmem:[#allocation6 + $0x78] sm:$0xff]   ;;  %v300_v20 = vld [vmem:[#allocation8] ss:$0 sm:$0xff]  ;;  %p423_p13 = por %p422_p12, %p421_p11 }
  0x3e   :  { %304 = vmatpush3.bf16.msra.mxu0 %v334_v3  ;;  %v344_v14 = vld [vmem:[#allocation6 + $0x30] sm:$0xff]   ;;  %v346_v16 = vld [vmem:[#allocation6 + $0x38] sm:$0xff]  }
  0x3f   :  { %305 = vmatprep.subr.bf16.mxu0 %v335_v4  ;;  %p424_p0 = pnand %p423_p13, %p417_p10 }
  0x42   :  { %306 = vmatpush3.bf16.msra.mxu0 %v336_v5 }
  0x43   :  { %307 = vmatprep.subr.bf16.mxu0 %v337_v6 }
  0x46   :  { %308 = vmatpush3.bf16.msra.mxu0 %v338_v7 }
  0x47   :  { %309 = vmatprep.subr.bf16.mxu0 %v339_v8 }
  0x4a   :  { %310 = vmatpush3.bf16.msra.mxu0 %v340_v9 }
  0x4b   :  { %311 = vmatprep.subr.bf16.mxu0 %v341_v10 }
  0x4e   :  { %312 = vmatpush3.bf16.msra.mxu0 %v342_v12 }
  0x4f   :  { %313 = vmatprep.subr.bf16.mxu0 %v343_v13 }
  0x52   :  { %314 = vmatpush3.bf16.msra.mxu0 %v344_v14 }
  0x53   :  { %315 = vmatprep.subr.bf16.mxu0 %v345_v15 }
  0x56   :  { %316 = vmatpush3.bf16.msra.mxu0 %v346_v16 }
  0x59   :  { %236 = vmatmul.mubr.bf16.vlgmr.msra.gmra.mrb[0].mxu0 %v347_v17 }
 0x12c   :  { %v317_v18 = vpop.f32.mrb[0].mxu0 }
 0x12d   :  { %v318_v19 = vpop.f32.mrb[1].mxu0 }
 0x12e   :  { %v319_v21 = vadd.f32 %v318_v19, %v317_v18  ;;  %v320_v22 = vpop.f32.mrb[2].mxu0 }
 0x12f   :  { %v321_v23 = vpop.f32.mrb[3].mxu0 }
 0x130   :  { %v260_v24 = vadd.f32 %v319_v21, %v300_v20  ;;  %v322_v25 = vadd.f32 %v321_v23, %v320_v22 }
 0x132   :  { %262 = vst [vmem:[#allocation9] sm:$0xff] %v260_v24  ;;  %v261_v26 = vadd.f32 %v322_v25, %v300_v20 }
 0x134   :  { %263 = vst [vmem:[#allocation9 + $0x8] sm:$0xff] %v261_v26 }
 0x135   :  { %427 = shalt.err (!%p424_p0)
}
 0x136   :  { %s428_s28 = scalar_lea.hbm %s529_s3, 256 }
 0x137   :  { %p429_p1 = scmp.ne.s32.totalorder %s529_s3, %s428_s28  ;;  %p432_p2 = scmp.lt.u32.totalorder %s428_s28, %s529_s3 }
 0x139   :  { %p434_p3 = pnand %p432_p2, %p429_p1 }
 0x13b   :  { %437 = shalt.err (!%p434_p3)
}
 0x13c   :  { %275 = dma.vmem_to_hbm [thread:$0]  %s270_s24, 256, %s529_s3, [#allocation5], %s448_s1, %s448_s1, %s449_s9  }
 0x13d   :  { %442 = dma.done.wait [#allocation5], 256  }
 0x13e   :  { %443 = vsyncadd [#allocation5], 4294967040 }
 0x13f   :  { %279 = vsyncpa [#allocation4], 1 }
 0x140   :  { %280 = vsyncpa [#allocation7], 1 }
 0x141   :  { %281 = vsyncpa [#allocation5], 1 }

// kernel: _lambda_.29
= control target key start
LH: loop header
LB: loop body
LE: loop exit
PB: predicated region body
PF: predicated region fallthrough
CT: control target
= control target key end

     0   :  { %8 = vsyncpa [#allocation4], 0  ;;  %s752_s0 = inlined_call_operand.hbm [shape: bf16[32,384], index: 0, kind: input, shape index: {}]   ;;  %s753_s1 = inlined_call_operand.hbm [shape: bf16[384,128], index: 1, kind: input, shape index: {}]   ;;  %s754_s2 = inlined_call_operand.hbm [shape: f32[1,128], index: 2, kind: input, shape index: {}]   ;;  %s755_s3 = inlined_call_operand.hbm [shape: f32[32,128], index: 3, kind: output, shape index: {}]  }
   0x1   :  { %9 = vsyncpa [#allocation7], 0 }
   0x2   :  { %10 = vsyncpa [#allocation5], 0  ;;  %s674_s12 = smov [#allocation6]   ;;  %s580_s16 = scalar_lea.hbm %s753_s1, 3072 }
   0x3   :  { %s28_s13 = sshll.u32 %s674_s12, 4  ;;  %p581_p0 = scmp.ne.s32.totalorder %s753_s1, %s580_s16  ;;  %s29_s13 = int_to_ptr.vmem [resolvable:$true] %s28_s13 }
   0x4   :  { %p584_p1 = scmp.lt.u32.totalorder %s580_s16, %s753_s1 }
   0x6   :  { %p586_p2 = pnand %p584_p1, %p581_p0 }
   0x8   :  { %589 = shalt.err (!%p586_p2)
}
   0x9   :  { %s590_s21 = scalar_lea.vmem %s29_s13, 3072  ;;  %p595_p4 = scmp.lt.s32.totalorder %s29_s13, %s29_s13 }
   0xa   :  { %p591_p3 = scmp.ne.s32.totalorder %s29_s13, %s590_s21  ;;  %p596_p5 = scmp.lt.s32.totalorder %s590_s21, %s590_s21 }
   0xc   :  { %p597_p6 = por %p596_p5, %p595_p4 }
   0xe   :  { %p598_p7 = pnand %p597_p6, %p591_p3 }
  0x10   :  { %601 = shalt.err (!%p598_p7)
}
  0x11   :  { %s675_s22 = smov 64   ;;  %s676_s23 = smov 4  }
  0x12   :  { %34 = dma.hbm_to_vmem [thread:$0]  %s753_s1, 3072, %s29_s13, [#allocation7], %s675_s22, %s675_s22, %s676_s23  }
  0x13   :  { %s677_s26 = smov [#allocation3]   ;;  %s602_s30 = scalar_lea.hbm %s752_s0, 768 }
  0x14   :  { %s16_s27 = sshll.u32 %s677_s26, 4  ;;  %p603_p8 = scmp.ne.s32.totalorder %s752_s0, %s602_s30  ;;  %s17_s27 = int_to_ptr.vmem [resolvable:$true] %s16_s27 }
  0x15   :  { %p606_p9 = scmp.lt.u32.totalorder %s602_s30, %s752_s0 }
  0x17   :  { %p608_p10 = pnand %p606_p9, %p603_p8 }
  0x19   :  { %611 = shalt.err (!%p608_p10)
}
  0x1a   :  { %s612_s8 = scalar_lea.vmem %s17_s27, 768  ;;  %p617_p12 = scmp.lt.s32.totalorder %s17_s27, %s17_s27 }
  0x1b   :  { %p613_p11 = scmp.ne.s32.totalorder %s17_s27, %s612_s8  ;;  %p618_p13 = scmp.lt.s32.totalorder %s612_s8, %s612_s8 }
  0x1d   :  { %p619_p0 = por %p618_p13, %p617_p12 }
  0x1f   :  { %p620_p1 = pnand %p619_p0, %p613_p11 }
  0x21   :  { %623 = shalt.err (!%p620_p1)
}
  0x22   :  { %s678_s1 = smov 192   ;;  %s679_s9 = smov 12  }
  0x23   :  { %22 = dma.hbm_to_vmem [thread:$0]  %s752_s0, 768, %s17_s27, [#allocation4], %s678_s1, %s678_s1, %s679_s9  }
  0x24   :  { %s680_s12 = smov [#allocation8]   ;;  %s624_s16 = scalar_lea.hbm %s754_s2, 16 }
  0x25   :  { %s41_s13 = sshll.u32 %s680_s12, 4  ;;  %p625_p2 = scmp.ne.s32.totalorder %s754_s2, %s624_s16  ;;  %s42_s13 = int_to_ptr.vmem [resolvable:$true] %s41_s13 }
  0x26   :  { %p628_p3 = scmp.lt.u32.totalorder %s624_s16, %s754_s2 }
  0x28   :  { %p630_p4 = pnand %p628_p3, %p625_p2 }
  0x2a   :  { %633 = shalt.err (!%p630_p4)
}
  0x2b   :  { %s634_s21 = scalar_lea.vmem %s42_s13, 16  ;;  %s638_s0 = scalar_lea.vmem %s42_s13, 32 }
  0x2c   :  { %p635_p5 = scmp.ne.s32.totalorder %s42_s13, %s634_s21  ;;  %p639_p6 = scmp.lt.s32.totalorder %s42_s13, %s42_s13 }
  0x2d   :  { %p640_p7 = scmp.lt.s32.totalorder %s638_s0, %s634_s21 }
  0x2f   :  { %p641_p8 = por %p640_p7, %p639_p6 }
  0x31   :  { %p642_p9 = pnand %p641_p8, %p635_p5 }
  0x33   :  { %645 = shalt.err (!%p642_p9)
}
  0x34   :  { %44 = dma.hbm_to_vmem [thread:$0]  %s754_s2, 16, %s42_s13, [#allocation7]  }
  0x35   :  { %668 = dma.done.wait [#allocation4], 768  }
  0x36   :  { %669 = vsyncadd [#allocation4], 4294966528 }
  0x37   :  { %670 = dma.done.wait [#allocation7], 3088  }
  0x38   :  { %671 = vsyncadd [#allocation7], 4294964208  ;;  %v548_v0 = vld [vmem:[#allocation6 + $0x40] sm:$0xff]   ;;  %v551_v3 = vld [vmem:[#allocation6 + $0x48] sm:$0xff]   ;;  %s681_s2 = smov [#allocation9]  }
  0x39   :  { %v549_v1 = vld [vmem:[#allocation6] sm:$0xff]   ;;  %480 = vmatprep.subr.bf16.mxu0 %v548_v0  ;;  %v552_v4 = vld [vmem:[#allocation6 + $0x8] sm:$0xff]   ;;  %v554_v6 = vld [vmem:[#allocation6 + $0x50] sm:$0xff]   ;;  %s436_s24 = sshll.u32 %s681_s2, 4  ;;  %s437_s24 = int_to_ptr.vmem [resolvable:$true] %s436_s24 }
  0x3a   :  { %v550_v2 = vld [vmem:[#allocation6 + $0x80] sm:$0xff]   ;;  %481 = vmatpush3.bf16.msra.mxu0 %v549_v1  ;;  %v553_v5 = vld [vmem:[#allocation6 + $0x88] sm:$0xff]   ;;  %v555_v7 = vld [vmem:[#allocation6 + $0x10] sm:$0xff]   ;;  %s646_s25 = scalar_lea.vmem %s437_s24, 512  ;;  %p651_p11 = scmp.lt.s32.totalorder %s437_s24, %s437_s24 }
  0x3b   :  { %518 = vmatprep.subr.bf16.mxu1 %v550_v2  ;;  %482 = vmatprep.subr.bf16.mxu0 %v551_v3  ;;  %v556_v8 = vld [vmem:[#allocation6 + $0x90] sm:$0xff]   ;;  %v557_v9 = vld [vmem:[#allocation6 + $0x58] sm:$0xff]   ;;  %v560_v12 = vld [vmem:[#allocation6 + $0x60] sm:$0xff]   ;;  %p647_p10 = scmp.ne.s32.totalorder %s437_s24, %s646_s25  ;;  %p652_p12 = scmp.lt.s32.totalorder %s646_s25, %s646_s25 }
  0x3c   :  { %519 = vmatpush3.bf16.msra.mxu1 %v550_v2  ;;  %v558_v10 = vld [vmem:[#allocation6 + $0x18] sm:$0xff]   ;;  %v562_v13 = vld [vmem:[#allocation6 + $0xa0] sm:$0xff]   ;;  %v563_v15 = vld [vmem:[#allocation6 + $0x68] sm:$0xff]  }
  0x3d   :  { %520 = vmatprep.subr.bf16.mxu1 %v553_v5  ;;  %v559_v11 = vld [vmem:[#allocation6 + $0x98] sm:$0xff]   ;;  %v561_v14 = vld [vmem:[#allocation6 + $0x20] sm:$0xff]   ;;  %v565_v16 = vld [vmem:[#allocation6 + $0xa8] sm:$0xff]   ;;  %p653_p13 = por %p652_p12, %p651_p11 }
  0x3e   :  { %483 = vmatpush3.bf16.msra.mxu0 %v552_v4  ;;  %v564_v17 = vld [vmem:[#allocation6 + $0x28] sm:$0xff]   ;;  %v566_v18 = vld [vmem:[#allocation6 + $0x70] sm:$0xff]   ;;  %v569_v21 = vld [vmem:[#allocation6 + $0x78] sm:$0xff]  }
  0x3f   :  { %484 = vmatprep.subr.bf16.mxu0 %v554_v6  ;;  %v567_v19 = vld [vmem:[#allocation6 + $0x30] sm:$0xff]   ;;  %v571_v22 = vld [vmem:[#allocation6 + $0xb8] sm:$0xff]   ;;  %v479_v37 = vld [vmem:[#allocation8] ss:$0 sm:$0xff]  ;;  %p654_p0 = pnand %p653_p13, %p647_p10 }
  0x40   :  { %521 = vmatpush3.bf16.msra.mxu1 %v553_v5  ;;  %v568_v20 = vld [vmem:[#allocation6 + $0xb0] sm:$0xff]   ;;  %v575_v24 = vld [vmem:[#allocation3 + $0x8] ss:$12 sps:$4 sm:$0xff]  }
  0x41   :  { %522 = vmatprep.subr.bf16.mxu1 %v556_v8  ;;  %v574_v23 = vld [vmem:[#allocation3 + $0x4] ss:$12 sps:$4 sm:$0xff]   ;;  %v570_v25 = vld [vmem:[#allocation6 + $0x38] sm:$0xff]   ;;  %534 = vmatprep.mubr.bf16.mxu1 %v575_v24 }
  0x42   :  { %485 = vmatpush3.bf16.msra.mxu0 %v555_v7  ;;  %331 = vmatprep.mubr.bf16.mxu0 %v574_v23  ;;  %v572_v26 = vld [vmem:[#allocation3] ss:$12 sps:$4 sm:$0xff]   ;;  %v577_v27 = vld [vmem:[#allocation3 + $0x1c] ss:$12 sps:$4 sm:$0xff]   ;;  %v579_v29 = vld [vmem:[#allocation3 + $0x18] ss:$12 sps:$4 sm:$0xff]  }
  0x43   :  { %486 = vmatprep.subr.bf16.mxu0 %v557_v9  ;;  %v576_v28 = vld [vmem:[#allocation3 + $0x20] ss:$12 sps:$4 sm:$0xff]  }
  0x44   :  { %523 = vmatpush3.bf16.msra.mxu1 %v556_v8 }
  0x45   :  { %524 = vmatprep.subr.bf16.mxu1 %v559_v11 }
  0x46   :  { %487 = vmatpush3.bf16.msra.mxu0 %v558_v10 }
  0x47   :  { %488 = vmatprep.subr.bf16.mxu0 %v560_v12 }
  0x48   :  { %525 = vmatpush3.bf16.msra.mxu1 %v559_v11 }
  0x49   :  { %526 = vmatprep.subr.bf16.mxu1 %v562_v13 }
  0x4a   :  { %489 = vmatpush3.bf16.msra.mxu0 %v561_v14 }
  0x4b   :  { %490 = vmatprep.subr.bf16.mxu0 %v563_v15 }
  0x4c   :  { %527 = vmatpush3.bf16.msra.mxu1 %v562_v13 }
  0x4d   :  { %528 = vmatprep.subr.bf16.mxu1 %v565_v16 }
  0x4e   :  { %491 = vmatpush3.bf16.msra.mxu0 %v564_v17 }
  0x4f   :  { %492 = vmatprep.subr.bf16.mxu0 %v566_v18 }
  0x50   :  { %529 = vmatpush3.bf16.msra.mxu1 %v565_v16 }
  0x51   :  { %530 = vmatprep.subr.bf16.mxu1 %v568_v20 }
  0x52   :  { %493 = vmatpush3.bf16.msra.mxu0 %v567_v19 }
  0x53   :  { %494 = vmatprep.subr.bf16.mxu0 %v569_v21 }
  0x54   :  { %531 = vmatpush3.bf16.msra.mxu1 %v568_v20 }
  0x55   :  { %532 = vmatprep.subr.bf16.mxu1 %v571_v22 }
  0x56   :  { %495 = vmatpush3.bf16.msra.mxu0 %v570_v25 }
  0x58   :  { %533 = vmatpush3.bf16.msra.mxu1 %v571_v22 }
  0x59   :  { %332 = vmatmul.mubr.bf16.vlgmr.msra.gmra.mrb[0].mxu0 %v572_v26 }
  0x5a   :  { %339 = vmatprep.mubr.bf16.mxu0 %v577_v27 }
  0x5b   :  { %535 = vmatmul.mubr.bf16.vlgmr.msra.gmra.mrb[0].mxu1 %v576_v28 }
  0x61   :  { %340 = vmatmul.mubr.bf16.gmra.mrb[4].mxu0 %v579_v29 }
 0x12c   :  { %v496_v30 = vpop.f32.mrb[0].mxu0 }
 0x12d   :  { %v497_v31 = vpop.f32.mrb[1].mxu0 }
 0x12e   :  { %v498_v32 = vadd.f32 %v497_v31, %v496_v30  ;;  %v499_v33 = vpop.f32.mrb[2].mxu0  ;;  %v536_v34 = vpop.f32.mrb[0].mxu1 }
 0x12f   :  { %v500_v35 = vpop.f32.mrb[3].mxu0  ;;  %v382_v36 = vpop.f32.mrb[1].mxu1 }
 0x130   :  { %v501_v38 = vadd.f32 %v500_v35, %v499_v33  ;;  %v383_v39 = vadd.f32 %v498_v32, %v382_v36  ;;  %v537_v40 = vpop.f32.mrb[2].mxu1 }
 0x131   :  { %v385_v41 = vpop.f32.mrb[3].mxu1 }
 0x132   :  { %v419_v42 = vadd.f32 %v479_v37, %v383_v39  ;;  %v386_v43 = vadd.f32 %v501_v38, %v385_v41 }
 0x134   :  { %v423_v44 = vmax.f32 %v419_v42, 0.0  ;;  %v420_v45 = vadd.f32 %v479_v37, %v386_v43  ;;  %v502_v46 = vpop.f32.mrb[4].mxu0 }
 0x135   :  { %v503_v47 = vpop.f32.mrb[5].mxu0 }
 0x136   :  { %427 = vst [vmem:[#allocation9] sm:$0xff] %v423_v44  ;;  %v424_v48 = vmax.f32 %v420_v45, 0.0  ;;  %v504_v49 = vadd.f32 %v503_v47, %v502_v46  ;;  %v505_v50 = vpop.f32.mrb[6].mxu0 }
 0x137   :  { %v506_v51 = vpop.f32.mrb[7].mxu0 }
 0x138   :  { %428 = vst [vmem:[#allocation9 + $0x8] sm:$0xff] %v424_v48  ;;  %v391_v52 = vadd.f32 %v536_v34, %v504_v49  ;;  %v507_v53 = vadd.f32 %v506_v51, %v505_v50 }
 0x13a   :  { %v421_v54 = vadd.f32 %v479_v37, %v391_v52  ;;  %v394_v55 = vadd.f32 %v537_v40, %v507_v53 }
 0x13c   :  { %v425_v56 = vmax.f32 %v421_v54, 0.0  ;;  %v422_v57 = vadd.f32 %v479_v37, %v394_v55 }
 0x13e   :  { %429 = vst [vmem:[#allocation9 + $0x10] sm:$0xff] %v425_v56  ;;  %v426_v58 = vmax.f32 %v422_v57, 0.0 }
 0x140   :  { %430 = vst [vmem:[#allocation9 + $0x18] sm:$0xff] %v426_v58 }
 0x141   :  { %657 = shalt.err (!%p654_p0)
}
 0x142   :  { %s658_s28 = scalar_lea.hbm %s755_s3, 512 }
 0x143   :  { %p659_p1 = scmp.ne.s32.totalorder %s755_s3, %s658_s28  ;;  %p662_p2 = scmp.lt.u32.totalorder %s658_s28, %s755_s3 }
 0x145   :  { %p664_p3 = pnand %p662_p2, %p659_p1 }
 0x147   :  { %667 = shalt.err (!%p664_p3)
}
 0x148   :  { %s682_s6 = smov 128   ;;  %s683_s7 = smov 8  }
 0x149   :  { %442 = dma.vmem_to_hbm [thread:$0]  %s437_s24, 512, %s755_s3, [#allocation5], %s682_s6, %s682_s6, %s683_s7  }
 0x14a   :  { %672 = dma.done.wait [#allocation5], 512  }
 0x14b   :  { %673 = vsyncadd [#allocation5], 4294966784 }
 0x14c   :  { %446 = vsyncpa [#allocation4], 1 }
 0x14d   :  { %447 = vsyncpa [#allocation7], 1 }
 0x14e   :  { %448 = vsyncpa [#allocation5], 1 }

// kernel: _lambda_.33
= control target key start
LH: loop header
LB: loop body
LE: loop exit
PB: predicated region body
PF: predicated region fallthrough
CT: control target
= control target key end

     0   :  { %8 = vsyncpa [#allocation4], 0  ;;  %s792_s0 = inlined_call_operand.hbm [shape: bf16[32,384], index: 0, kind: input, shape index: {}]   ;;  %s793_s1 = inlined_call_operand.hbm [shape: bf16[384,128], index: 1, kind: input, shape index: {}]   ;;  %s794_s2 = inlined_call_operand.hbm [shape: f32[1,128], index: 2, kind: input, shape index: {}]   ;;  %s795_s3 = inlined_call_operand.hbm [shape: f32[32,128], index: 3, kind: output, shape index: {}]  }
   0x1   :  { %9 = vsyncpa [#allocation7], 0 }
   0x2   :  { %10 = vsyncpa [#allocation5], 0  ;;  %s714_s12 = smov [#allocation6]   ;;  %s620_s16 = scalar_lea.hbm %s793_s1, 3072 }
   0x3   :  { %s28_s13 = sshll.u32 %s714_s12, 4  ;;  %p621_p0 = scmp.ne.s32.totalorder %s793_s1, %s620_s16  ;;  %s29_s13 = int_to_ptr.vmem [resolvable:$true] %s28_s13 }
   0x4   :  { %p624_p1 = scmp.lt.u32.totalorder %s620_s16, %s793_s1 }
   0x6   :  { %p626_p2 = pnand %p624_p1, %p621_p0 }
   0x8   :  { %629 = shalt.err (!%p626_p2)
}
   0x9   :  { %s630_s21 = scalar_lea.vmem %s29_s13, 3072  ;;  %p635_p4 = scmp.lt.s32.totalorder %s29_s13, %s29_s13 }
   0xa   :  { %p631_p3 = scmp.ne.s32.totalorder %s29_s13, %s630_s21  ;;  %p636_p5 = scmp.lt.s32.totalorder %s630_s21, %s630_s21 }
   0xc   :  { %p637_p6 = por %p636_p5, %p635_p4 }
   0xe   :  { %p638_p7 = pnand %p637_p6, %p631_p3 }
  0x10   :  { %641 = shalt.err (!%p638_p7)
}
  0x11   :  { %s715_s22 = smov 64   ;;  %s716_s23 = smov 4  }
  0x12   :  { %34 = dma.hbm_to_vmem [thread:$0]  %s793_s1, 3072, %s29_s13, [#allocation7], %s715_s22, %s715_s22, %s716_s23  }
  0x13   :  { %s717_s26 = smov [#allocation3]   ;;  %s642_s30 = scalar_lea.hbm %s792_s0, 768 }
  0x14   :  { %s16_s27 = sshll.u32 %s717_s26, 4  ;;  %p643_p8 = scmp.ne.s32.totalorder %s792_s0, %s642_s30  ;;  %s17_s27 = int_to_ptr.vmem [resolvable:$true] %s16_s27 }
  0x15   :  { %p646_p9 = scmp.lt.u32.totalorder %s642_s30, %s792_s0 }
  0x17   :  { %p648_p10 = pnand %p646_p9, %p643_p8 }
  0x19   :  { %651 = shalt.err (!%p648_p10)
}
  0x1a   :  { %s652_s8 = scalar_lea.vmem %s17_s27, 768  ;;  %p657_p12 = scmp.lt.s32.totalorder %s17_s27, %s17_s27 }
  0x1b   :  { %p653_p11 = scmp.ne.s32.totalorder %s17_s27, %s652_s8  ;;  %p658_p13 = scmp.lt.s32.totalorder %s652_s8, %s652_s8 }
  0x1d   :  { %p659_p0 = por %p658_p13, %p657_p12 }
  0x1f   :  { %p660_p1 = pnand %p659_p0, %p653_p11 }
  0x21   :  { %663 = shalt.err (!%p660_p1)
}
  0x22   :  { %s718_s1 = smov 192   ;;  %s719_s9 = smov 12  }
  0x23   :  { %22 = dma.hbm_to_vmem [thread:$0]  %s792_s0, 768, %s17_s27, [#allocation4], %s718_s1, %s718_s1, %s719_s9  }
  0x24   :  { %s720_s12 = smov [#allocation8]   ;;  %s664_s16 = scalar_lea.hbm %s794_s2, 16 }
  0x25   :  { %s41_s13 = sshll.u32 %s720_s12, 4  ;;  %p665_p2 = scmp.ne.s32.totalorder %s794_s2, %s664_s16  ;;  %s42_s13 = int_to_ptr.vmem [resolvable:$true] %s41_s13 }
  0x26   :  { %p668_p3 = scmp.lt.u32.totalorder %s664_s16, %s794_s2 }
  0x28   :  { %p670_p4 = pnand %p668_p3, %p665_p2 }
  0x2a   :  { %673 = shalt.err (!%p670_p4)
}
  0x2b   :  { %s674_s21 = scalar_lea.vmem %s42_s13, 16  ;;  %s678_s0 = scalar_lea.vmem %s42_s13, 32 }
  0x2c   :  { %p675_p5 = scmp.ne.s32.totalorder %s42_s13, %s674_s21  ;;  %p679_p6 = scmp.lt.s32.totalorder %s42_s13, %s42_s13 }
  0x2d   :  { %p680_p7 = scmp.lt.s32.totalorder %s678_s0, %s674_s21 }
  0x2f   :  { %p681_p8 = por %p680_p7, %p679_p6 }
  0x31   :  { %p682_p9 = pnand %p681_p8, %p675_p5 }
  0x33   :  { %685 = shalt.err (!%p682_p9)
}
  0x34   :  { %44 = dma.hbm_to_vmem [thread:$0]  %s794_s2, 16, %s42_s13, [#allocation7]  }
  0x35   :  { %708 = dma.done.wait [#allocation4], 768  }
  0x36   :  { %709 = vsyncadd [#allocation4], 4294966528 }
  0x37   :  { %710 = dma.done.wait [#allocation7], 3088  }
  0x38   :  { %711 = vsyncadd [#allocation7], 4294964208  ;;  %v572_v0 = vld [vmem:[#allocation6 + $0x40] sm:$0xff]   ;;  %v575_v3 = vld [vmem:[#allocation6 + $0x48] sm:$0xff]   ;;  %s721_s2 = smov [#allocation9]  }
  0x39   :  { %v573_v1 = vld [vmem:[#allocation6] sm:$0xff]   ;;  %504 = vmatprep.subr.bf16.mxu0 %v572_v0  ;;  %v576_v4 = vld [vmem:[#allocation6 + $0x8] sm:$0xff]   ;;  %v578_v6 = vld [vmem:[#allocation6 + $0x50] sm:$0xff]   ;;  %s456_s24 = sshll.u32 %s721_s2, 4  ;;  %s457_s24 = int_to_ptr.vmem [resolvable:$true] %s456_s24 }
  0x3a   :  { %v574_v2 = vld [vmem:[#allocation6 + $0x80] sm:$0xff]   ;;  %505 = vmatpush3.bf16.msra.mxu0 %v573_v1  ;;  %v577_v5 = vld [vmem:[#allocation6 + $0x88] sm:$0xff]   ;;  %v579_v7 = vld [vmem:[#allocation6 + $0x10] sm:$0xff]   ;;  %s686_s25 = scalar_lea.vmem %s457_s24, 512  ;;  %p691_p11 = scmp.lt.s32.totalorder %s457_s24, %s457_s24 }
  0x3b   :  { %542 = vmatprep.subr.bf16.mxu1 %v574_v2  ;;  %506 = vmatprep.subr.bf16.mxu0 %v575_v3  ;;  %v580_v8 = vld [vmem:[#allocation6 + $0x90] sm:$0xff]   ;;  %v581_v9 = vld [vmem:[#allocation6 + $0x58] sm:$0xff]   ;;  %v584_v12 = vld [vmem:[#allocation6 + $0x60] sm:$0xff]   ;;  %p687_p10 = scmp.ne.s32.totalorder %s457_s24, %s686_s25  ;;  %p692_p12 = scmp.lt.s32.totalorder %s686_s25, %s686_s25 }
  0x3c   :  { %543 = vmatpush3.bf16.msra.mxu1 %v574_v2  ;;  %v582_v10 = vld [vmem:[#allocation6 + $0x18] sm:$0xff]   ;;  %v586_v13 = vld [vmem:[#allocation6 + $0xa0] sm:$0xff]   ;;  %v587_v15 = vld [vmem:[#allocation6 + $0x68] sm:$0xff]  }
  0x3d   :  { %544 = vmatprep.subr.bf16.mxu1 %v577_v5  ;;  %v583_v11 = vld [vmem:[#allocation6 + $0x98] sm:$0xff]   ;;  %v585_v14 = vld [vmem:[#allocation6 + $0x20] sm:$0xff]   ;;  %v589_v16 = vld [vmem:[#allocation6 + $0xa8] sm:$0xff]   ;;  %p693_p13 = por %p692_p12, %p691_p11 }
  0x3e   :  { %507 = vmatpush3.bf16.msra.mxu0 %v576_v4  ;;  %v588_v17 = vld [vmem:[#allocation6 + $0x28] sm:$0xff]   ;;  %v590_v18 = vld [vmem:[#allocation6 + $0x70] sm:$0xff]   ;;  %v593_v21 = vld [vmem:[#allocation6 + $0x78] sm:$0xff]  }
  0x3f   :  { %508 = vmatprep.subr.bf16.mxu0 %v578_v6  ;;  %v591_v19 = vld [vmem:[#allocation6 + $0x30] sm:$0xff]   ;;  %v595_v22 = vld [vmem:[#allocation6 + $0xb8] sm:$0xff]   ;;  %v499_v37 = vld [vmem:[#allocation8] ss:$0 sm:$0xff]  ;;  %p694_p0 = pnand %p693_p13, %p687_p10 }
  0x40   :  { %545 = vmatpush3.bf16.msra.mxu1 %v577_v5  ;;  %v592_v20 = vld [vmem:[#allocation6 + $0xb0] sm:$0xff]   ;;  %v599_v24 = vld [vmem:[#allocation3 + $0x8] ss:$12 sps:$4 sm:$0xff]  }
  0x41   :  { %546 = vmatprep.subr.bf16.mxu1 %v580_v8  ;;  %v598_v23 = vld [vmem:[#allocation3 + $0x4] ss:$12 sps:$4 sm:$0xff]   ;;  %v594_v25 = vld [vmem:[#allocation6 + $0x38] sm:$0xff]   ;;  %558 = vmatprep.mubr.bf16.mxu1 %v599_v24 }
  0x42   :  { %509 = vmatpush3.bf16.msra.mxu0 %v579_v7  ;;  %331 = vmatprep.mubr.bf16.mxu0 %v598_v23  ;;  %v596_v26 = vld [vmem:[#allocation3] ss:$12 sps:$4 sm:$0xff]   ;;  %v601_v27 = vld [vmem:[#allocation3 + $0x1c] ss:$12 sps:$4 sm:$0xff]   ;;  %v603_v29 = vld [vmem:[#allocation3 + $0x18] ss:$12 sps:$4 sm:$0xff]  }
  0x43   :  { %510 = vmatprep.subr.bf16.mxu0 %v581_v9  ;;  %v600_v28 = vld [vmem:[#allocation3 + $0x20] ss:$12 sps:$4 sm:$0xff]  }
  0x44   :  { %547 = vmatpush3.bf16.msra.mxu1 %v580_v8 }
  0x45   :  { %548 = vmatprep.subr.bf16.mxu1 %v583_v11 }
  0x46   :  { %511 = vmatpush3.bf16.msra.mxu0 %v582_v10 }
  0x47   :  { %512 = vmatprep.subr.bf16.mxu0 %v584_v12 }
  0x48   :  { %549 = vmatpush3.bf16.msra.mxu1 %v583_v11 }
  0x49   :  { %550 = vmatprep.subr.bf16.mxu1 %v586_v13 }
  0x4a   :  { %513 = vmatpush3.bf16.msra.mxu0 %v585_v14 }
  0x4b   :  { %514 = vmatprep.subr.bf16.mxu0 %v587_v15 }
  0x4c   :  { %551 = vmatpush3.bf16.msra.mxu1 %v586_v13 }
  0x4d   :  { %552 = vmatprep.subr.bf16.mxu1 %v589_v16 }
  0x4e   :  { %515 = vmatpush3.bf16.msra.mxu0 %v588_v17 }
  0x4f   :  { %516 = vmatprep.subr.bf16.mxu0 %v590_v18 }
  0x50   :  { %553 = vmatpush3.bf16.msra.mxu1 %v589_v16 }
  0x51   :  { %554 = vmatprep.subr.bf16.mxu1 %v592_v20 }
  0x52   :  { %517 = vmatpush3.bf16.msra.mxu0 %v591_v19 }
  0x53   :  { %518 = vmatprep.subr.bf16.mxu0 %v593_v21 }
  0x54   :  { %555 = vmatpush3.bf16.msra.mxu1 %v592_v20 }
  0x55   :  { %556 = vmatprep.subr.bf16.mxu1 %v595_v22 }
  0x56   :  { %519 = vmatpush3.bf16.msra.mxu0 %v594_v25 }
  0x58   :  { %557 = vmatpush3.bf16.msra.mxu1 %v595_v22 }
  0x59   :  { %332 = vmatmul.mubr.bf16.vlgmr.msra.gmra.mrb[0].mxu0 %v596_v26 }
  0x5a   :  { %339 = vmatprep.mubr.bf16.mxu0 %v601_v27 }
  0x5b   :  { %559 = vmatmul.mubr.bf16.vlgmr.msra.gmra.mrb[0].mxu1 %v600_v28 }
  0x61   :  { %340 = vmatmul.mubr.bf16.gmra.mrb[4].mxu0 %v603_v29 }
 0x12c   :  { %v520_v30 = vpop.f32.mrb[0].mxu0 }
 0x12d   :  { %v521_v31 = vpop.f32.mrb[1].mxu0 }
 0x12e   :  { %v522_v32 = vadd.f32 %v521_v31, %v520_v30  ;;  %v523_v33 = vpop.f32.mrb[2].mxu0  ;;  %v560_v34 = vpop.f32.mrb[0].mxu1 }
 0x12f   :  { %v524_v35 = vpop.f32.mrb[3].mxu0  ;;  %v382_v36 = vpop.f32.mrb[1].mxu1 }
 0x130   :  { %v525_v38 = vadd.f32 %v524_v35, %v523_v33  ;;  %v383_v39 = vadd.f32 %v522_v32, %v382_v36  ;;  %v561_v40 = vpop.f32.mrb[2].mxu1 }
 0x131   :  { %v385_v41 = vpop.f32.mrb[3].mxu1 }
 0x132   :  { %v419_v42 = vadd.f32 %v499_v37, %v383_v39  ;;  %v386_v43 = vadd.f32 %v525_v38, %v385_v41 }
 0x134   :  { %v500_v44 = vmul.f32 -1.442695, %v419_v42  ;;  %v420_v45 = vadd.f32 %v499_v37, %v386_v43  ;;  %v526_v46 = vpop.f32.mrb[4].mxu0 }
 0x135   :  { %v527_v47 = vpop.f32.mrb[5].mxu0 }
 0x136   :  { %604 = vpow2.f32 %v500_v44  ;;  %v501_v48 = vmul.f32 -1.442695, %v420_v45  ;;  %v528_v49 = vadd.f32 %v527_v47, %v526_v46  ;;  %v529_v50 = vpop.f32.mrb[6].mxu0 }
 0x137   :  { %v530_v51 = vpop.f32.mrb[7].mxu0 }
 0x138   :  { %606 = vpow2.f32 %v501_v48  ;;  %v391_v52 = vadd.f32 %v560_v34, %v528_v49  ;;  %v531_v53 = vadd.f32 %v530_v51, %v529_v50 }
 0x13a   :  { %v421_v54 = vadd.f32 %v499_v37, %v391_v52  ;;  %v394_v55 = vadd.f32 %v561_v40, %v531_v53 }
 0x13c   :  { %v502_v56 = vmul.f32 -1.442695, %v421_v54  ;;  %v422_v57 = vadd.f32 %v499_v37, %v394_v55 }
 0x13e   :  { %608 = vpow2.f32 %v502_v56  ;;  %v503_v58 = vmul.f32 -1.442695, %v422_v57 }
 0x140   :  { %v605_v59 = vpop.eup %604  ;;  %610 = vpow2.f32 %v503_v58 }
 0x141   :  { %v435_v60 = vadd.f32 1.0, %v605_v59 }
 0x142   :  { %v607_v61 = vpop.eup %606 }
 0x143   :  { %612 = vrcp.f32 %v435_v60  ;;  %v436_v62 = vadd.f32 1.0, %v607_v61 }
 0x145   :  { %614 = vrcp.f32 %v436_v62 }
 0x148   :  { %v609_v63 = vpop.eup %608 }
 0x149   :  { %v437_v0 = vadd.f32 1.0, %v609_v63 }
 0x14a   :  { %v611_v1 = vpop.eup %610 }
 0x14b   :  { %616 = vrcp.f32 %v437_v0  ;;  %v438_v2 = vadd.f32 1.0, %v611_v1 }
 0x14d   :  { %v613_v3 = vpop.eup %612  ;;  %618 = vrcp.f32 %v438_v2 }
 0x14e   :  { %447 = vst [vmem:[#allocation9] sm:$0xff] %v613_v3 }
 0x14f   :  { %v615_v4 = vpop.eup %614 }
 0x150   :  { %448 = vst [vmem:[#allocation9 + $0x8] sm:$0xff] %v615_v4 }
 0x155   :  { %v617_v5 = vpop.eup %616 }
 0x156   :  { %449 = vst [vmem:[#allocation9 + $0x10] sm:$0xff] %v617_v5 }
 0x157   :  { %v619_v6 = vpop.eup %618 }
 0x158   :  { %450 = vst [vmem:[#allocation9 + $0x18] sm:$0xff] %v619_v6 }
 0x159   :  { %697 = shalt.err (!%p694_p0)
}
 0x15a   :  { %s698_s28 = scalar_lea.hbm %s795_s3, 512 }
 0x15b   :  { %p699_p1 = scmp.ne.s32.totalorder %s795_s3, %s698_s28  ;;  %p702_p2 = scmp.lt.u32.totalorder %s698_s28, %s795_s3 }
 0x15d   :  { %p704_p3 = pnand %p702_p2, %p699_p1 }
 0x15f   :  { %707 = shalt.err (!%p704_p3)
}
 0x160   :  { %s722_s6 = smov 128   ;;  %s723_s7 = smov 8  }
 0x161   :  { %462 = dma.vmem_to_hbm [thread:$0]  %s457_s24, 512, %s795_s3, [#allocation5], %s722_s6, %s722_s6, %s723_s7  }
 0x162   :  { %712 = dma.done.wait [#allocation5], 512  }
 0x163   :  { %713 = vsyncadd [#allocation5], 4294966784 }
 0x164   :  { %466 = vsyncpa [#allocation4], 1 }
 0x165   :  { %467 = vsyncpa [#allocation7], 1 }
 0x166   :  { %468 = vsyncpa [#allocation5], 1 }

// kernel: _lambda_.34
= control target key start
LH: loop header
LB: loop body
LE: loop exit
PB: predicated region body
PF: predicated region fallthrough
CT: control target
= control target key end

     0   :  { %s43_s0 = inlined_call_operand.vmem [shape: f32[8,128], index: 0, kind: input, shape index: {}]   ;;  %s44_s1 = inlined_call_operand.vmem [shape: f32[8,128], index: 1, kind: input, shape index: {}]   ;;  %s45_s2 = inlined_call_operand.vmem [shape: f32[8,128], index: 2, kind: output, shape index: {}]  }
   0x1   :  { %v11_v0 = vld [vmem:[%s43_s0] sm:$0xff] }
   0x2   :  { %v12_v1 = vld [vmem:[%s44_s1] sm:$0xff] }
   0x3   :  { %v13_v2 = vmul.f32 %v12_v1, %v11_v0 }
   0x5   :  { %14 = vst [vmem:[%s45_s2] sm:$0xff] %v13_v2 }

// kernel: _lambda_.35
= control target key start
LH: loop header
LB: loop body
LE: loop exit
PB: predicated region body
PF: predicated region fallthrough
CT: control target
= control target key end

     0   :  { %8 = vsyncpa [#allocation4], 0  ;;  %s760_s0 = inlined_call_operand.hbm [shape: bf16[32,384], index: 0, kind: input, shape index: {}]   ;;  %s761_s1 = inlined_call_operand.hbm [shape: bf16[384,128], index: 1, kind: input, shape index: {}]   ;;  %s762_s2 = inlined_call_operand.hbm [shape: f32[1,128], index: 2, kind: input, shape index: {}]   ;;  %s763_s3 = inlined_call_operand.hbm [shape: f32[32,128], index: 3, kind: output, shape index: {}]  }
   0x1   :  { %9 = vsyncpa [#allocation7], 0 }
   0x2   :  { %10 = vsyncpa [#allocation5], 0  ;;  %s682_s12 = smov [#allocation6]   ;;  %s588_s16 = scalar_lea.hbm %s761_s1, 3072 }
   0x3   :  { %s28_s13 = sshll.u32 %s682_s12, 4  ;;  %p589_p0 = scmp.ne.s32.totalorder %s761_s1, %s588_s16  ;;  %s29_s13 = int_to_ptr.vmem [resolvable:$true] %s28_s13 }
   0x4   :  { %p592_p1 = scmp.lt.u32.totalorder %s588_s16, %s761_s1 }
   0x6   :  { %p594_p2 = pnand %p592_p1, %p589_p0 }
   0x8   :  { %597 = shalt.err (!%p594_p2)
}
   0x9   :  { %s598_s21 = scalar_lea.vmem %s29_s13, 3072  ;;  %p603_p4 = scmp.lt.s32.totalorder %s29_s13, %s29_s13 }
   0xa   :  { %p599_p3 = scmp.ne.s32.totalorder %s29_s13, %s598_s21  ;;  %p604_p5 = scmp.lt.s32.totalorder %s598_s21, %s598_s21 }
   0xc   :  { %p605_p6 = por %p604_p5, %p603_p4 }
   0xe   :  { %p606_p7 = pnand %p605_p6, %p599_p3 }
  0x10   :  { %609 = shalt.err (!%p606_p7)
}
  0x11   :  { %s683_s22 = smov 64   ;;  %s684_s23 = smov 4  }
  0x12   :  { %34 = dma.hbm_to_vmem [thread:$0]  %s761_s1, 3072, %s29_s13, [#allocation7], %s683_s22, %s683_s22, %s684_s23  }
  0x13   :  { %s685_s26 = smov [#allocation3]   ;;  %s610_s30 = scalar_lea.hbm %s760_s0, 768 }
  0x14   :  { %s16_s27 = sshll.u32 %s685_s26, 4  ;;  %p611_p8 = scmp.ne.s32.totalorder %s760_s0, %s610_s30  ;;  %s17_s27 = int_to_ptr.vmem [resolvable:$true] %s16_s27 }
  0x15   :  { %p614_p9 = scmp.lt.u32.totalorder %s610_s30, %s760_s0 }
  0x17   :  { %p616_p10 = pnand %p614_p9, %p611_p8 }
  0x19   :  { %619 = shalt.err (!%p616_p10)
}
  0x1a   :  { %s620_s8 = scalar_lea.vmem %s17_s27, 768  ;;  %p625_p12 = scmp.lt.s32.totalorder %s17_s27, %s17_s27 }
  0x1b   :  { %p621_p11 = scmp.ne.s32.totalorder %s17_s27, %s620_s8  ;;  %p626_p13 = scmp.lt.s32.totalorder %s620_s8, %s620_s8 }
  0x1d   :  { %p627_p0 = por %p626_p13, %p625_p12 }
  0x1f   :  { %p628_p1 = pnand %p627_p0, %p621_p11 }
  0x21   :  { %631 = shalt.err (!%p628_p1)
}
  0x22   :  { %s686_s1 = smov 192   ;;  %s687_s9 = smov 12  }
  0x23   :  { %22 = dma.hbm_to_vmem [thread:$0]  %s760_s0, 768, %s17_s27, [#allocation4], %s686_s1, %s686_s1, %s687_s9  }
  0x24   :  { %s688_s12 = smov [#allocation8]   ;;  %s632_s16 = scalar_lea.hbm %s762_s2, 16 }
  0x25   :  { %s41_s13 = sshll.u32 %s688_s12, 4  ;;  %p633_p2 = scmp.ne.s32.totalorder %s762_s2, %s632_s16  ;;  %s42_s13 = int_to_ptr.vmem [resolvable:$true] %s41_s13 }
  0x26   :  { %p636_p3 = scmp.lt.u32.totalorder %s632_s16, %s762_s2 }
  0x28   :  { %p638_p4 = pnand %p636_p3, %p633_p2 }
  0x2a   :  { %641 = shalt.err (!%p638_p4)
}
  0x2b   :  { %s642_s21 = scalar_lea.vmem %s42_s13, 16  ;;  %s646_s0 = scalar_lea.vmem %s42_s13, 32 }
  0x2c   :  { %p643_p5 = scmp.ne.s32.totalorder %s42_s13, %s642_s21  ;;  %p647_p6 = scmp.lt.s32.totalorder %s42_s13, %s42_s13 }
  0x2d   :  { %p648_p7 = scmp.lt.s32.totalorder %s646_s0, %s642_s21 }
  0x2f   :  { %p649_p8 = por %p648_p7, %p647_p6 }
  0x31   :  { %p650_p9 = pnand %p649_p8, %p643_p5 }
  0x33   :  { %653 = shalt.err (!%p650_p9)
}
  0x34   :  { %44 = dma.hbm_to_vmem [thread:$0]  %s762_s2, 16, %s42_s13, [#allocation7]  }
  0x35   :  { %676 = dma.done.wait [#allocation4], 768  }
  0x36   :  { %677 = vsyncadd [#allocation4], 4294966528 }
  0x37   :  { %678 = dma.done.wait [#allocation7], 3088  }
  0x38   :  { %679 = vsyncadd [#allocation7], 4294964208  ;;  %v548_v0 = vld [vmem:[#allocation6 + $0x40] sm:$0xff]   ;;  %v551_v3 = vld [vmem:[#allocation6 + $0x48] sm:$0xff]   ;;  %s689_s2 = smov [#allocation9]  }
  0x39   :  { %v549_v1 = vld [vmem:[#allocation6] sm:$0xff]   ;;  %480 = vmatprep.subr.bf16.mxu0 %v548_v0  ;;  %v552_v4 = vld [vmem:[#allocation6 + $0x8] sm:$0xff]   ;;  %v554_v6 = vld [vmem:[#allocation6 + $0x50] sm:$0xff]   ;;  %s436_s24 = sshll.u32 %s689_s2, 4  ;;  %s437_s24 = int_to_ptr.vmem [resolvable:$true] %s436_s24 }
  0x3a   :  { %v550_v2 = vld [vmem:[#allocation6 + $0x80] sm:$0xff]   ;;  %481 = vmatpush3.bf16.msra.mxu0 %v549_v1  ;;  %v553_v5 = vld [vmem:[#allocation6 + $0x88] sm:$0xff]   ;;  %v555_v7 = vld [vmem:[#allocation6 + $0x10] sm:$0xff]   ;;  %s654_s25 = scalar_lea.vmem %s437_s24, 512  ;;  %p659_p11 = scmp.lt.s32.totalorder %s437_s24, %s437_s24 }
  0x3b   :  { %518 = vmatprep.subr.bf16.mxu1 %v550_v2  ;;  %482 = vmatprep.subr.bf16.mxu0 %v551_v3  ;;  %v556_v8 = vld [vmem:[#allocation6 + $0x90] sm:$0xff]   ;;  %v557_v9 = vld [vmem:[#allocation6 + $0x58] sm:$0xff]   ;;  %v560_v12 = vld [vmem:[#allocation6 + $0x60] sm:$0xff]   ;;  %p655_p10 = scmp.ne.s32.totalorder %s437_s24, %s654_s25  ;;  %p660_p12 = scmp.lt.s32.totalorder %s654_s25, %s654_s25 }
  0x3c   :  { %519 = vmatpush3.bf16.msra.mxu1 %v550_v2  ;;  %v558_v10 = vld [vmem:[#allocation6 + $0x18] sm:$0xff]   ;;  %v562_v13 = vld [vmem:[#allocation6 + $0xa0] sm:$0xff]   ;;  %v563_v15 = vld [vmem:[#allocation6 + $0x68] sm:$0xff]  }
  0x3d   :  { %520 = vmatprep.subr.bf16.mxu1 %v553_v5  ;;  %v559_v11 = vld [vmem:[#allocation6 + $0x98] sm:$0xff]   ;;  %v561_v14 = vld [vmem:[#allocation6 + $0x20] sm:$0xff]   ;;  %v565_v16 = vld [vmem:[#allocation6 + $0xa8] sm:$0xff]   ;;  %p661_p13 = por %p660_p12, %p659_p11 }
  0x3e   :  { %483 = vmatpush3.bf16.msra.mxu0 %v552_v4  ;;  %v564_v17 = vld [vmem:[#allocation6 + $0x28] sm:$0xff]   ;;  %v566_v18 = vld [vmem:[#allocation6 + $0x70] sm:$0xff]   ;;  %v569_v21 = vld [vmem:[#allocation6 + $0x78] sm:$0xff]  }
  0x3f   :  { %484 = vmatprep.subr.bf16.mxu0 %v554_v6  ;;  %v567_v19 = vld [vmem:[#allocation6 + $0x30] sm:$0xff]   ;;  %v571_v22 = vld [vmem:[#allocation6 + $0xb8] sm:$0xff]   ;;  %v479_v37 = vld [vmem:[#allocation8] ss:$0 sm:$0xff]  ;;  %p662_p0 = pnand %p661_p13, %p655_p10 }
  0x40   :  { %521 = vmatpush3.bf16.msra.mxu1 %v553_v5  ;;  %v568_v20 = vld [vmem:[#allocation6 + $0xb0] sm:$0xff]   ;;  %v575_v24 = vld [vmem:[#allocation3 + $0x8] ss:$12 sps:$4 sm:$0xff]  }
  0x41   :  { %522 = vmatprep.subr.bf16.mxu1 %v556_v8  ;;  %v574_v23 = vld [vmem:[#allocation3 + $0x4] ss:$12 sps:$4 sm:$0xff]   ;;  %v570_v25 = vld [vmem:[#allocation6 + $0x38] sm:$0xff]   ;;  %534 = vmatprep.mubr.bf16.mxu1 %v575_v24 }
  0x42   :  { %485 = vmatpush3.bf16.msra.mxu0 %v555_v7  ;;  %331 = vmatprep.mubr.bf16.mxu0 %v574_v23  ;;  %v572_v26 = vld [vmem:[#allocation3] ss:$12 sps:$4 sm:$0xff]   ;;  %v577_v27 = vld [vmem:[#allocation3 + $0x1c] ss:$12 sps:$4 sm:$0xff]   ;;  %v579_v29 = vld [vmem:[#allocation3 + $0x18] ss:$12 sps:$4 sm:$0xff]  }
  0x43   :  { %486 = vmatprep.subr.bf16.mxu0 %v557_v9  ;;  %v576_v28 = vld [vmem:[#allocation3 + $0x20] ss:$12 sps:$4 sm:$0xff]  }
  0x44   :  { %523 = vmatpush3.bf16.msra.mxu1 %v556_v8 }
  0x45   :  { %524 = vmatprep.subr.bf16.mxu1 %v559_v11 }
  0x46   :  { %487 = vmatpush3.bf16.msra.mxu0 %v558_v10 }
  0x47   :  { %488 = vmatprep.subr.bf16.mxu0 %v560_v12 }
  0x48   :  { %525 = vmatpush3.bf16.msra.mxu1 %v559_v11 }
  0x49   :  { %526 = vmatprep.subr.bf16.mxu1 %v562_v13 }
  0x4a   :  { %489 = vmatpush3.bf16.msra.mxu0 %v561_v14 }
  0x4b   :  { %490 = vmatprep.subr.bf16.mxu0 %v563_v15 }
  0x4c   :  { %527 = vmatpush3.bf16.msra.mxu1 %v562_v13 }
  0x4d   :  { %528 = vmatprep.subr.bf16.mxu1 %v565_v16 }
  0x4e   :  { %491 = vmatpush3.bf16.msra.mxu0 %v564_v17 }
  0x4f   :  { %492 = vmatprep.subr.bf16.mxu0 %v566_v18 }
  0x50   :  { %529 = vmatpush3.bf16.msra.mxu1 %v565_v16 }
  0x51   :  { %530 = vmatprep.subr.bf16.mxu1 %v568_v20 }
  0x52   :  { %493 = vmatpush3.bf16.msra.mxu0 %v567_v19 }
  0x53   :  { %494 = vmatprep.subr.bf16.mxu0 %v569_v21 }
  0x54   :  { %531 = vmatpush3.bf16.msra.mxu1 %v568_v20 }
  0x55   :  { %532 = vmatprep.subr.bf16.mxu1 %v571_v22 }
  0x56   :  { %495 = vmatpush3.bf16.msra.mxu0 %v570_v25 }
  0x58   :  { %533 = vmatpush3.bf16.msra.mxu1 %v571_v22 }
  0x59   :  { %332 = vmatmul.mubr.bf16.vlgmr.msra.gmra.mrb[0].mxu0 %v572_v26 }
  0x5a   :  { %339 = vmatprep.mubr.bf16.mxu0 %v577_v27 }
  0x5b   :  { %535 = vmatmul.mubr.bf16.vlgmr.msra.gmra.mrb[0].mxu1 %v576_v28 }
  0x61   :  { %340 = vmatmul.mubr.bf16.gmra.mrb[4].mxu0 %v579_v29 }
 0x12c   :  { %v496_v30 = vpop.f32.mrb[0].mxu0 }
 0x12d   :  { %v497_v31 = vpop.f32.mrb[1].mxu0 }
 0x12e   :  { %v498_v32 = vadd.f32 %v497_v31, %v496_v30  ;;  %v499_v33 = vpop.f32.mrb[2].mxu0  ;;  %v536_v34 = vpop.f32.mrb[0].mxu1 }
 0x12f   :  { %v500_v35 = vpop.f32.mrb[3].mxu0  ;;  %v382_v36 = vpop.f32.mrb[1].mxu1 }
 0x130   :  { %v501_v38 = vadd.f32 %v500_v35, %v499_v33  ;;  %v383_v39 = vadd.f32 %v498_v32, %v382_v36  ;;  %v537_v40 = vpop.f32.mrb[2].mxu1 }
 0x131   :  { %v385_v41 = vpop.f32.mrb[3].mxu1 }
 0x132   :  { %v419_v42 = vadd.f32 %v479_v37, %v383_v39  ;;  %v386_v43 = vadd.f32 %v501_v38, %v385_v41 }
 0x134   :  { %580 = vtanh.f32 %v419_v42  ;;  %v420_v44 = vadd.f32 %v479_v37, %v386_v43  ;;  %v502_v45 = vpop.f32.mrb[4].mxu0 }
 0x135   :  { %v503_v46 = vpop.f32.mrb[5].mxu0 }
 0x136   :  { %582 = vtanh.f32 %v420_v44  ;;  %v504_v47 = vadd.f32 %v503_v46, %v502_v45  ;;  %v505_v48 = vpop.f32.mrb[6].mxu0 }
 0x137   :  { %v506_v49 = vpop.f32.mrb[7].mxu0 }
 0x138   :  { %v391_v50 = vadd.f32 %v536_v34, %v504_v47  ;;  %v507_v51 = vadd.f32 %v506_v49, %v505_v48 }
 0x13a   :  { %v421_v52 = vadd.f32 %v479_v37, %v391_v50  ;;  %v394_v53 = vadd.f32 %v537_v40, %v507_v51 }
 0x13c   :  { %584 = vtanh.f32 %v421_v52  ;;  %v422_v54 = vadd.f32 %v479_v37, %v394_v53 }
 0x13e   :  { %v581_v55 = vpop.eup %580  ;;  %586 = vtanh.f32 %v422_v54 }
 0x13f   :  { %427 = vst [vmem:[#allocation9] sm:$0xff] %v581_v55 }
 0x140   :  { %v583_v56 = vpop.eup %582 }
 0x141   :  { %428 = vst [vmem:[#allocation9 + $0x8] sm:$0xff] %v583_v56 }
 0x146   :  { %v585_v57 = vpop.eup %584 }
 0x147   :  { %429 = vst [vmem:[#allocation9 + $0x10] sm:$0xff] %v585_v57 }
 0x148   :  { %v587_v58 = vpop.eup %586 }
 0x149   :  { %430 = vst [vmem:[#allocation9 + $0x18] sm:$0xff] %v587_v58 }
 0x14a   :  { %665 = shalt.err (!%p662_p0)
}
 0x14b   :  { %s666_s28 = scalar_lea.hbm %s763_s3, 512 }
 0x14c   :  { %p667_p1 = scmp.ne.s32.totalorder %s763_s3, %s666_s28  ;;  %p670_p2 = scmp.lt.u32.totalorder %s666_s28, %s763_s3 }
 0x14e   :  { %p672_p3 = pnand %p670_p2, %p667_p1 }
 0x150   :  { %675 = shalt.err (!%p672_p3)
}
 0x151   :  { %s690_s6 = smov 128   ;;  %s691_s7 = smov 8  }
 0x152   :  { %442 = dma.vmem_to_hbm [thread:$0]  %s437_s24, 512, %s763_s3, [#allocation5], %s690_s6, %s690_s6, %s691_s7  }
 0x153   :  { %680 = dma.done.wait [#allocation5], 512  }
 0x154   :  { %681 = vsyncadd [#allocation5], 4294966784 }
 0x155   :  { %446 = vsyncpa [#allocation4], 1 }
 0x156   :  { %447 = vsyncpa [#allocation7], 1 }
 0x157   :  { %448 = vsyncpa [#allocation5], 1 }

// kernel: _lambda_.36
= control target key start
LH: loop header
LB: loop body
LE: loop exit
PB: predicated region body
PF: predicated region fallthrough
CT: control target
= control target key end

     0   :  { %s58_s0 = inlined_call_operand.vmem [shape: f32[8,128], index: 0, kind: input, shape index: {}]   ;;  %s59_s1 = inlined_call_operand.vmem [shape: f32[8,128], index: 1, kind: input, shape index: {}]   ;;  %s60_s2 = inlined_call_operand.vmem [shape: f32[8,128], index: 2, kind: input, shape index: {}]   ;;  %s61_s3 = inlined_call_operand.vmem [shape: f32[8,128], index: 3, kind: output, shape index: {}]  }
   0x1   :  { %v14_v0 = vld [vmem:[%s58_s0] sm:$0xff] }
   0x2   :  { %v16_v1 = vld [vmem:[%s60_s2] sm:$0xff]  ;;  %v15_v3 = vsub.f32 1.0, %v14_v0 }
   0x3   :  { %v18_v2 = vld [vmem:[%s59_s1] sm:$0xff] }
   0x4   :  { %v19_v4 = vmul.f32 %v18_v2, %v14_v0  ;;  %v17_v5 = vmul.f32 %v16_v1, %v15_v3 }
   0x6   :  { %v20_v6 = vadd.f32 %v19_v4, %v17_v5 }
   0x8   :  { %21 = vst [vmem:[%s61_s3] sm:$0xff] %v20_v6 }

// kernel: _lambda_.39
= control target key start
LH: loop header
LB: loop body
LE: loop exit
PB: predicated region body
PF: predicated region fallthrough
CT: control target
= control target key end

     0   :  { %8 = vsyncpa [#allocation4], 0  ;;  %s1051_s0 = inlined_call_operand.hbm [shape: bf16[128,256], index: 0, kind: input, shape index: {}]   ;;  %s1052_s1 = inlined_call_operand.hbm [shape: bf16[256,128], index: 1, kind: input, shape index: {}]   ;;  %s1053_s2 = inlined_call_operand.hbm [shape: f32[1,128], index: 2, kind: input, shape index: {}]   ;;  %s1054_s3 = inlined_call_operand.hbm [shape: f32[128,128], index: 3, kind: output, shape index: {}]  }
   0x1   :  { %9 = vsyncpa [#allocation7], 0 }
   0x2   :  { %10 = vsyncpa [#allocation5], 0  ;;  %s951_s12 = smov [#allocation6]   ;;  %s857_s16 = scalar_lea.hbm %s1052_s1, 2048 }
   0x3   :  { %s28_s13 = sshll.u32 %s951_s12, 4  ;;  %p858_p0 = scmp.ne.s32.totalorder %s1052_s1, %s857_s16  ;;  %s29_s13 = int_to_ptr.vmem [resolvable:$true] %s28_s13 }
   0x4   :  { %p861_p1 = scmp.lt.u32.totalorder %s857_s16, %s1052_s1 }
   0x6   :  { %p863_p2 = pnand %p861_p1, %p858_p0 }
   0x8   :  { %866 = shalt.err (!%p863_p2)
}
   0x9   :  { %s867_s21 = scalar_lea.vmem %s29_s13, 2048  ;;  %p872_p4 = scmp.lt.s32.totalorder %s29_s13, %s29_s13 }
   0xa   :  { %p868_p3 = scmp.ne.s32.totalorder %s29_s13, %s867_s21  ;;  %p873_p5 = scmp.lt.s32.totalorder %s867_s21, %s867_s21 }
   0xc   :  { %p874_p6 = por %p873_p5, %p872_p4 }
   0xe   :  { %p875_p7 = pnand %p874_p6, %p868_p3 }
  0x10   :  { %878 = shalt.err (!%p875_p7)
}
  0x11   :  { %s952_s22 = smov 64   ;;  %s953_s23 = smov 4  }
  0x12   :  { %34 = dma.hbm_to_vmem [thread:$0]  %s1052_s1, 2048, %s29_s13, [#allocation7], %s952_s22, %s952_s22, %s953_s23  }
  0x13   :  { %s954_s26 = smov [#allocation3]   ;;  %s879_s30 = scalar_lea.hbm %s1051_s0, 2048 }
  0x14   :  { %s16_s27 = sshll.u32 %s954_s26, 4  ;;  %p880_p8 = scmp.ne.s32.totalorder %s1051_s0, %s879_s30  ;;  %s17_s27 = int_to_ptr.vmem [resolvable:$true] %s16_s27 }
  0x15   :  { %p883_p9 = scmp.lt.u32.totalorder %s879_s30, %s1051_s0 }
  0x17   :  { %p885_p10 = pnand %p883_p9, %p880_p8 }
  0x19   :  { %888 = shalt.err (!%p885_p10)
}
  0x1a   :  { %s889_s8 = scalar_lea.vmem %s17_s27, 2048  ;;  %p894_p12 = scmp.lt.s32.totalorder %s17_s27, %s17_s27 }
  0x1b   :  { %p890_p11 = scmp.ne.s32.totalorder %s17_s27, %s889_s8  ;;  %p895_p13 = scmp.lt.s32.totalorder %s889_s8, %s889_s8 }
  0x1d   :  { %p896_p0 = por %p895_p13, %p894_p12 }
  0x1f   :  { %p897_p1 = pnand %p896_p0, %p890_p11 }
  0x21   :  { %900 = shalt.err (!%p897_p1)
}
  0x22   :  { %s955_s1 = smov 128   ;;  %s956_s9 = smov 8  }
  0x23   :  { %22 = dma.hbm_to_vmem [thread:$0]  %s1051_s0, 2048, %s17_s27, [#allocation4], %s955_s1, %s955_s1, %s956_s9  }
  0x24   :  { %s957_s12 = smov [#allocation8]   ;;  %s901_s16 = scalar_lea.hbm %s1053_s2, 16 }
  0x25   :  { %s41_s13 = sshll.u32 %s957_s12, 4  ;;  %p902_p2 = scmp.ne.s32.totalorder %s1053_s2, %s901_s16  ;;  %s42_s13 = int_to_ptr.vmem [resolvable:$true] %s41_s13 }
  0x26   :  { %p905_p3 = scmp.lt.u32.totalorder %s901_s16, %s1053_s2 }
  0x28   :  { %p907_p4 = pnand %p905_p3, %p902_p2 }
  0x2a   :  { %910 = shalt.err (!%p907_p4)
}
  0x2b   :  { %s911_s21 = scalar_lea.vmem %s42_s13, 16  ;;  %s915_s0 = scalar_lea.vmem %s42_s13, 32 }
  0x2c   :  { %p912_p5 = scmp.ne.s32.totalorder %s42_s13, %s911_s21  ;;  %p916_p6 = scmp.lt.s32.totalorder %s42_s13, %s42_s13 }
  0x2d   :  { %p917_p7 = scmp.lt.s32.totalorder %s915_s0, %s911_s21 }
  0x2f   :  { %p918_p8 = por %p917_p7, %p916_p6 }
  0x31   :  { %p919_p9 = pnand %p918_p8, %p912_p5 }
  0x33   :  { %922 = shalt.err (!%p919_p9)
}
  0x34   :  { %44 = dma.hbm_to_vmem [thread:$0]  %s1053_s2, 16, %s42_s13, [#allocation7]  }
  0x35   :  { %945 = dma.done.wait [#allocation4], 2048  }
  0x36   :  { %946 = vsyncadd [#allocation4], 4294965248 }
  0x37   :  { %947 = dma.done.wait [#allocation7], 2064  }
  0x38   :  { %948 = vsyncadd [#allocation7], 4294965232  ;;  %v753_v0 = vld [vmem:[#allocation6 + $0x40] sm:$0xff]   ;;  %v755_v2 = vld [vmem:[#allocation6 + $0x48] sm:$0xff]   ;;  %s958_s2 = smov [#allocation9]  }
  0x39   :  { %v754_v1 = vld [vmem:[#allocation6] sm:$0xff]   ;;  %665 = vmatprep.subr.bf16.mxu0 %v753_v0  ;;  %729 = vmatprep.subr.bf16.mxu1 %v753_v0  ;;  %v756_v3 = vld [vmem:[#allocation6 + $0x8] sm:$0xff]   ;;  %v757_v4 = vld [vmem:[#allocation6 + $0x50] sm:$0xff]   ;;  %s603_s24 = sshll.u32 %s958_s2, 4  ;;  %s604_s24 = int_to_ptr.vmem [resolvable:$true] %s603_s24 }
  0x3a   :  { %666 = vmatpush3.bf16.msra.mxu0 %v754_v1  ;;  %737 = vmatpush3.bf16.msra.mxu1 %v754_v1  ;;  %v758_v5 = vld [vmem:[#allocation6 + $0x10] sm:$0xff]   ;;  %v759_v6 = vld [vmem:[#allocation6 + $0x58] sm:$0xff]   ;;  %v761_v8 = vld [vmem:[#allocation6 + $0x60] sm:$0xff]   ;;  %s923_s25 = scalar_lea.vmem %s604_s24, 2048  ;;  %p928_p11 = scmp.lt.s32.totalorder %s604_s24, %s604_s24 }
  0x3b   :  { %667 = vmatprep.subr.bf16.mxu0 %v755_v2  ;;  %730 = vmatprep.subr.bf16.mxu1 %v755_v2  ;;  %v760_v7 = vld [vmem:[#allocation6 + $0x18] sm:$0xff]   ;;  %v762_v9 = vld [vmem:[#allocation6 + $0x20] sm:$0xff]   ;;  %v763_v10 = vld [vmem:[#allocation6 + $0x68] sm:$0xff]   ;;  %p924_p10 = scmp.ne.s32.totalorder %s604_s24, %s923_s25  ;;  %p929_p12 = scmp.lt.s32.totalorder %s923_s25, %s923_s25 }
  0x3c   :  { %v771_v11 = vld [vmem:[#allocation3 + $0x4] ss:$8 sps:$4 sm:$0xff]   ;;  %v765_v14 = vld [vmem:[#allocation6 + $0x70] sm:$0xff]   ;;  %v767_v16 = vld [vmem:[#allocation6 + $0x78] sm:$0xff]  }
  0x3d   :  { %v774_v12 = vld [vmem:[#allocation3 + $0x44] ss:$8 sps:$4 sm:$0xff]   ;;  %347 = vmatprep.mubr.bf16.mxu0 %v771_v11  ;;  %v766_v15 = vld [vmem:[#allocation6 + $0x30] sm:$0xff]   ;;  %v768_v17 = vld [vmem:[#allocation6 + $0x38] sm:$0xff]   ;;  %p930_p13 = por %p929_p12, %p928_p11 }
  0x3e   :  { %668 = vmatpush3.bf16.msra.mxu0 %v756_v3  ;;  %738 = vmatpush3.bf16.msra.mxu1 %v756_v3  ;;  %v764_v13 = vld [vmem:[#allocation6 + $0x28] sm:$0xff]   ;;  %v775_v20 = vld [vmem:[#allocation3 + $0x14] ss:$8 sps:$4 sm:$0xff]   ;;  %v779_v22 = vld [vmem:[#allocation3 + $0x10] ss:$8 sps:$4 sm:$0xff]  }
  0x3f   :  { %669 = vmatprep.subr.bf16.mxu0 %v757_v4  ;;  %731 = vmatprep.subr.bf16.mxu1 %v757_v4  ;;  %v769_v18 = vld [vmem:[#allocation3] ss:$8 sps:$4 sm:$0xff]   ;;  %v777_v21 = vld [vmem:[#allocation3 + $0x54] ss:$8 sps:$4 sm:$0xff]   ;;  %v780_v23 = vld [vmem:[#allocation3 + $0x50] ss:$8 sps:$4 sm:$0xff]   ;;  %p931_p0 = pnand %p930_p13, %p924_p10 }
  0x40   :  { %379 = vmatprep.mubr.bf16.mxu1 %v774_v12  ;;  %v772_v19 = vld [vmem:[#allocation3 + $0x40] ss:$8 sps:$4 sm:$0xff]   ;;  %v781_v24 = vld [vmem:[#allocation3 + $0x24] ss:$8 sps:$4 sm:$0xff]   ;;  %v787_v28 = vld [vmem:[#allocation3 + $0x34] ss:$8 sps:$4 sm:$0xff]  }
  0x41   :  { %v783_v25 = vld [vmem:[#allocation3 + $0x64] ss:$8 sps:$4 sm:$0xff]   ;;  %v785_v26 = vld [vmem:[#allocation3 + $0x20] ss:$8 sps:$4 sm:$0xff]   ;;  %v789_v29 = vld [vmem:[#allocation3 + $0x74] ss:$8 sps:$4 sm:$0xff]  }
  0x42   :  { %670 = vmatpush3.bf16.msra.mxu0 %v758_v5  ;;  %739 = vmatpush3.bf16.msra.mxu1 %v758_v5  ;;  %v786_v27 = vld [vmem:[#allocation3 + $0x60] ss:$8 sps:$4 sm:$0xff]   ;;  %v791_v30 = vld [vmem:[#allocation3 + $0x30] ss:$8 sps:$4 sm:$0xff]  }
  0x43   :  { %671 = vmatprep.subr.bf16.mxu0 %v759_v6  ;;  %732 = vmatprep.subr.bf16.mxu1 %v759_v6  ;;  %v792_v31 = vld [vmem:[#allocation3 + $0x70] ss:$8 sps:$4 sm:$0xff]   ;;  %v1018_v35 = vld [vmem:[#allocation8] ss:$0 sm:$0xff] }
  0x46   :  { %672 = vmatpush3.bf16.msra.mxu0 %v760_v7  ;;  %740 = vmatpush3.bf16.msra.mxu1 %v760_v7 }
  0x47   :  { %673 = vmatprep.subr.bf16.mxu0 %v761_v8  ;;  %733 = vmatprep.subr.bf16.mxu1 %v761_v8 }
  0x4a   :  { %674 = vmatpush3.bf16.msra.mxu0 %v762_v9  ;;  %741 = vmatpush3.bf16.msra.mxu1 %v762_v9 }
  0x4b   :  { %675 = vmatprep.subr.bf16.mxu0 %v763_v10  ;;  %734 = vmatprep.subr.bf16.mxu1 %v763_v10 }
  0x4e   :  { %676 = vmatpush3.bf16.msra.mxu0 %v764_v13  ;;  %742 = vmatpush3.bf16.msra.mxu1 %v764_v13 }
  0x4f   :  { %677 = vmatprep.subr.bf16.mxu0 %v765_v14  ;;  %735 = vmatprep.subr.bf16.mxu1 %v765_v14 }
  0x52   :  { %678 = vmatpush3.bf16.msra.mxu0 %v766_v15  ;;  %743 = vmatpush3.bf16.msra.mxu1 %v766_v15 }
  0x53   :  { %679 = vmatprep.subr.bf16.mxu0 %v767_v16  ;;  %736 = vmatprep.subr.bf16.mxu1 %v767_v16 }
  0x56   :  { %680 = vmatpush3.bf16.msra.mxu0 %v768_v17  ;;  %744 = vmatpush3.bf16.msra.mxu1 %v768_v17 }
  0x59   :  { %348 = vmatmul.mubr.bf16.vlgmr.msra.gmra.mrb[0].mxu0 %v769_v18  ;;  %380 = vmatmul.mubr.bf16.vlgmr.msra.gmra.mrb[0].mxu1 %v772_v19 }
  0x5a   :  { %355 = vmatprep.mubr.bf16.mxu0 %v775_v20  ;;  %387 = vmatprep.mubr.bf16.mxu1 %v777_v21 }
  0x61   :  { %356 = vmatmul.mubr.bf16.gmra.mrb[4].mxu0 %v779_v22  ;;  %388 = vmatmul.mubr.bf16.gmra.mrb[4].mxu1 %v780_v23 }
  0x62   :  { %363 = vmatprep.mubr.bf16.mxu0 %v781_v24  ;;  %395 = vmatprep.mubr.bf16.mxu1 %v783_v25 }
  0x69   :  { %364 = vmatmul.mubr.bf16.gmra.mrb[8].mxu0 %v785_v26  ;;  %396 = vmatmul.mubr.bf16.gmra.mrb[8].mxu1 %v786_v27 }
  0x6a   :  { %371 = vmatprep.mubr.bf16.mxu0 %v787_v28  ;;  %403 = vmatprep.mubr.bf16.mxu1 %v789_v29 }
  0x71   :  { %372 = vmatmul.mubr.bf16.gmra.mrb[12].mxu0 %v791_v30  ;;  %404 = vmatmul.mubr.bf16.gmra.mrb[12].mxu1 %v792_v31 }
 0x12c   :  { %v681_v32 = vpop.f32.mrb[0].mxu0  ;;  %v705_v33 = vpop.f32.mrb[0].mxu1 }
 0x12d   :  { %v682_v34 = vpop.f32.mrb[1].mxu0  ;;  %v706_v36 = vpop.f32.mrb[1].mxu1 }
 0x12e   :  { %v683_v37 = vadd.f32 %v682_v34, %v681_v32  ;;  %v707_v38 = vadd.f32 %v706_v36, %v705_v33  ;;  %v684_v39 = vpop.f32.mrb[2].mxu0  ;;  %v708_v40 = vpop.f32.mrb[2].mxu1 }
 0x12f   :  { %v685_v41 = vpop.f32.mrb[3].mxu0  ;;  %v709_v42 = vpop.f32.mrb[3].mxu1 }
 0x130   :  { %v470_v43 = vadd.f32 %v683_v37, %v1018_v35  ;;  %v478_v44 = vadd.f32 %v707_v38, %v1018_v35  ;;  %v686_v45 = vadd.f32 %v685_v41, %v684_v39  ;;  %v710_v46 = vadd.f32 %v709_v42, %v708_v40 }
 0x132   :  { %v649_v47 = vmul.f32 -1.442695, %v470_v43  ;;  %v657_v48 = vmul.f32 -1.442695, %v478_v44  ;;  %v471_v49 = vadd.f32 %v686_v45, %v1018_v35  ;;  %v479_v50 = vadd.f32 %v710_v46, %v1018_v35 }
 0x134   :  { %793 = vpow2.f32 %v649_v47  ;;  %v650_v51 = vmul.f32 -1.442695, %v471_v49  ;;  %v658_v52 = vmul.f32 -1.442695, %v479_v50  ;;  %v687_v53 = vpop.f32.mrb[4].mxu0  ;;  %v711_v54 = vpop.f32.mrb[4].mxu1 }
 0x135   :  { %795 = vpow2.f32 %v657_v48  ;;  %v688_v55 = vpop.f32.mrb[5].mxu0  ;;  %v712_v56 = vpop.f32.mrb[5].mxu1 }
 0x136   :  { %797 = vpow2.f32 %v650_v51  ;;  %v689_v57 = vadd.f32 %v688_v55, %v687_v53  ;;  %v713_v58 = vadd.f32 %v712_v56, %v711_v54  ;;  %v690_v59 = vpop.f32.mrb[6].mxu0  ;;  %v714_v60 = vpop.f32.mrb[6].mxu1 }
 0x137   :  { %799 = vpow2.f32 %v658_v52  ;;  %v691_v61 = vpop.f32.mrb[7].mxu0  ;;  %v715_v62 = vpop.f32.mrb[7].mxu1 }
 0x138   :  { %v472_v63 = vadd.f32 %v689_v57, %v1018_v35  ;;  %v480_v0 = vadd.f32 %v713_v58, %v1018_v35  ;;  %v692_v1 = vadd.f32 %v691_v61, %v690_v59  ;;  %v716_v2 = vadd.f32 %v715_v62, %v714_v60 }
 0x13a   :  { %v651_v3 = vmul.f32 -1.442695, %v472_v63  ;;  %v659_v4 = vmul.f32 -1.442695, %v480_v0  ;;  %v473_v5 = vadd.f32 %v692_v1, %v1018_v35  ;;  %v481_v6 = vadd.f32 %v716_v2, %v1018_v35 }
 0x13c   :  { %801 = vpow2.f32 %v651_v3  ;;  %v652_v7 = vmul.f32 -1.442695, %v473_v5  ;;  %v660_v8 = vmul.f32 -1.442695, %v481_v6  ;;  %v693_v9 = vpop.f32.mrb[8].mxu0  ;;  %v717_v10 = vpop.f32.mrb[8].mxu1 }
 0x13d   :  { %803 = vpow2.f32 %v659_v4  ;;  %v694_v11 = vpop.f32.mrb[9].mxu0  ;;  %v718_v12 = vpop.f32.mrb[9].mxu1 }
 0x13e   :  { %v794_v13 = vpop.eup %793  ;;  %805 = vpow2.f32 %v652_v7  ;;  %v695_v14 = vadd.f32 %v694_v11, %v693_v9  ;;  %v719_v15 = vadd.f32 %v718_v12, %v717_v10  ;;  %v696_v16 = vpop.f32.mrb[10].mxu0 }
 0x13f   :  { %v720_v17 = vpop.f32.mrb[10].mxu1  ;;  %v796_v18 = vpop.eup %795  ;;  %v534_v19 = vadd.f32 1.0, %v794_v13  ;;  %807 = vpow2.f32 %v660_v8 }
 0x140   :  { %v697_v20 = vpop.f32.mrb[11].mxu0  ;;  %v721_v21 = vpop.f32.mrb[11].mxu1  ;;  %v542_v23 = vadd.f32 1.0, %v796_v18  ;;  %v474_v24 = vadd.f32 %v695_v14, %v1018_v35  ;;  %v482_v25 = vadd.f32 %v719_v15, %v1018_v35 }
 0x141   :  { %v798_v22 = vpop.eup %797  ;;  %v698_v26 = vadd.f32 %v697_v20, %v696_v16  ;;  %809 = vrcp.f32 %v534_v19  ;;  %v722_v29 = vadd.f32 %v721_v21, %v720_v17 }
 0x142   :  { %v800_v27 = vpop.eup %799  ;;  %v535_v28 = vadd.f32 1.0, %v798_v22  ;;  %811 = vrcp.f32 %v542_v23  ;;  %v653_v31 = vmul.f32 -1.442695, %v474_v24  ;;  %v661_v32 = vmul.f32 -1.442695, %v482_v25 }
 0x143   :  { %v543_v30 = vadd.f32 1.0, %v800_v27  ;;  %v475_v33 = vadd.f32 %v698_v26, %v1018_v35  ;;  %v483_v34 = vadd.f32 %v722_v29, %v1018_v35 }
 0x144   :  { %813 = vrcp.f32 %v535_v28  ;;  %v699_v36 = vpop.f32.mrb[12].mxu0  ;;  %v723_v37 = vpop.f32.mrb[12].mxu1 }
 0x145   :  { %815 = vrcp.f32 %v543_v30  ;;  %v654_v38 = vmul.f32 -1.442695, %v475_v33  ;;  %v662_v39 = vmul.f32 -1.442695, %v483_v34  ;;  %v700_v40 = vpop.f32.mrb[13].mxu0  ;;  %v724_v41 = vpop.f32.mrb[13].mxu1 }
 0x146   :  { %817 = vpow2.f32 %v653_v31  ;;  %v802_v42 = vpop.eup %801  ;;  %v701_v43 = vadd.f32 %v700_v40, %v699_v36  ;;  %v725_v44 = vadd.f32 %v724_v41, %v723_v37  ;;  %v702_v45 = vpop.f32.mrb[14].mxu0 }
 0x147   :  { %819 = vpow2.f32 %v661_v32  ;;  %v726_v46 = vpop.f32.mrb[14].mxu1  ;;  %v804_v47 = vpop.eup %803  ;;  %v536_v48 = vadd.f32 1.0, %v802_v42 }
 0x148   :  { %821 = vpow2.f32 %v654_v38  ;;  %v703_v49 = vpop.f32.mrb[15].mxu0  ;;  %v727_v50 = vpop.f32.mrb[15].mxu1  ;;  %v544_v52 = vadd.f32 1.0, %v804_v47  ;;  %v476_v53 = vadd.f32 %v701_v43, %v1018_v35  ;;  %v484_v54 = vadd.f32 %v725_v44, %v1018_v35 }
 0x149   :  { %v806_v51 = vpop.eup %805  ;;  %823 = vpow2.f32 %v662_v39  ;;  %v704_v57 = vadd.f32 %v703_v49, %v702_v45  ;;  %v728_v58 = vadd.f32 %v727_v50, %v726_v46 }
 0x14a   :  { %v808_v55 = vpop.eup %807  ;;  %825 = vrcp.f32 %v536_v48  ;;  %v537_v56 = vadd.f32 1.0, %v806_v51  ;;  %v655_v60 = vmul.f32 -1.442695, %v476_v53  ;;  %v663_v61 = vmul.f32 -1.442695, %v484_v54 }
 0x14b   :  { %827 = vrcp.f32 %v544_v52  ;;  %v545_v59 = vadd.f32 1.0, %v808_v55  ;;  %v810_v62 = vpop.eup %809  ;;  %v477_v63 = vadd.f32 %v704_v57, %v1018_v35  ;;  %v485_v0 = vadd.f32 %v728_v58, %v1018_v35 }
 0x14c   :  { %829 = vrcp.f32 %v537_v56  ;;  %v812_v1 = vpop.eup %811  ;;  %582 = vst [vmem:[#allocation9] sm:$0xff] %v810_v62 }
 0x14d   :  { %831 = vrcp.f32 %v545_v59  ;;  %590 = vst [vmem:[#allocation9 + $0x40] sm:$0xff] %v812_v1  ;;  %v656_v3 = vmul.f32 -1.442695, %v477_v63  ;;  %v664_v4 = vmul.f32 -1.442695, %v485_v0 }
 0x14e   :  { %v814_v2 = vpop.eup %813  ;;  %833 = vpow2.f32 %v655_v60 }
 0x14f   :  { %v816_v5 = vpop.eup %815  ;;  %583 = vst [vmem:[#allocation9 + $0x8] sm:$0xff] %v814_v2  ;;  %835 = vpow2.f32 %v663_v61 }
 0x150   :  { %v818_v6 = vpop.eup %817  ;;  %591 = vst [vmem:[#allocation9 + $0x48] sm:$0xff] %v816_v5  ;;  %837 = vpow2.f32 %v656_v3 }
 0x151   :  { %v820_v7 = vpop.eup %819  ;;  %v538_v8 = vadd.f32 1.0, %v818_v6  ;;  %839 = vpow2.f32 %v664_v4 }
 0x152   :  { %v822_v9 = vpop.eup %821  ;;  %v546_v10 = vadd.f32 1.0, %v820_v7 }
 0x153   :  { %v824_v35 = vpop.eup %823  ;;  %841 = vrcp.f32 %v538_v8  ;;  %v539_v11 = vadd.f32 1.0, %v822_v9 }
 0x154   :  { %v826_v12 = vpop.eup %825  ;;  %843 = vrcp.f32 %v546_v10  ;;  %v547_v13 = vadd.f32 1.0, %v824_v35 }
 0x155   :  { %v828_v14 = vpop.eup %827  ;;  %584 = vst [vmem:[#allocation9 + $0x10] sm:$0xff] %v826_v12  ;;  %845 = vrcp.f32 %v539_v11 }
 0x156   :  { %v830_v15 = vpop.eup %829  ;;  %592 = vst [vmem:[#allocation9 + $0x50] sm:$0xff] %v828_v14  ;;  %847 = vrcp.f32 %v547_v13 }
 0x157   :  { %v832_v16 = vpop.eup %831  ;;  %585 = vst [vmem:[#allocation9 + $0x18] sm:$0xff] %v830_v15 }
 0x158   :  { %v834_v17 = vpop.eup %833  ;;  %593 = vst [vmem:[#allocation9 + $0x58] sm:$0xff] %v832_v16 }
 0x159   :  { %v836_v18 = vpop.eup %835  ;;  %v540_v19 = vadd.f32 1.0, %v834_v17 }
 0x15a   :  { %v838_v20 = vpop.eup %837  ;;  %v548_v21 = vadd.f32 1.0, %v836_v18 }
 0x15b   :  { %v840_v22 = vpop.eup %839  ;;  %849 = vrcp.f32 %v540_v19  ;;  %v541_v23 = vadd.f32 1.0, %v838_v20 }
 0x15c   :  { %851 = vrcp.f32 %v548_v21  ;;  %v549_v24 = vadd.f32 1.0, %v840_v22 }
 0x15d   :  { %v842_v25 = vpop.eup %841  ;;  %853 = vrcp.f32 %v541_v23 }
 0x15e   :  { %v844_v26 = vpop.eup %843  ;;  %586 = vst [vmem:[#allocation9 + $0x20] sm:$0xff] %v842_v25  ;;  %855 = vrcp.f32 %v549_v24 }
 0x15f   :  { %v846_v27 = vpop.eup %845  ;;  %594 = vst [vmem:[#allocation9 + $0x60] sm:$0xff] %v844_v26 }
 0x160   :  { %v848_v28 = vpop.eup %847  ;;  %587 = vst [vmem:[#allocation9 + $0x28] sm:$0xff] %v846_v27 }
 0x161   :  { %595 = vst [vmem:[#allocation9 + $0x68] sm:$0xff] %v848_v28 }
 0x165   :  { %v850_v29 = vpop.eup %849 }
 0x166   :  { %v852_v30 = vpop.eup %851  ;;  %588 = vst [vmem:[#allocation9 + $0x30] sm:$0xff] %v850_v29 }
 0x167   :  { %v854_v31 = vpop.eup %853  ;;  %596 = vst [vmem:[#allocation9 + $0x70] sm:$0xff] %v852_v30 }
 0x168   :  { %v856_v32 = vpop.eup %855  ;;  %589 = vst [vmem:[#allocation9 + $0x38] sm:$0xff] %v854_v31 }
 0x169   :  { %597 = vst [vmem:[#allocation9 + $0x78] sm:$0xff] %v856_v32 }
 0x16a   :  { %934 = shalt.err (!%p931_p0)
}
 0x16b   :  { %s935_s28 = scalar_lea.hbm %s1054_s3, 2048 }
 0x16c   :  { %p936_p1 = scmp.ne.s32.totalorder %s1054_s3, %s935_s28  ;;  %p939_p2 = scmp.lt.u32.totalorder %s935_s28, %s1054_s3 }
 0x16e   :  { %p941_p3 = pnand %p939_p2, %p936_p1 }
 0x170   :  { %944 = shalt.err (!%p941_p3)
}
 0x171   :  { %609 = dma.vmem_to_hbm [thread:$0]  %s604_s24, 2048, %s1054_s3, [#allocation5], %s955_s1, %s955_s1, %s956_s9  }
 0x172   :  { %949 = dma.done.wait [#allocation5], 2048  }
 0x173   :  { %950 = vsyncadd [#allocation5], 4294965248 }
 0x174   :  { %613 = vsyncpa [#allocation4], 1 }
 0x175   :  { %614 = vsyncpa [#allocation7], 1 }
 0x176   :  { %615 = vsyncpa [#allocation5], 1 }

// kernel: _lambda_.41
= control target key start
LH: loop header
LB: loop body
LE: loop exit
PB: predicated region body
PF: predicated region fallthrough
CT: control target
= control target key end

     0   :  { %8 = vsyncpa [#allocation4], 0  ;;  %s923_s0 = inlined_call_operand.hbm [shape: bf16[128,256], index: 0, kind: input, shape index: {}]   ;;  %s924_s1 = inlined_call_operand.hbm [shape: bf16[256,128], index: 1, kind: input, shape index: {}]   ;;  %s925_s2 = inlined_call_operand.hbm [shape: f32[1,128], index: 2, kind: input, shape index: {}]   ;;  %s926_s3 = inlined_call_operand.hbm [shape: f32[128,128], index: 3, kind: output, shape index: {}]  }
   0x1   :  { %9 = vsyncpa [#allocation7], 0 }
   0x2   :  { %10 = vsyncpa [#allocation5], 0  ;;  %s823_s12 = smov [#allocation6]   ;;  %s729_s16 = scalar_lea.hbm %s924_s1, 2048 }
   0x3   :  { %s28_s13 = sshll.u32 %s823_s12, 4  ;;  %p730_p0 = scmp.ne.s32.totalorder %s924_s1, %s729_s16  ;;  %s29_s13 = int_to_ptr.vmem [resolvable:$true] %s28_s13 }
   0x4   :  { %p733_p1 = scmp.lt.u32.totalorder %s729_s16, %s924_s1 }
   0x6   :  { %p735_p2 = pnand %p733_p1, %p730_p0 }
   0x8   :  { %738 = shalt.err (!%p735_p2)
}
   0x9   :  { %s739_s21 = scalar_lea.vmem %s29_s13, 2048  ;;  %p744_p4 = scmp.lt.s32.totalorder %s29_s13, %s29_s13 }
   0xa   :  { %p740_p3 = scmp.ne.s32.totalorder %s29_s13, %s739_s21  ;;  %p745_p5 = scmp.lt.s32.totalorder %s739_s21, %s739_s21 }
   0xc   :  { %p746_p6 = por %p745_p5, %p744_p4 }
   0xe   :  { %p747_p7 = pnand %p746_p6, %p740_p3 }
  0x10   :  { %750 = shalt.err (!%p747_p7)
}
  0x11   :  { %s824_s22 = smov 64   ;;  %s825_s23 = smov 4  }
  0x12   :  { %34 = dma.hbm_to_vmem [thread:$0]  %s924_s1, 2048, %s29_s13, [#allocation7], %s824_s22, %s824_s22, %s825_s23  }
  0x13   :  { %s826_s26 = smov [#allocation3]   ;;  %s751_s30 = scalar_lea.hbm %s923_s0, 2048 }
  0x14   :  { %s16_s27 = sshll.u32 %s826_s26, 4  ;;  %p752_p8 = scmp.ne.s32.totalorder %s923_s0, %s751_s30  ;;  %s17_s27 = int_to_ptr.vmem [resolvable:$true] %s16_s27 }
  0x15   :  { %p755_p9 = scmp.lt.u32.totalorder %s751_s30, %s923_s0 }
  0x17   :  { %p757_p10 = pnand %p755_p9, %p752_p8 }
  0x19   :  { %760 = shalt.err (!%p757_p10)
}
  0x1a   :  { %s761_s8 = scalar_lea.vmem %s17_s27, 2048  ;;  %p766_p12 = scmp.lt.s32.totalorder %s17_s27, %s17_s27 }
  0x1b   :  { %p762_p11 = scmp.ne.s32.totalorder %s17_s27, %s761_s8  ;;  %p767_p13 = scmp.lt.s32.totalorder %s761_s8, %s761_s8 }
  0x1d   :  { %p768_p0 = por %p767_p13, %p766_p12 }
  0x1f   :  { %p769_p1 = pnand %p768_p0, %p762_p11 }
  0x21   :  { %772 = shalt.err (!%p769_p1)
}
  0x22   :  { %s827_s1 = smov 128   ;;  %s828_s9 = smov 8  }
  0x23   :  { %22 = dma.hbm_to_vmem [thread:$0]  %s923_s0, 2048, %s17_s27, [#allocation4], %s827_s1, %s827_s1, %s828_s9  }
  0x24   :  { %s829_s12 = smov [#allocation8]   ;;  %s773_s16 = scalar_lea.hbm %s925_s2, 16 }
  0x25   :  { %s41_s13 = sshll.u32 %s829_s12, 4  ;;  %p774_p2 = scmp.ne.s32.totalorder %s925_s2, %s773_s16  ;;  %s42_s13 = int_to_ptr.vmem [resolvable:$true] %s41_s13 }
  0x26   :  { %p777_p3 = scmp.lt.u32.totalorder %s773_s16, %s925_s2 }
  0x28   :  { %p779_p4 = pnand %p777_p3, %p774_p2 }
  0x2a   :  { %782 = shalt.err (!%p779_p4)
}
  0x2b   :  { %s783_s21 = scalar_lea.vmem %s42_s13, 16  ;;  %s787_s0 = scalar_lea.vmem %s42_s13, 32 }
  0x2c   :  { %p784_p5 = scmp.ne.s32.totalorder %s42_s13, %s783_s21  ;;  %p788_p6 = scmp.lt.s32.totalorder %s42_s13, %s42_s13 }
  0x2d   :  { %p789_p7 = scmp.lt.s32.totalorder %s787_s0, %s783_s21 }
  0x2f   :  { %p790_p8 = por %p789_p7, %p788_p6 }
  0x31   :  { %p791_p9 = pnand %p790_p8, %p784_p5 }
  0x33   :  { %794 = shalt.err (!%p791_p9)
}
  0x34   :  { %44 = dma.hbm_to_vmem [thread:$0]  %s925_s2, 16, %s42_s13, [#allocation7]  }
  0x35   :  { %817 = dma.done.wait [#allocation4], 2048  }
  0x36   :  { %818 = vsyncadd [#allocation4], 4294965248 }
  0x37   :  { %819 = dma.done.wait [#allocation7], 2064  }
  0x38   :  { %820 = vsyncadd [#allocation7], 4294965232  ;;  %v657_v0 = vld [vmem:[#allocation6 + $0x40] sm:$0xff]   ;;  %v659_v2 = vld [vmem:[#allocation6 + $0x48] sm:$0xff]   ;;  %s830_s2 = smov [#allocation9]  }
  0x39   :  { %v658_v1 = vld [vmem:[#allocation6] sm:$0xff]   ;;  %569 = vmatprep.subr.bf16.mxu0 %v657_v0  ;;  %633 = vmatprep.subr.bf16.mxu1 %v657_v0  ;;  %v660_v3 = vld [vmem:[#allocation6 + $0x8] sm:$0xff]   ;;  %v661_v4 = vld [vmem:[#allocation6 + $0x50] sm:$0xff]   ;;  %s523_s24 = sshll.u32 %s830_s2, 4  ;;  %s524_s24 = int_to_ptr.vmem [resolvable:$true] %s523_s24 }
  0x3a   :  { %570 = vmatpush3.bf16.msra.mxu0 %v658_v1  ;;  %641 = vmatpush3.bf16.msra.mxu1 %v658_v1  ;;  %v662_v5 = vld [vmem:[#allocation6 + $0x10] sm:$0xff]   ;;  %v663_v6 = vld [vmem:[#allocation6 + $0x58] sm:$0xff]   ;;  %v665_v8 = vld [vmem:[#allocation6 + $0x60] sm:$0xff]   ;;  %s795_s25 = scalar_lea.vmem %s524_s24, 2048  ;;  %p800_p11 = scmp.lt.s32.totalorder %s524_s24, %s524_s24 }
  0x3b   :  { %571 = vmatprep.subr.bf16.mxu0 %v659_v2  ;;  %634 = vmatprep.subr.bf16.mxu1 %v659_v2  ;;  %v664_v7 = vld [vmem:[#allocation6 + $0x18] sm:$0xff]   ;;  %v666_v9 = vld [vmem:[#allocation6 + $0x20] sm:$0xff]   ;;  %v667_v10 = vld [vmem:[#allocation6 + $0x68] sm:$0xff]   ;;  %p796_p10 = scmp.ne.s32.totalorder %s524_s24, %s795_s25  ;;  %p801_p12 = scmp.lt.s32.totalorder %s795_s25, %s795_s25 }
  0x3c   :  { %v675_v11 = vld [vmem:[#allocation3 + $0x4] ss:$8 sps:$4 sm:$0xff]   ;;  %v669_v14 = vld [vmem:[#allocation6 + $0x70] sm:$0xff]   ;;  %v671_v16 = vld [vmem:[#allocation6 + $0x78] sm:$0xff]  }
  0x3d   :  { %v678_v12 = vld [vmem:[#allocation3 + $0x44] ss:$8 sps:$4 sm:$0xff]   ;;  %347 = vmatprep.mubr.bf16.mxu0 %v675_v11  ;;  %v670_v15 = vld [vmem:[#allocation6 + $0x30] sm:$0xff]   ;;  %v672_v17 = vld [vmem:[#allocation6 + $0x38] sm:$0xff]   ;;  %p802_p13 = por %p801_p12, %p800_p11 }
  0x3e   :  { %572 = vmatpush3.bf16.msra.mxu0 %v660_v3  ;;  %642 = vmatpush3.bf16.msra.mxu1 %v660_v3  ;;  %v668_v13 = vld [vmem:[#allocation6 + $0x28] sm:$0xff]   ;;  %v679_v20 = vld [vmem:[#allocation3 + $0x14] ss:$8 sps:$4 sm:$0xff]   ;;  %v683_v22 = vld [vmem:[#allocation3 + $0x10] ss:$8 sps:$4 sm:$0xff]  }
  0x3f   :  { %573 = vmatprep.subr.bf16.mxu0 %v661_v4  ;;  %635 = vmatprep.subr.bf16.mxu1 %v661_v4  ;;  %v673_v18 = vld [vmem:[#allocation3] ss:$8 sps:$4 sm:$0xff]   ;;  %v681_v21 = vld [vmem:[#allocation3 + $0x54] ss:$8 sps:$4 sm:$0xff]   ;;  %v684_v23 = vld [vmem:[#allocation3 + $0x50] ss:$8 sps:$4 sm:$0xff]   ;;  %p803_p0 = pnand %p802_p13, %p796_p10 }
  0x40   :  { %379 = vmatprep.mubr.bf16.mxu1 %v678_v12  ;;  %v676_v19 = vld [vmem:[#allocation3 + $0x40] ss:$8 sps:$4 sm:$0xff]   ;;  %v685_v24 = vld [vmem:[#allocation3 + $0x24] ss:$8 sps:$4 sm:$0xff]   ;;  %v691_v28 = vld [vmem:[#allocation3 + $0x34] ss:$8 sps:$4 sm:$0xff]  }
  0x41   :  { %v687_v25 = vld [vmem:[#allocation3 + $0x64] ss:$8 sps:$4 sm:$0xff]   ;;  %v689_v26 = vld [vmem:[#allocation3 + $0x20] ss:$8 sps:$4 sm:$0xff]   ;;  %v693_v29 = vld [vmem:[#allocation3 + $0x74] ss:$8 sps:$4 sm:$0xff]  }
  0x42   :  { %574 = vmatpush3.bf16.msra.mxu0 %v662_v5  ;;  %643 = vmatpush3.bf16.msra.mxu1 %v662_v5  ;;  %v690_v27 = vld [vmem:[#allocation3 + $0x60] ss:$8 sps:$4 sm:$0xff]   ;;  %v695_v30 = vld [vmem:[#allocation3 + $0x30] ss:$8 sps:$4 sm:$0xff]  }
  0x43   :  { %575 = vmatprep.subr.bf16.mxu0 %v663_v6  ;;  %636 = vmatprep.subr.bf16.mxu1 %v663_v6  ;;  %v696_v31 = vld [vmem:[#allocation3 + $0x70] ss:$8 sps:$4 sm:$0xff]   ;;  %v890_v35 = vld [vmem:[#allocation8] ss:$0 sm:$0xff] }
  0x46   :  { %576 = vmatpush3.bf16.msra.mxu0 %v664_v7  ;;  %644 = vmatpush3.bf16.msra.mxu1 %v664_v7 }
  0x47   :  { %577 = vmatprep.subr.bf16.mxu0 %v665_v8  ;;  %637 = vmatprep.subr.bf16.mxu1 %v665_v8 }
  0x4a   :  { %578 = vmatpush3.bf16.msra.mxu0 %v666_v9  ;;  %645 = vmatpush3.bf16.msra.mxu1 %v666_v9 }
  0x4b   :  { %579 = vmatprep.subr.bf16.mxu0 %v667_v10  ;;  %638 = vmatprep.subr.bf16.mxu1 %v667_v10 }
  0x4e   :  { %580 = vmatpush3.bf16.msra.mxu0 %v668_v13  ;;  %646 = vmatpush3.bf16.msra.mxu1 %v668_v13 }
  0x4f   :  { %581 = vmatprep.subr.bf16.mxu0 %v669_v14  ;;  %639 = vmatprep.subr.bf16.mxu1 %v669_v14 }
  0x52   :  { %582 = vmatpush3.bf16.msra.mxu0 %v670_v15  ;;  %647 = vmatpush3.bf16.msra.mxu1 %v670_v15 }
  0x53   :  { %583 = vmatprep.subr.bf16.mxu0 %v671_v16  ;;  %640 = vmatprep.subr.bf16.mxu1 %v671_v16 }
  0x56   :  { %584 = vmatpush3.bf16.msra.mxu0 %v672_v17  ;;  %648 = vmatpush3.bf16.msra.mxu1 %v672_v17 }
  0x59   :  { %348 = vmatmul.mubr.bf16.vlgmr.msra.gmra.mrb[0].mxu0 %v673_v18  ;;  %380 = vmatmul.mubr.bf16.vlgmr.msra.gmra.mrb[0].mxu1 %v676_v19 }
  0x5a   :  { %355 = vmatprep.mubr.bf16.mxu0 %v679_v20  ;;  %387 = vmatprep.mubr.bf16.mxu1 %v681_v21 }
  0x61   :  { %356 = vmatmul.mubr.bf16.gmra.mrb[4].mxu0 %v683_v22  ;;  %388 = vmatmul.mubr.bf16.gmra.mrb[4].mxu1 %v684_v23 }
  0x62   :  { %363 = vmatprep.mubr.bf16.mxu0 %v685_v24  ;;  %395 = vmatprep.mubr.bf16.mxu1 %v687_v25 }
  0x69   :  { %364 = vmatmul.mubr.bf16.gmra.mrb[8].mxu0 %v689_v26  ;;  %396 = vmatmul.mubr.bf16.gmra.mrb[8].mxu1 %v690_v27 }
  0x6a   :  { %371 = vmatprep.mubr.bf16.mxu0 %v691_v28  ;;  %403 = vmatprep.mubr.bf16.mxu1 %v693_v29 }
  0x71   :  { %372 = vmatmul.mubr.bf16.gmra.mrb[12].mxu0 %v695_v30  ;;  %404 = vmatmul.mubr.bf16.gmra.mrb[12].mxu1 %v696_v31 }
 0x12c   :  { %v585_v32 = vpop.f32.mrb[0].mxu0  ;;  %v609_v33 = vpop.f32.mrb[0].mxu1 }
 0x12d   :  { %v586_v34 = vpop.f32.mrb[1].mxu0  ;;  %v610_v36 = vpop.f32.mrb[1].mxu1 }
 0x12e   :  { %v587_v37 = vadd.f32 %v586_v34, %v585_v32  ;;  %v611_v38 = vadd.f32 %v610_v36, %v609_v33  ;;  %v588_v39 = vpop.f32.mrb[2].mxu0  ;;  %v612_v40 = vpop.f32.mrb[2].mxu1 }
 0x12f   :  { %v589_v41 = vpop.f32.mrb[3].mxu0  ;;  %v613_v42 = vpop.f32.mrb[3].mxu1 }
 0x130   :  { %v470_v43 = vadd.f32 %v587_v37, %v890_v35  ;;  %v478_v44 = vadd.f32 %v611_v38, %v890_v35  ;;  %v590_v45 = vadd.f32 %v589_v41, %v588_v39  ;;  %v614_v46 = vadd.f32 %v613_v42, %v612_v40 }
 0x132   :  { %697 = vtanh.f32 %v470_v43  ;;  %v471_v47 = vadd.f32 %v590_v45, %v890_v35  ;;  %v479_v48 = vadd.f32 %v614_v46, %v890_v35 }
 0x133   :  { %699 = vtanh.f32 %v478_v44 }
 0x134   :  { %701 = vtanh.f32 %v471_v47  ;;  %v591_v49 = vpop.f32.mrb[4].mxu0  ;;  %v615_v50 = vpop.f32.mrb[4].mxu1 }
 0x135   :  { %703 = vtanh.f32 %v479_v48  ;;  %v592_v51 = vpop.f32.mrb[5].mxu0  ;;  %v616_v52 = vpop.f32.mrb[5].mxu1 }
 0x136   :  { %v593_v53 = vadd.f32 %v592_v51, %v591_v49  ;;  %v617_v54 = vadd.f32 %v616_v52, %v615_v50  ;;  %v594_v55 = vpop.f32.mrb[6].mxu0  ;;  %v618_v56 = vpop.f32.mrb[6].mxu1 }
 0x137   :  { %v595_v57 = vpop.f32.mrb[7].mxu0  ;;  %v619_v58 = vpop.f32.mrb[7].mxu1 }
 0x138   :  { %v472_v59 = vadd.f32 %v593_v53, %v890_v35  ;;  %v480_v60 = vadd.f32 %v617_v54, %v890_v35  ;;  %v596_v61 = vadd.f32 %v595_v57, %v594_v55  ;;  %v620_v62 = vadd.f32 %v619_v58, %v618_v56 }
 0x13a   :  { %705 = vtanh.f32 %v472_v59  ;;  %v473_v63 = vadd.f32 %v596_v61, %v890_v35  ;;  %v481_v0 = vadd.f32 %v620_v62, %v890_v35 }
 0x13b   :  { %707 = vtanh.f32 %v480_v60 }
 0x13c   :  { %v698_v1 = vpop.eup %697  ;;  %709 = vtanh.f32 %v473_v63  ;;  %v597_v2 = vpop.f32.mrb[8].mxu0 }
 0x13d   :  { %v621_v3 = vpop.f32.mrb[8].mxu1  ;;  %v700_v4 = vpop.eup %699  ;;  %502 = vst [vmem:[#allocation9] sm:$0xff] %v698_v1  ;;  %711 = vtanh.f32 %v481_v0 }
 0x13e   :  { %v598_v5 = vpop.f32.mrb[9].mxu0  ;;  %v622_v6 = vpop.f32.mrb[9].mxu1  ;;  %510 = vst [vmem:[#allocation9 + $0x40] sm:$0xff] %v700_v4 }
 0x13f   :  { %v702_v7 = vpop.eup %701  ;;  %v599_v8 = vadd.f32 %v598_v5, %v597_v2  ;;  %v623_v9 = vadd.f32 %v622_v6, %v621_v3  ;;  %v600_v10 = vpop.f32.mrb[10].mxu0 }
 0x140   :  { %v624_v11 = vpop.f32.mrb[10].mxu1  ;;  %v704_v12 = vpop.eup %703  ;;  %503 = vst [vmem:[#allocation9 + $0x8] sm:$0xff] %v702_v7 }
 0x141   :  { %v601_v13 = vpop.f32.mrb[11].mxu0  ;;  %v625_v14 = vpop.f32.mrb[11].mxu1  ;;  %511 = vst [vmem:[#allocation9 + $0x48] sm:$0xff] %v704_v12  ;;  %v474_v15 = vadd.f32 %v599_v8, %v890_v35  ;;  %v482_v16 = vadd.f32 %v623_v9, %v890_v35 }
 0x142   :  { %v602_v17 = vadd.f32 %v601_v13, %v600_v10  ;;  %v626_v18 = vadd.f32 %v625_v14, %v624_v11 }
 0x143   :  { %713 = vtanh.f32 %v474_v15 }
 0x144   :  { %v475_v19 = vadd.f32 %v602_v17, %v890_v35  ;;  %v483_v20 = vadd.f32 %v626_v18, %v890_v35  ;;  %715 = vtanh.f32 %v482_v16  ;;  %v706_v21 = vpop.eup %705  ;;  %v603_v22 = vpop.f32.mrb[12].mxu0 }
 0x145   :  { %v627_v23 = vpop.f32.mrb[12].mxu1  ;;  %v708_v24 = vpop.eup %707  ;;  %504 = vst [vmem:[#allocation9 + $0x10] sm:$0xff] %v706_v21 }
 0x146   :  { %717 = vtanh.f32 %v475_v19  ;;  %v604_v25 = vpop.f32.mrb[13].mxu0  ;;  %v628_v26 = vpop.f32.mrb[13].mxu1  ;;  %512 = vst [vmem:[#allocation9 + $0x50] sm:$0xff] %v708_v24 }
 0x147   :  { %719 = vtanh.f32 %v483_v20  ;;  %v710_v27 = vpop.eup %709  ;;  %v605_v28 = vadd.f32 %v604_v25, %v603_v22  ;;  %v629_v29 = vadd.f32 %v628_v26, %v627_v23  ;;  %v606_v30 = vpop.f32.mrb[14].mxu0 }
 0x148   :  { %v630_v31 = vpop.f32.mrb[14].mxu1  ;;  %v712_v32 = vpop.eup %711  ;;  %505 = vst [vmem:[#allocation9 + $0x18] sm:$0xff] %v710_v27 }
 0x149   :  { %v607_v33 = vpop.f32.mrb[15].mxu0  ;;  %v631_v34 = vpop.f32.mrb[15].mxu1  ;;  %513 = vst [vmem:[#allocation9 + $0x58] sm:$0xff] %v712_v32  ;;  %v476_v36 = vadd.f32 %v605_v28, %v890_v35  ;;  %v484_v37 = vadd.f32 %v629_v29, %v890_v35 }
 0x14a   :  { %v608_v38 = vadd.f32 %v607_v33, %v606_v30  ;;  %v632_v39 = vadd.f32 %v631_v34, %v630_v31 }
 0x14b   :  { %721 = vtanh.f32 %v476_v36 }
 0x14c   :  { %v477_v40 = vadd.f32 %v608_v38, %v890_v35  ;;  %v485_v41 = vadd.f32 %v632_v39, %v890_v35  ;;  %723 = vtanh.f32 %v484_v37 }
 0x14d   :  { %v714_v42 = vpop.eup %713 }
 0x14e   :  { %725 = vtanh.f32 %v477_v40  ;;  %v716_v43 = vpop.eup %715  ;;  %506 = vst [vmem:[#allocation9 + $0x20] sm:$0xff] %v714_v42 }
 0x14f   :  { %727 = vtanh.f32 %v485_v41  ;;  %514 = vst [vmem:[#allocation9 + $0x60] sm:$0xff] %v716_v43 }
 0x150   :  { %v718_v44 = vpop.eup %717 }
 0x151   :  { %v720_v45 = vpop.eup %719  ;;  %507 = vst [vmem:[#allocation9 + $0x28] sm:$0xff] %v718_v44 }
 0x152   :  { %515 = vst [vmem:[#allocation9 + $0x68] sm:$0xff] %v720_v45 }
 0x155   :  { %v722_v46 = vpop.eup %721 }
 0x156   :  { %v724_v47 = vpop.eup %723  ;;  %508 = vst [vmem:[#allocation9 + $0x30] sm:$0xff] %v722_v46 }
 0x157   :  { %516 = vst [vmem:[#allocation9 + $0x70] sm:$0xff] %v724_v47 }
 0x158   :  { %v726_v48 = vpop.eup %725 }
 0x159   :  { %v728_v35 = vpop.eup %727  ;;  %509 = vst [vmem:[#allocation9 + $0x38] sm:$0xff] %v726_v48 }
 0x15a   :  { %517 = vst [vmem:[#allocation9 + $0x78] sm:$0xff] %v728_v35 }
 0x15b   :  { %806 = shalt.err (!%p803_p0)
}
 0x15c   :  { %s807_s28 = scalar_lea.hbm %s926_s3, 2048 }
 0x15d   :  { %p808_p1 = scmp.ne.s32.totalorder %s926_s3, %s807_s28  ;;  %p811_p2 = scmp.lt.u32.totalorder %s807_s28, %s926_s3 }
 0x15f   :  { %p813_p3 = pnand %p811_p2, %p808_p1 }
 0x161   :  { %816 = shalt.err (!%p813_p3)
}
 0x162   :  { %529 = dma.vmem_to_hbm [thread:$0]  %s524_s24, 2048, %s926_s3, [#allocation5], %s827_s1, %s827_s1, %s828_s9  }
 0x163   :  { %821 = dma.done.wait [#allocation5], 2048  }
 0x164   :  { %822 = vsyncadd [#allocation5], 4294965248 }
 0x165   :  { %533 = vsyncpa [#allocation4], 1 }
 0x166   :  { %534 = vsyncpa [#allocation7], 1 }
 0x167   :  { %535 = vsyncpa [#allocation5], 1 }

// kernel: _lambda_.53
= control target key start
LH: loop header
LB: loop body
LE: loop exit
PB: predicated region body
PF: predicated region fallthrough
CT: control target
= control target key end

     0   :  { %8 = vsyncpa [#allocation4], 0  ;;  %s706_s0 = inlined_call_operand.hbm [shape: bf16[128,128], index: 0, kind: input, shape index: {}]   ;;  %s707_s1 = inlined_call_operand.hbm [shape: bf16[128,128], index: 1, kind: input, shape index: {}]   ;;  %s708_s2 = inlined_call_operand.hbm [shape: f32[1,128], index: 2, kind: input, shape index: {}]   ;;  %s709_s3 = inlined_call_operand.hbm [shape: f32[128,128], index: 3, kind: output, shape index: {}]  }
   0x1   :  { %9 = vsyncpa [#allocation7], 0 }
   0x2   :  { %10 = vsyncpa [#allocation5], 0  ;;  %s623_s12 = smov [#allocation6]   ;;  %s624_s14 = smov [#allocation3]  }
   0x3   :  { %s28_s13 = sshll.u32 %s623_s12, 4  ;;  %s16_s15 = sshll.u32 %s624_s14, 4  ;;  %s29_s13 = int_to_ptr.vmem [resolvable:$true] %s28_s13  ;;  %s651_s15 = int_to_ptr.vmem [resolvable:$true] %s16_s15 }
   0x4   :  { %s529_s18 = scalar_lea.hbm %s707_s1, 1024 }
   0x5   :  { %p530_p0 = scmp.ne.s32.totalorder %s707_s1, %s529_s18  ;;  %p533_p1 = scmp.lt.u32.totalorder %s529_s18, %s707_s1 }
   0x7   :  { %p535_p2 = pnand %p533_p1, %p530_p0 }
   0x9   :  { %538 = shalt.err (!%p535_p2)
}
   0xa   :  { %s539_s23 = scalar_lea.vmem %s29_s13, 1024  ;;  %p544_p4 = scmp.lt.s32.totalorder %s29_s13, %s29_s13 }
   0xb   :  { %p540_p3 = scmp.ne.s32.totalorder %s29_s13, %s539_s23  ;;  %p545_p5 = scmp.lt.s32.totalorder %s539_s23, %s539_s23 }
   0xd   :  { %p546_p6 = por %p545_p5, %p544_p4 }
   0xf   :  { %p547_p7 = pnand %p546_p6, %p540_p3 }
  0x11   :  { %550 = shalt.err (!%p547_p7)
}
  0x12   :  { %s625_s24 = smov 64   ;;  %s626_s25 = smov 4  }
  0x13   :  { %34 = dma.hbm_to_vmem [thread:$0]  %s707_s1, 1024, %s29_s13, [#allocation7], %s625_s24, %s625_s24, %s626_s25  }
  0x14   :  { %s551_s30 = scalar_lea.hbm %s706_s0, 1024 }
  0x15   :  { %p552_p8 = scmp.ne.s32.totalorder %s706_s0, %s551_s30  ;;  %p555_p9 = scmp.lt.u32.totalorder %s551_s30, %s706_s0 }
  0x17   :  { %p557_p10 = pnand %p555_p9, %p552_p8 }
  0x19   :  { %560 = shalt.err (!%p557_p10)
}
  0x1a   :  { %s561_s8 = scalar_lea.vmem %s651_s15, 1024  ;;  %p566_p12 = scmp.lt.s32.totalorder %s651_s15, %s651_s15 }
  0x1b   :  { %p562_p11 = scmp.ne.s32.totalorder %s651_s15, %s561_s8  ;;  %p567_p13 = scmp.lt.s32.totalorder %s561_s8, %s561_s8 }
  0x1d   :  { %p568_p0 = por %p567_p13, %p566_p12 }
  0x1f   :  { %p569_p1 = pnand %p568_p0, %p562_p11 }
  0x21   :  { %572 = shalt.err (!%p569_p1)
}
  0x22   :  { %22 = dma.hbm_to_vmem [thread:$0]  %s706_s0, 1024, %s651_s15, [#allocation4], %s625_s24, %s625_s24, %s626_s25  }
  0x23   :  { %s627_s10 = smov [#allocation8]   ;;  %s573_s14 = scalar_lea.hbm %s708_s2, 16 }
  0x24   :  { %s41_s11 = sshll.u32 %s627_s10, 4  ;;  %p574_p2 = scmp.ne.s32.totalorder %s708_s2, %s573_s14  ;;  %s42_s11 = int_to_ptr.vmem [resolvable:$true] %s41_s11 }
  0x25   :  { %p577_p3 = scmp.lt.u32.totalorder %s573_s14, %s708_s2 }
  0x27   :  { %p579_p4 = pnand %p577_p3, %p574_p2 }
  0x29   :  { %582 = shalt.err (!%p579_p4)
}
  0x2a   :  { %s583_s20 = scalar_lea.vmem %s42_s11, 16  ;;  %s587_s0 = scalar_lea.vmem %s42_s11, 32 }
  0x2b   :  { %p584_p5 = scmp.ne.s32.totalorder %s42_s11, %s583_s20  ;;  %p588_p6 = scmp.lt.s32.totalorder %s42_s11, %s42_s11 }
  0x2c   :  { %p589_p7 = scmp.lt.s32.totalorder %s587_s0, %s583_s20 }
  0x2e   :  { %p590_p8 = por %p589_p7, %p588_p6 }
  0x30   :  { %p591_p9 = pnand %p590_p8, %p584_p5 }
  0x32   :  { %594 = shalt.err (!%p591_p9)
}
  0x33   :  { %44 = dma.hbm_to_vmem [thread:$0]  %s708_s2, 16, %s42_s11, [#allocation7]  }
  0x34   :  { %617 = dma.done.wait [#allocation4], 1024  }
  0x35   :  { %618 = vsyncadd [#allocation4], 4294966272 }
  0x36   :  { %619 = dma.done.wait [#allocation7], 1040  }
  0x37   :  { %620 = vsyncadd [#allocation7], 4294966256  ;;  %v513_v0 = vld [vmem:[#allocation6] sm:$0xff]   ;;  %v514_v1 = vld [vmem:[#allocation6 + $0x8] sm:$0xff]   ;;  %s628_s2 = smov [#allocation9]  }
  0x38   :  { %457 = vmatprep.subr.bf16.mxu0 %v513_v0  ;;  %489 = vmatprep.subr.bf16.mxu1 %v513_v0  ;;  %v515_v2 = vld [vmem:[#allocation6 + $0x10] sm:$0xff]   ;;  %v516_v3 = vld [vmem:[#allocation6 + $0x18] sm:$0xff]   ;;  %v521_v4 = vld [vmem:[#allocation3] sm:$0xff]   ;;  %s411_s22 = sshll.u32 %s628_s2, 4  ;;  %s412_s22 = int_to_ptr.vmem [resolvable:$true] %s411_s22 }
  0x39   :  { %458 = vmatpush3.bf16.msra.mxu0 %v513_v0  ;;  %497 = vmatpush3.bf16.msra.mxu1 %v513_v0  ;;  %v522_v5 = vld [vmem:[#allocation3 + $0x20] sm:$0xff]   ;;  %v518_v7 = vld [vmem:[#allocation6 + $0x28] sm:$0xff]   ;;  %v519_v8 = vld [vmem:[#allocation6 + $0x30] sm:$0xff]   ;;  %s595_s23 = scalar_lea.vmem %s412_s22, 2048  ;;  %p600_p11 = scmp.lt.s32.totalorder %s412_s22, %s412_s22 }
  0x3a   :  { %459 = vmatprep.subr.bf16.mxu0 %v514_v1  ;;  %490 = vmatprep.subr.bf16.mxu1 %v514_v1  ;;  %v517_v6 = vld [vmem:[#allocation6 + $0x20] sm:$0xff]   ;;  %v520_v9 = vld [vmem:[#allocation6 + $0x38] sm:$0xff]   ;;  %v523_v10 = vld [vmem:[#allocation3 + $0x8] sm:$0xff]   ;;  %p596_p10 = scmp.ne.s32.totalorder %s412_s22, %s595_s23  ;;  %p601_p12 = scmp.lt.s32.totalorder %s595_s23, %s595_s23 }
  0x3b   :  { %473 = vmatprep.mubr.bf16.mxu0 %v521_v4  ;;  %481 = vmatprep.mubr.bf16.mxu1 %v522_v5  ;;  %v524_v11 = vld [vmem:[#allocation3 + $0x28] sm:$0xff]   ;;  %v525_v12 = vld [vmem:[#allocation3 + $0x10] sm:$0xff]   ;;  %v527_v14 = vld [vmem:[#allocation3 + $0x18] sm:$0xff]  }
  0x3c   :  { %v526_v13 = vld [vmem:[#allocation3 + $0x30] sm:$0xff]   ;;  %v528_v15 = vld [vmem:[#allocation3 + $0x38] sm:$0xff]   ;;  %v440_v16 = vld [vmem:[#allocation8] ss:$0 sm:$0xff]  ;;  %p602_p13 = por %p601_p12, %p600_p11 }
  0x3d   :  { %460 = vmatpush3.bf16.msra.mxu0 %v514_v1  ;;  %498 = vmatpush3.bf16.msra.mxu1 %v514_v1 }
  0x3e   :  { %461 = vmatprep.subr.bf16.mxu0 %v515_v2  ;;  %491 = vmatprep.subr.bf16.mxu1 %v515_v2  ;;  %p603_p0 = pnand %p602_p13, %p596_p10 }
  0x41   :  { %462 = vmatpush3.bf16.msra.mxu0 %v515_v2  ;;  %499 = vmatpush3.bf16.msra.mxu1 %v515_v2 }
  0x42   :  { %463 = vmatprep.subr.bf16.mxu0 %v516_v3  ;;  %492 = vmatprep.subr.bf16.mxu1 %v516_v3 }
  0x45   :  { %464 = vmatpush3.bf16.msra.mxu0 %v516_v3  ;;  %500 = vmatpush3.bf16.msra.mxu1 %v516_v3 }
  0x46   :  { %465 = vmatprep.subr.bf16.mxu0 %v517_v6  ;;  %493 = vmatprep.subr.bf16.mxu1 %v517_v6 }
  0x49   :  { %466 = vmatpush3.bf16.msra.mxu0 %v517_v6  ;;  %501 = vmatpush3.bf16.msra.mxu1 %v517_v6 }
  0x4a   :  { %467 = vmatprep.subr.bf16.mxu0 %v518_v7  ;;  %494 = vmatprep.subr.bf16.mxu1 %v518_v7 }
  0x4d   :  { %468 = vmatpush3.bf16.msra.mxu0 %v518_v7  ;;  %502 = vmatpush3.bf16.msra.mxu1 %v518_v7 }
  0x4e   :  { %469 = vmatprep.subr.bf16.mxu0 %v519_v8  ;;  %495 = vmatprep.subr.bf16.mxu1 %v519_v8 }
  0x51   :  { %470 = vmatpush3.bf16.msra.mxu0 %v519_v8  ;;  %503 = vmatpush3.bf16.msra.mxu1 %v519_v8 }
  0x52   :  { %471 = vmatprep.subr.bf16.mxu0 %v520_v9  ;;  %496 = vmatprep.subr.bf16.mxu1 %v520_v9 }
  0x55   :  { %472 = vmatpush3.bf16.msra.mxu0 %v520_v9  ;;  %504 = vmatpush3.bf16.msra.mxu1 %v520_v9 }
  0x58   :  { %474 = vmatmul.mubr.bf16.vlgmr.msra.gmra.mrb[0].mxu0 %v523_v10  ;;  %482 = vmatmul.mubr.bf16.vlgmr.msra.gmra.mrb[0].mxu1 %v524_v11 }
  0x59   :  { %477 = vmatprep.mubr.bf16.mxu0 %v525_v12  ;;  %485 = vmatprep.mubr.bf16.mxu1 %v526_v13 }
  0x60   :  { %478 = vmatmul.mubr.bf16.gmra.mrb[4].mxu0 %v527_v14  ;;  %486 = vmatmul.mubr.bf16.gmra.mrb[4].mxu1 %v528_v15 }
 0x12b   :  { %v475_v17 = vpop.f32.mrb[0].mxu0  ;;  %v483_v18 = vpop.f32.mrb[0].mxu1 }
 0x12c   :  { %v376_v19 = vadd.f32 %v475_v17, %v440_v16  ;;  %v384_v20 = vadd.f32 %v483_v18, %v440_v16  ;;  %v253_v21 = vpop.f32.mrb[1].mxu0  ;;  %v285_v22 = vpop.f32.mrb[1].mxu1 }
 0x12d   :  { %v374_v23 = vadd.f32 %v440_v16, %v253_v21  ;;  %v382_v24 = vadd.f32 %v440_v16, %v285_v22  ;;  %v476_v25 = vpop.f32.mrb[2].mxu0  ;;  %v484_v26 = vpop.f32.mrb[2].mxu1 }
 0x12e   :  { %392 = vst [vmem:[#allocation9 + $0x10] sm:$0xff] %v376_v19  ;;  %400 = vst [vmem:[#allocation9 + $0x50] sm:$0xff] %v384_v20  ;;  %v377_v27 = vadd.f32 %v476_v25, %v440_v16  ;;  %v385_v28 = vadd.f32 %v484_v26, %v440_v16  ;;  %v256_v29 = vpop.f32.mrb[3].mxu0  ;;  %v288_v30 = vpop.f32.mrb[3].mxu1 }
 0x12f   :  { %390 = vst [vmem:[#allocation9] sm:$0xff] %v374_v23  ;;  %398 = vst [vmem:[#allocation9 + $0x40] sm:$0xff] %v382_v24  ;;  %v375_v31 = vadd.f32 %v440_v16, %v256_v29  ;;  %v383_v32 = vadd.f32 %v440_v16, %v288_v30 }
 0x130   :  { %393 = vst [vmem:[#allocation9 + $0x18] sm:$0xff] %v377_v27  ;;  %401 = vst [vmem:[#allocation9 + $0x58] sm:$0xff] %v385_v28 }
 0x131   :  { %391 = vst [vmem:[#allocation9 + $0x8] sm:$0xff] %v375_v31  ;;  %399 = vst [vmem:[#allocation9 + $0x48] sm:$0xff] %v383_v32 }
 0x133   :  { %v479_v33 = vpop.f32.mrb[4].mxu0  ;;  %v487_v34 = vpop.f32.mrb[4].mxu1 }
 0x134   :  { %v380_v35 = vadd.f32 %v479_v33, %v440_v16  ;;  %v388_v36 = vadd.f32 %v487_v34, %v440_v16  ;;  %v269_v37 = vpop.f32.mrb[5].mxu0  ;;  %v301_v38 = vpop.f32.mrb[5].mxu1 }
 0x135   :  { %v378_v39 = vadd.f32 %v440_v16, %v269_v37  ;;  %v386_v40 = vadd.f32 %v440_v16, %v301_v38  ;;  %v480_v41 = vpop.f32.mrb[6].mxu0  ;;  %v488_v42 = vpop.f32.mrb[6].mxu1 }
 0x136   :  { %396 = vst [vmem:[#allocation9 + $0x30] sm:$0xff] %v380_v35  ;;  %404 = vst [vmem:[#allocation9 + $0x70] sm:$0xff] %v388_v36  ;;  %v381_v43 = vadd.f32 %v480_v41, %v440_v16  ;;  %v389_v44 = vadd.f32 %v488_v42, %v440_v16  ;;  %v272_v45 = vpop.f32.mrb[7].mxu0  ;;  %v304_v46 = vpop.f32.mrb[7].mxu1 }
 0x137   :  { %394 = vst [vmem:[#allocation9 + $0x20] sm:$0xff] %v378_v39  ;;  %402 = vst [vmem:[#allocation9 + $0x60] sm:$0xff] %v386_v40  ;;  %v379_v47 = vadd.f32 %v440_v16, %v272_v45  ;;  %v387_v48 = vadd.f32 %v440_v16, %v304_v46 }
 0x138   :  { %397 = vst [vmem:[#allocation9 + $0x38] sm:$0xff] %v381_v43  ;;  %405 = vst [vmem:[#allocation9 + $0x78] sm:$0xff] %v389_v44 }
 0x139   :  { %395 = vst [vmem:[#allocation9 + $0x28] sm:$0xff] %v379_v47  ;;  %403 = vst [vmem:[#allocation9 + $0x68] sm:$0xff] %v387_v48 }
 0x13a   :  { %606 = shalt.err (!%p603_p0)
}
 0x13b   :  { %s607_s26 = scalar_lea.hbm %s709_s3, 2048 }
 0x13c   :  { %p608_p1 = scmp.ne.s32.totalorder %s709_s3, %s607_s26  ;;  %p611_p2 = scmp.lt.u32.totalorder %s607_s26, %s709_s3 }
 0x13e   :  { %p613_p3 = pnand %p611_p2, %p608_p1 }
 0x140   :  { %616 = shalt.err (!%p613_p3)
}
 0x141   :  { %s629_s4 = smov 128   ;;  %s630_s5 = smov 8  }
 0x142   :  { %417 = dma.vmem_to_hbm [thread:$0]  %s412_s22, 2048, %s709_s3, [#allocation5], %s629_s4, %s629_s4, %s630_s5  }
 0x143   :  { %621 = dma.done.wait [#allocation5], 2048  }
 0x144   :  { %622 = vsyncadd [#allocation5], 4294965248 }
 0x145   :  { %421 = vsyncpa [#allocation4], 1 }
 0x146   :  { %422 = vsyncpa [#allocation7], 1 }
 0x147   :  { %423 = vsyncpa [#allocation5], 1 }

</bundles_post_ra>
